<compile_context>
chip_gen: v6e
topology: v6e:2x2x1
jax: 0.10.0
libtpu: 0.0.40
codegen_flags: <defaults>
</compile_context>

<pallas_src>
import math
import re

import jax
import jax.numpy as jnp
from jax import lax
from jax.experimental import pallas as pl
from jax.experimental.pallas import tpu as pltpu

LN_EPS = 1e-5     # nn.LayerNorm default eps
L2_EPS = 1e-12    # F.normalize default eps


def gcn_encoder_kernel(
    x_ref, adj_ref,
    w1_ref, b1_ref, w2_ref, b2_ref, w3_ref, b3_ref,
    g_ref, be_ref, wp1_ref, wp2_ref, wp3_ref, bp_ref,
    xpool_ref, packed_ref,
):
    tb, n, d_in = x_ref.shape
    hid = w1_ref.shape[1]
    emb = w3_ref.shape[1]
    lbl = bp_ref.shape[-1]

    # ---- constant operands: read / broadcast once per grid step ----
    adj = adj_ref[...]                           # [tb, n, n]  bf16
    x = x_ref[...]                               # [tb, n, d_in]  f32
    x_bf3 = x.astype(jnp.bfloat16)               # reused by conv_first & pooling
    w1 = w1_ref[...]
    w2 = w2_ref[...]
    w3 = w3_ref[...]
    wp1 = wp1_ref[...]
    wp2 = wp2_ref[...]
    wp3 = wp3_ref[...]
    b1 = b1_ref[0, :]
    b2 = b2_ref[0, :]
    b3 = b3_ref[0, :]
    gamma = g_ref[0, :]
    beta = be_ref[0, :]
    bp = bp_ref[0, :]

    # ---- helpers on the flattened [tb*n, D] node slab ----
    def to3(h_flat):  # [tb*n, w] f32 -> [tb, n, w] bf16 (n == sublane tile -> trivial)
        return h_flat.astype(jnp.bfloat16).reshape(tb, n, h_flat.shape[-1])

    def adj_mm(h3_bf):  # batched adj @ h, f32 accumulate, returned flat
        y3 = jnp.einsum("bnm,bmd->bnd", adj, h3_bf,
                        preferred_element_type=jnp.float32)
        return y3.reshape(tb * n, h3_bf.shape[-1])

    def l2_normalize(y):  # F.normalize: y * rsqrt(max(||y||^2, eps^2))
        ss = jnp.sum(y * y, axis=-1, keepdims=True)
        return y * lax.rsqrt(jnp.maximum(ss, L2_EPS * L2_EPS))

    def layer_norm(h):
        mu = jnp.mean(h, axis=-1, keepdims=True)
        var = jnp.mean((h - mu) * (h - mu), axis=-1, keepdims=True)
        return (h - mu) * lax.rsqrt(var + LN_EPS) * gamma + beta

    # conv_first: normalize((adj @ x) @ W1 + b1) -> ReLU -> LayerNorm
    y1 = jnp.dot(adj_mm(x_bf3).astype(jnp.bfloat16), w1,
                 preferred_element_type=jnp.float32) + b1
    h1 = layer_norm(jnp.maximum(l2_normalize(y1), 0.0))           # [tb*n, hid]

    # conv_block[0]: same pattern
    y2 = jnp.dot(adj_mm(to3(h1)).astype(jnp.bfloat16), w2,
                 preferred_element_type=jnp.float32) + b2
    h2 = layer_norm(jnp.maximum(l2_normalize(y2), 0.0))           # [tb*n, hid]

    # conv_last (no ReLU / no LayerNorm); emb < hid -> weight first:
    # (adj @ h2) @ W3 == adj @ (h2 @ W3)  (identical math, fewer FLOPs)
    hw3 = jnp.dot(h2.astype(jnp.bfloat16), w3,
                  preferred_element_type=jnp.float32)             # [tb*n, emb]
    h3 = l2_normalize(adj_mm(to3(hw3)) + b3)                      # [tb*n, emb]

    # pred_model(cat([h1,h2,h3], dim=2)) without the lane concat: split weights.
    logits = (jnp.dot(h1.astype(jnp.bfloat16), wp1, preferred_element_type=jnp.float32)
              + jnp.dot(h2.astype(jnp.bfloat16), wp2, preferred_element_type=jnp.float32)
              + jnp.dot(h3.astype(jnp.bfloat16), wp3, preferred_element_type=jnp.float32)
              + bp)                                               # [tb*n, lbl]

    # Softmax(dim=-1), exact denominator (torch parity).
    m = jnp.max(logits, axis=-1, keepdims=True)
    e = jnp.exp(logits - m)
    assign_flat = e / jnp.sum(e, axis=-1, keepdims=True)          # [tb*n, lbl] f32

    # ---- pooling: one explicit transpose of assign, shared by both dots ----
    assign3 = assign_flat.reshape(tb, n, lbl)                     # [tb, n, lbl]
    assign_bf = assign3.astype(jnp.bfloat16)
    assign_t = jnp.transpose(assign3, (0, 2, 1)).astype(jnp.bfloat16)  # [tb, lbl, n]

    x_pool = jnp.einsum("bln,bnd->bld", assign_t, x_bf3,
                        preferred_element_type=jnp.float32)       # [tb, lbl, d_in]
    at_adj = jnp.einsum("bln,bnm->blm", assign_t, adj,
                        preferred_element_type=jnp.float32)       # [tb, lbl, n]
    adj_pool = jnp.einsum("blm,bmk->blk", at_adj.astype(jnp.bfloat16), assign_bf,
                          preferred_element_type=jnp.float32)     # [tb, lbl, lbl]

    # ---- lane-dense stores: flatten trailing dims via static slices + concat ----
    xpool_ref[...] = jnp.concatenate(
        [x_pool[:, l, :] for l in range(lbl)], axis=-1
    ).astype(xpool_ref.dtype)                                     # [tb, lbl*d_in]

    packed = jnp.concatenate(
        [adj_pool[:, l, :] for l in range(lbl)]
        + [assign3[:, i, :] for i in range(n)], axis=-1)          # [tb, lbl*lbl + n*lbl]
    packed_ref[...] = packed.astype(packed_ref.dtype)


def _tpu_generation():
    try:
        kind = jax.devices()[0].device_kind
    except Exception:
        return 6
    m = re.search(r"(\d+)", kind)
    return int(m.group(1)) if m else 6


def _pick_tb(B, N, d_in, hid, emb, L, gen):
    """Graphs per grid step, generation aware.

    v7x (2 TCs): prefer an even number of grid steps >= 2 for megacore balance,
    with a tighter VMEM budget (64 MiB part).  v5e/v6e (1 TC): fewest, fattest
    steps to amortize the ~0.35us per-step cost (grid=1 is fine).
    The estimate includes the live f32 intermediates of the flattened slab,
    not just the pipelined input/output tiles.
    """
    budget = (16 << 20) if gen >= 7 else (24 << 20)

    def step_bytes(tb):
        io = 2 * tb * (N * d_in * 4 + N * N * 2)                   # inputs, 2-buffered
        io += 2 * tb * (L * d_in + L * L + N * L) * 4              # outputs, 2-buffered
        inter = tb * N * (2 * d_in + 4 * hid + 3 * emb + 6 * L) * 4
        inter += tb * (L * d_in + 2 * L * N + 2 * L * L) * 4
        weights = (d_in * hid + hid * hid + hid * emb + (2 * hid + emb) * L) * 2 * 2
        return int(1.5 * (io + inter)) + weights                   # 1.5x spill slack

    fits = [t for t in range(1, B + 1) if B % t == 0 and step_bytes(t) <= budget]
    if not fits:
        fits = [1]
    if gen >= 7:
        good = [t for t in fits if (B // t) >= 2 and (B // t) % 2 == 0]
        if good:
            return max(good)
    return max(fits)


def gcn_encoder_forward(x, adj, params, *, tb=None):
    B, N, d_in = x.shape
    hid = params["w1"].shape[1]
    emb = params["w3"].shape[1]
    L = params["bp"].shape[-1]

    # bn_module = nn.LayerNorm(input_dim) is applied to hidden activations in
    # the torch module; it only runs when hidden_dim == input_dim.
    assert hid == d_in and params["ln_g"].shape[-1] == hid, (
        "hidden_dim must equal input_dim (LayerNorm(input_dim) on hidden acts)")
    assert params["wp"].shape[0] == 2 * hid + emb

    gen = _tpu_generation()
    if tb is None:
        tb = _pick_tb(B, N, d_in, hid, emb, L, gen)
    assert B % tb == 0, "batch must be divisible by tb"
    grid = (B // tb,)

    # bf16 MXU operands (f32 accumulation in-kernel); also halves adj DMA bytes.
    adj_bf = adj.astype(jnp.bfloat16)
    w1 = params["w1"].astype(jnp.bfloat16)
    w2 = params["w2"].astype(jnp.bfloat16)
    w3 = params["w3"].astype(jnp.bfloat16)
    wp = params["wp"]
    wp1 = wp[:hid].astype(jnp.bfloat16)
    wp2 = wp[hid:2 * hid].astype(jnp.bfloat16)
    wp3 = wp[2 * hid:].astype(jnp.bfloat16)

    flat_params = [
        w1, params["b1"], w2, params["b2"], w3, params["b3"],
        params["ln_g"], params["ln_b"], wp1, wp2, wp3, params["bp"],
    ]

    def full_spec(arr):
        nd = arr.ndim
        return pl.BlockSpec(arr.shape, lambda b, _nd=nd: (0,) * _nd)
    # TODO(synk): these constant-index weight/bias specs could be single-buffered
    # (pipeline_mode=pl.Buffered(1)) to reclaim a few KiB of VMEM on v7x; left at
    # the default double-buffering (a few KiB total) for lowering portability.

    in_specs = [
        pl.BlockSpec((tb, N, d_in), lambda b: (b, 0, 0)),
        pl.BlockSpec((tb, N, N), lambda b: (b, 0, 0)),
    ] + [full_spec(p) for p in flat_params]

    out_specs = [
        pl.BlockSpec((tb, L * d_in), lambda b: (b, 0)),         # x_pool, 256 lanes
        pl.BlockSpec((tb, L * L + N * L), lambda b: (b, 0)),    # adj_pool | assign, 128 lanes
    ]
    out_shape = [
        jax.ShapeDtypeStruct((B, L * d_in), jnp.float32),
        jax.ShapeDtypeStruct((B, L * L + N * L), jnp.float32),
    ]

    flops_per_graph = (
        2 * N * N * d_in + 2 * N * d_in * hid        # conv_first
        + 2 * N * N * hid + 2 * N * hid * hid        # conv_block[0]
        + 2 * N * hid * emb + 2 * N * N * emb        # conv_last
        + 2 * N * (2 * hid + emb) * L                # pred (split weights)
        + 2 * L * N * d_in + 2 * L * N * N + 2 * L * N * L)  # pooling
    bytes_accessed = (
        int(x.size) * 4 + int(adj.size) * 2
        + sum(int(p.size) * p.dtype.itemsize for p in flat_params)
        + B * (L * d_in + L * L + N * L) * 4)
    cost = pl.CostEstimate(
        flops=int(B * flops_per_graph),
        transcendentals=int(B * N * L),
        bytes_accessed=int(bytes_accessed),
    )

    xpool_flat, packed = pl.pallas_call(
        gcn_encoder_kernel,
        out_shape=out_shape,
        grid_spec=pltpu.PrefetchScalarGridSpec(
            num_scalar_prefetch=0,
            grid=grid,
            in_specs=in_specs,
            out_specs=out_specs,
        ),
        compiler_params=pltpu.CompilerParams(
            dimension_semantics=("parallel",),
            # Working set is small; 32 MiB is safe on v5e/v6e/v7x alike and
            # leaves headroom under v7x's 64 MiB physical VMEM.
            vmem_limit_bytes=32 * 1024 * 1024,
        ),
        cost_estimate=cost,
    )(x, adj_bf, *flat_params)

    # Un-flatten the lane-dense outputs back to the module's layouts.
    x_pool = xpool_flat.reshape(B, L, d_in)
    adj_pool = packed[:, : L * L].reshape(B, L, L)
    assign = packed[:, L * L:].reshape(B, N, L)
    return x_pool, adj_pool, assign


# --------------------------- reference / params ---------------------------

def gcn_encoder_reference(x, adj, params):
    """Pure-JAX f32 reference mirroring the torch forward (for validation)."""
    def conv(h, w, b):
        y = jnp.einsum("bnm,bmd->bnd", adj, h) @ w + b[0]
        nrm = jnp.sqrt(jnp.sum(y * y, axis=-1, keepdims=True))
        return y / jnp.maximum(nrm, L2_EPS)

    def ln(h):
        mu = jnp.mean(h, -1, keepdims=True)
        var = jnp.mean((h - mu) ** 2, -1, keepdims=True)
        return (h - mu) / jnp.sqrt(var + LN_EPS) * params["ln_g"][0] + params["ln_b"][0]

    h1 = ln(jax.nn.relu(conv(x, params["w1"], params["b1"])))
    h2 = ln(jax.nn.relu(conv(h1, params["w2"], params["b2"])))
    h3 = conv(h2, params["w3"], params["b3"])
    logits = jnp.concatenate([h1, h2, h3], axis=-1) @ params["wp"] + params["bp"][0]
    assign = jax.nn.softmax(logits, axis=-1)
    x_pool = jnp.einsum("bnl,bnd->bld", assign, x)
    adj_pool = jnp.einsum("bnl,bnm,bmk->blk", assign, adj, assign)
    return x_pool, adj_pool, assign


def _xavier_uniform(key, shape, gain):
    fan_in, fan_out = shape
    a = gain * math.sqrt(6.0 / (fan_in + fan_out))
    return jax.random.uniform(key, shape, jnp.float32, -a, a)


def make_params(key, input_dim, hidden_dim, embedding_dim, label_dim):
    # GraphConv weights: xavier_uniform(gain=calculate_gain('relu')=sqrt(2)),
    # bias=0.  LayerNorm: weight=1, bias=0.  Pred Linear: PyTorch default init.
    gain = math.sqrt(2.0)
    k1, k2, k3, k4, k5 = jax.random.split(key, 5)
    pred_in = hidden_dim * 2 + embedding_dim
    bound = 1.0 / math.sqrt(pred_in)
    return {
        "w1": _xavier_uniform(k1, (input_dim, hidden_dim), gain),
        "b1": jnp.zeros((1, hidden_dim), jnp.float32),
        "w2": _xavier_uniform(k2, (hidden_dim, hidden_dim), gain),
        "b2": jnp.zeros((1, hidden_dim), jnp.float32),
        "w3": _xavier_uniform(k3, (hidden_dim, embedding_dim), gain),
        "b3": jnp.zeros((1, embedding_dim), jnp.float32),
        "ln_g": jnp.ones((1, input_dim), jnp.float32),
        "ln_b": jnp.zeros((1, input_dim), jnp.float32),
        "wp": jax.random.uniform(k4, (pred_in, label_dim), jnp.float32, -bound, bound),
        "bp": jax.random.uniform(k5, (1, label_dim), jnp.float32, -bound, bound),
    }


if __name__ == "__main__":
    B, N = 8, 8
    input_dim = 32
    hidden_dim = 32        # must equal input_dim: bn_module = LayerNorm(input_dim)
    embedding_dim = 16
    label_dim = 8          # number of soft-assignment clusters
    # num_layers = 3 is hardcoded in the kernel (conv_first + 1 block + conv_last)
    # TODO(synk): dropout layers from __init__ omitted (dropout=0.0 -> no-op);
    # batch_num_nodes / embedding_mask path not exercised (None in this config).

    key = jax.random.PRNGKey(0)
    kx, ka, kp = jax.random.split(key, 3)
    x = jax.random.normal(kx, (B, N, input_dim), jnp.float32)
    a = jax.random.uniform(ka, (B, N, N), jnp.float32)
    adj = 0.5 * (a + jnp.transpose(a, (0, 2, 1)))   # symmetric dense adjacency

    params = make_params(kp, input_dim, hidden_dim, embedding_dim, label_dim)

    x_pool, adj_pool, assign = gcn_encoder_forward(x, adj, params)
    jax.block_until_ready((x_pool, adj_pool, assign))

    assert x_pool.shape == (B, label_dim, input_dim)
    assert adj_pool.shape == (B, label_dim, label_dim)
    assert assign.shape == (B, N, label_dim)
    assert bool(jnp.all(jnp.isfinite(x_pool)))
    assert bool(jnp.all(jnp.isfinite(adj_pool)))
    # exact softmax denominator -> rows sum to 1 within f32 rounding
    assert bool(jnp.all(jnp.abs(jnp.sum(assign, axis=-1) - 1.0) < 1e-3))

    # Loose comparison against the f32 reference (kernel uses bf16 MXU operands).
    xr, ar, sr = gcn_encoder_reference(x, adj, params)
    for got, ref in ((x_pool, xr), (adj_pool, ar), (assign, sr)):
        d = jnp.abs(got - ref)
        assert bool(jnp.mean(d) < 0.08), float(jnp.mean(d))
        assert bool(jnp.max(d) < 0.6), float(jnp.max(d))

    print("KERNEL_OK")
</pallas_src>

<mosaic_0001>
module attributes {stable_mosaic.version = 11 : i64} {
  func.func @gcn_encoder_kernel(%arg0: i32, %arg1: memref<8x8x32xf32, #tpu.memory_space<vmem>>, %arg2: memref<8x8x8xbf16, #tpu.memory_space<vmem>>, %arg3: memref<32x32xbf16, #tpu.memory_space<vmem>>, %arg4: memref<1x32xf32, #tpu.memory_space<vmem>>, %arg5: memref<32x32xbf16, #tpu.memory_space<vmem>>, %arg6: memref<1x32xf32, #tpu.memory_space<vmem>>, %arg7: memref<32x16xbf16, #tpu.memory_space<vmem>>, %arg8: memref<1x16xf32, #tpu.memory_space<vmem>>, %arg9: memref<1x32xf32, #tpu.memory_space<vmem>>, %arg10: memref<1x32xf32, #tpu.memory_space<vmem>>, %arg11: memref<32x8xbf16, #tpu.memory_space<vmem>>, %arg12: memref<32x8xbf16, #tpu.memory_space<vmem>>, %arg13: memref<16x8xbf16, #tpu.memory_space<vmem>>, %arg14: memref<1x8xf32, #tpu.memory_space<vmem>>, %arg15: memref<8x256xf32, #tpu.memory_space<vmem>>, %arg16: memref<8x128xf32, #tpu.memory_space<vmem>>) attributes {dimension_semantics = [#tpu.dimension_semantics<parallel>], iteration_bounds = array<i64: 1>, scalar_prefetch = 0 : i64, scratch_operands = 0 : i64, tpu.core_type = #tpu.core_type<tc>, window_params = [{transform_indices = @transform_0, window_bounds = array<i64: 8, 8, 32>}, {transform_indices = @transform_1, window_bounds = array<i64: 8, 8, 8>}, {pipeline_mode = #tpu.pipeline_mode<synchronous>, transform_indices = @transform_2, window_bounds = array<i64: 32, 32>}, {pipeline_mode = #tpu.pipeline_mode<synchronous>, transform_indices = @transform_3, window_bounds = array<i64: 1, 32>}, {pipeline_mode = #tpu.pipeline_mode<synchronous>, transform_indices = @transform_4, window_bounds = array<i64: 32, 32>}, {pipeline_mode = #tpu.pipeline_mode<synchronous>, transform_indices = @transform_5, window_bounds = array<i64: 1, 32>}, {pipeline_mode = #tpu.pipeline_mode<synchronous>, transform_indices = @transform_6, window_bounds = array<i64: 32, 16>}, {pipeline_mode = #tpu.pipeline_mode<synchronous>, transform_indices = @transform_7, window_bounds = array<i64: 1, 16>}, {pipeline_mode = #tpu.pipeline_mode<synchronous>, transform_indices = @transform_8, window_bounds = array<i64: 1, 32>}, {pipeline_mode = #tpu.pipeline_mode<synchronous>, transform_indices = @transform_9, window_bounds = array<i64: 1, 32>}, {pipeline_mode = #tpu.pipeline_mode<synchronous>, transform_indices = @transform_10, window_bounds = array<i64: 32, 8>}, {pipeline_mode = #tpu.pipeline_mode<synchronous>, transform_indices = @transform_11, window_bounds = array<i64: 32, 8>}, {pipeline_mode = #tpu.pipeline_mode<synchronous>, transform_indices = @transform_12, window_bounds = array<i64: 16, 8>}, {pipeline_mode = #tpu.pipeline_mode<synchronous>, transform_indices = @transform_13, window_bounds = array<i64: 1, 8>}, {transform_indices = @transform_14, window_bounds = array<i64: 8, 256>}, {transform_indices = @transform_15, window_bounds = array<i64: 8, 128>}]} {
    %c0 = arith.constant 0 : index
    %c0_0 = arith.constant 0 : index
    %c0_1 = arith.constant 0 : index
    %0 = vector.load %arg2[%c0, %c0_0, %c0_1] : memref<8x8x8xbf16, #tpu.memory_space<vmem>>, vector<8x8x8xbf16>
    %c0_2 = arith.constant 0 : index
    %c0_3 = arith.constant 0 : index
    %c0_4 = arith.constant 0 : index
    %1 = vector.load %arg1[%c0_2, %c0_3, %c0_4] : memref<8x8x32xf32, #tpu.memory_space<vmem>>, vector<8x8x32xf32>
    %2 = arith.truncf %1 : vector<8x8x32xf32> to vector<8x8x32xbf16>
    %c0_5 = arith.constant 0 : index
    %c0_6 = arith.constant 0 : index
    %3 = vector.load %arg3[%c0_5, %c0_6] : memref<32x32xbf16, #tpu.memory_space<vmem>>, vector<32x32xbf16>
    %c0_7 = arith.constant 0 : index
    %c0_8 = arith.constant 0 : index
    %4 = vector.load %arg5[%c0_7, %c0_8] : memref<32x32xbf16, #tpu.memory_space<vmem>>, vector<32x32xbf16>
    %c0_9 = arith.constant 0 : index
    %c0_10 = arith.constant 0 : index
    %5 = vector.load %arg7[%c0_9, %c0_10] : memref<32x16xbf16, #tpu.memory_space<vmem>>, vector<32x16xbf16>
    %c0_11 = arith.constant 0 : index
    %c0_12 = arith.constant 0 : index
    %6 = vector.load %arg11[%c0_11, %c0_12] : memref<32x8xbf16, #tpu.memory_space<vmem>>, vector<32x8xbf16>
    %c0_13 = arith.constant 0 : index
    %c0_14 = arith.constant 0 : index
    %7 = vector.load %arg12[%c0_13, %c0_14] : memref<32x8xbf16, #tpu.memory_space<vmem>>, vector<32x8xbf16>
    %c0_15 = arith.constant 0 : index
    %c0_16 = arith.constant 0 : index
    %8 = vector.load %arg13[%c0_15, %c0_16] : memref<16x8xbf16, #tpu.memory_space<vmem>>, vector<16x8xbf16>
    %c0_17 = arith.constant 0 : index
    %c0_18 = arith.constant 0 : index
    %9 = vector.load %arg4[%c0_17, %c0_18] : memref<1x32xf32, #tpu.memory_space<vmem>>, vector<1x32xf32>
    %10 = vector.shape_cast %9 : vector<1x32xf32> to vector<32xf32>
    %c0_19 = arith.constant 0 : index
    %c0_20 = arith.constant 0 : index
    %11 = vector.load %arg6[%c0_19, %c0_20] : memref<1x32xf32, #tpu.memory_space<vmem>>, vector<1x32xf32>
    %12 = vector.shape_cast %11 : vector<1x32xf32> to vector<32xf32>
    %c0_21 = arith.constant 0 : index
    %c0_22 = arith.constant 0 : index
    %13 = vector.load %arg8[%c0_21, %c0_22] : memref<1x16xf32, #tpu.memory_space<vmem>>, vector<1x16xf32>
    %14 = vector.shape_cast %13 : vector<1x16xf32> to vector<16xf32>
    %c0_23 = arith.constant 0 : index
    %c0_24 = arith.constant 0 : index
    %15 = vector.load %arg9[%c0_23, %c0_24] : memref<1x32xf32, #tpu.memory_space<vmem>>, vector<1x32xf32>
    %16 = vector.shape_cast %15 : vector<1x32xf32> to vector<32xf32>
    %c0_25 = arith.constant 0 : index
    %c0_26 = arith.constant 0 : index
    %17 = vector.load %arg10[%c0_25, %c0_26] : memref<1x32xf32, #tpu.memory_space<vmem>>, vector<1x32xf32>
    %18 = vector.shape_cast %17 : vector<1x32xf32> to vector<32xf32>
    %c0_27 = arith.constant 0 : index
    %c0_28 = arith.constant 0 : index
    %19 = vector.load %arg14[%c0_27, %c0_28] : memref<1x8xf32, #tpu.memory_space<vmem>>, vector<1x8xf32>
    %20 = vector.shape_cast %19 : vector<1x8xf32> to vector<8xf32>
    "tpu.trace_start"() <{level = 10 : i32, message = "bnm,bmd->bnd"}> : () -> ()
    %cst = arith.constant dense<0.000000e+00> : vector<8x8x32xf32>
    %21 = tpu.matmul %0, %2, %cst {dimension_numbers = #tpu.dot_dimension_numbers<[2], [1], [1], [2], [0, 0, 0, 1, 1, 2], [0], [0]>} : vector<8x8x8xbf16>, vector<8x8x32xbf16>, vector<8x8x32xf32> -> vector<8x8x32xf32>
    "tpu.trace_stop"() : () -> ()
    %22 = vector.shape_cast %21 : vector<8x8x32xf32> to vector<64x32xf32>
    %23 = arith.truncf %22 : vector<64x32xf32> to vector<64x32xbf16>
    %cst_29 = arith.constant dense<0.000000e+00> : vector<64x32xf32>
    %24 = tpu.matmul %23, %3, %cst_29 {dimension_numbers = #tpu.dot_dimension_numbers<[1], [0], [0], [1], [0, 0, 1, 1], [], []>} : vector<64x32xbf16>, vector<32x32xbf16>, vector<64x32xf32> -> vector<64x32xf32>
    %25 = vector.shape_cast %10 : vector<32xf32> to vector<1x32xf32>
    %26 = vector.broadcast %25 : vector<1x32xf32> to vector<64x32xf32>
    %27 = arith.addf %24, %26 : vector<64x32xf32>
    %28 = arith.mulf %27, %27 : vector<64x32xf32>
    %cst_30 = arith.constant dense<0.000000e+00> : vector<64xf32>
    %29 = vector.multi_reduction <add>, %28, %cst_30 [1] : vector<64x32xf32> to vector<64xf32>
    %30 = vector.shape_cast %29 : vector<64xf32> to vector<64x1xf32>
    %cst_31 = arith.constant 1.000000e-24 : f32
    %31 = vector.broadcast %cst_31 : f32 to vector<64x1xf32>
    %32 = arith.maximumf %30, %31 : vector<64x1xf32>
    %33 = math.rsqrt %32 : vector<64x1xf32>
    %34 = vector.broadcast %33 : vector<64x1xf32> to vector<64x32xf32>
    %35 = arith.mulf %27, %34 : vector<64x32xf32>
    %cst_32 = arith.constant 0.000000e+00 : f32
    %36 = vector.broadcast %cst_32 : f32 to vector<64x32xf32>
    %37 = arith.maximumf %35, %36 : vector<64x32xf32>
    %cst_33 = arith.constant dense<0.000000e+00> : vector<64xf32>
    %38 = vector.multi_reduction <add>, %37, %cst_33 [1] : vector<64x32xf32> to vector<64xf32>
    %39 = vector.shape_cast %38 : vector<64xf32> to vector<64x1xf32>
    %cst_34 = arith.constant 3.200000e+01 : f32
    %40 = vector.broadcast %cst_34 : f32 to vector<64x1xf32>
    %41 = arith.divf %39, %40 : vector<64x1xf32>
    %42 = vector.broadcast %41 : vector<64x1xf32> to vector<64x32xf32>
    %43 = arith.subf %37, %42 : vector<64x32xf32>
    %44 = vector.broadcast %41 : vector<64x1xf32> to vector<64x32xf32>
    %45 = arith.subf %37, %44 : vector<64x32xf32>
    %46 = arith.mulf %43, %45 : vector<64x32xf32>
    %cst_35 = arith.constant dense<0.000000e+00> : vector<64xf32>
    %47 = vector.multi_reduction <add>, %46, %cst_35 [1] : vector<64x32xf32> to vector<64xf32>
    %48 = vector.shape_cast %47 : vector<64xf32> to vector<64x1xf32>
    %cst_36 = arith.constant 3.200000e+01 : f32
    %49 = vector.broadcast %cst_36 : f32 to vector<64x1xf32>
    %50 = arith.divf %48, %49 : vector<64x1xf32>
    %51 = vector.broadcast %41 : vector<64x1xf32> to vector<64x32xf32>
    %52 = arith.subf %37, %51 : vector<64x32xf32>
    %cst_37 = arith.constant 9.99999974E-6 : f32
    %53 = vector.broadcast %cst_37 : f32 to vector<64x1xf32>
    %54 = arith.addf %50, %53 : vector<64x1xf32>
    %55 = math.rsqrt %54 : vector<64x1xf32>
    %56 = vector.broadcast %55 : vector<64x1xf32> to vector<64x32xf32>
    %57 = arith.mulf %52, %56 : vector<64x32xf32>
    %58 = vector.shape_cast %16 : vector<32xf32> to vector<1x32xf32>
    %59 = vector.broadcast %58 : vector<1x32xf32> to vector<64x32xf32>
    %60 = arith.mulf %57, %59 : vector<64x32xf32>
    %61 = vector.shape_cast %18 : vector<32xf32> to vector<1x32xf32>
    %62 = vector.broadcast %61 : vector<1x32xf32> to vector<64x32xf32>
    %63 = arith.addf %60, %62 : vector<64x32xf32>
    %64 = arith.truncf %63 : vector<64x32xf32> to vector<64x32xbf16>
    %65 = vector.shape_cast %64 : vector<64x32xbf16> to vector<8x8x32xbf16>
    "tpu.trace_start"() <{level = 10 : i32, message = "bnm,bmd->bnd"}> : () -> ()
    %cst_38 = arith.constant dense<0.000000e+00> : vector<8x8x32xf32>
    %66 = tpu.matmul %0, %65, %cst_38 {dimension_numbers = #tpu.dot_dimension_numbers<[2], [1], [1], [2], [0, 0, 0, 1, 1, 2], [0], [0]>} : vector<8x8x8xbf16>, vector<8x8x32xbf16>, vector<8x8x32xf32> -> vector<8x8x32xf32>
    "tpu.trace_stop"() : () -> ()
    %67 = vector.shape_cast %66 : vector<8x8x32xf32> to vector<64x32xf32>
    %68 = arith.truncf %67 : vector<64x32xf32> to vector<64x32xbf16>
    %cst_39 = arith.constant dense<0.000000e+00> : vector<64x32xf32>
    %69 = tpu.matmul %68, %4, %cst_39 {dimension_numbers = #tpu.dot_dimension_numbers<[1], [0], [0], [1], [0, 0, 1, 1], [], []>} : vector<64x32xbf16>, vector<32x32xbf16>, vector<64x32xf32> -> vector<64x32xf32>
    %70 = vector.shape_cast %12 : vector<32xf32> to vector<1x32xf32>
    %71 = vector.broadcast %70 : vector<1x32xf32> to vector<64x32xf32>
    %72 = arith.addf %69, %71 : vector<64x32xf32>
    %73 = arith.mulf %72, %72 : vector<64x32xf32>
    %cst_40 = arith.constant dense<0.000000e+00> : vector<64xf32>
    %74 = vector.multi_reduction <add>, %73, %cst_40 [1] : vector<64x32xf32> to vector<64xf32>
    %75 = vector.shape_cast %74 : vector<64xf32> to vector<64x1xf32>
    %cst_41 = arith.constant 1.000000e-24 : f32
    %76 = vector.broadcast %cst_41 : f32 to vector<64x1xf32>
    %77 = arith.maximumf %75, %76 : vector<64x1xf32>
    %78 = math.rsqrt %77 : vector<64x1xf32>
    %79 = vector.broadcast %78 : vector<64x1xf32> to vector<64x32xf32>
    %80 = arith.mulf %72, %79 : vector<64x32xf32>
    %cst_42 = arith.constant 0.000000e+00 : f32
    %81 = vector.broadcast %cst_42 : f32 to vector<64x32xf32>
    %82 = arith.maximumf %80, %81 : vector<64x32xf32>
    %cst_43 = arith.constant dense<0.000000e+00> : vector<64xf32>
    %83 = vector.multi_reduction <add>, %82, %cst_43 [1] : vector<64x32xf32> to vector<64xf32>
    %84 = vector.shape_cast %83 : vector<64xf32> to vector<64x1xf32>
    %cst_44 = arith.constant 3.200000e+01 : f32
    %85 = vector.broadcast %cst_44 : f32 to vector<64x1xf32>
    %86 = arith.divf %84, %85 : vector<64x1xf32>
    %87 = vector.broadcast %86 : vector<64x1xf32> to vector<64x32xf32>
    %88 = arith.subf %82, %87 : vector<64x32xf32>
    %89 = vector.broadcast %86 : vector<64x1xf32> to vector<64x32xf32>
    %90 = arith.subf %82, %89 : vector<64x32xf32>
    %91 = arith.mulf %88, %90 : vector<64x32xf32>
    %cst_45 = arith.constant dense<0.000000e+00> : vector<64xf32>
    %92 = vector.multi_reduction <add>, %91, %cst_45 [1] : vector<64x32xf32> to vector<64xf32>
    %93 = vector.shape_cast %92 : vector<64xf32> to vector<64x1xf32>
    %cst_46 = arith.constant 3.200000e+01 : f32
    %94 = vector.broadcast %cst_46 : f32 to vector<64x1xf32>
    %95 = arith.divf %93, %94 : vector<64x1xf32>
    %96 = vector.broadcast %86 : vector<64x1xf32> to vector<64x32xf32>
    %97 = arith.subf %82, %96 : vector<64x32xf32>
    %cst_47 = arith.constant 9.99999974E-6 : f32
    %98 = vector.broadcast %cst_47 : f32 to vector<64x1xf32>
    %99 = arith.addf %95, %98 : vector<64x1xf32>
    %100 = math.rsqrt %99 : vector<64x1xf32>
    %101 = vector.broadcast %100 : vector<64x1xf32> to vector<64x32xf32>
    %102 = arith.mulf %97, %101 : vector<64x32xf32>
    %103 = vector.shape_cast %16 : vector<32xf32> to vector<1x32xf32>
    %104 = vector.broadcast %103 : vector<1x32xf32> to vector<64x32xf32>
    %105 = arith.mulf %102, %104 : vector<64x32xf32>
    %106 = vector.shape_cast %18 : vector<32xf32> to vector<1x32xf32>
    %107 = vector.broadcast %106 : vector<1x32xf32> to vector<64x32xf32>
    %108 = arith.addf %105, %107 : vector<64x32xf32>
    %109 = arith.truncf %108 : vector<64x32xf32> to vector<64x32xbf16>
    %cst_48 = arith.constant dense<0.000000e+00> : vector<64x16xf32>
    %110 = tpu.matmul %109, %5, %cst_48 {dimension_numbers = #tpu.dot_dimension_numbers<[1], [0], [0], [1], [0, 0, 1, 1], [], []>} : vector<64x32xbf16>, vector<32x16xbf16>, vector<64x16xf32> -> vector<64x16xf32>
    %111 = arith.truncf %110 : vector<64x16xf32> to vector<64x16xbf16>
    %112 = vector.shape_cast %111 : vector<64x16xbf16> to vector<8x8x16xbf16>
    "tpu.trace_start"() <{level = 10 : i32, message = "bnm,bmd->bnd"}> : () -> ()
    %cst_49 = arith.constant dense<0.000000e+00> : vector<8x8x16xf32>
    %113 = tpu.matmul %0, %112, %cst_49 {dimension_numbers = #tpu.dot_dimension_numbers<[2], [1], [1], [2], [0, 0, 0, 1, 1, 2], [0], [0]>} : vector<8x8x8xbf16>, vector<8x8x16xbf16>, vector<8x8x16xf32> -> vector<8x8x16xf32>
    "tpu.trace_stop"() : () -> ()
    %114 = vector.shape_cast %113 : vector<8x8x16xf32> to vector<64x16xf32>
    %115 = vector.shape_cast %14 : vector<16xf32> to vector<1x16xf32>
    %116 = vector.broadcast %115 : vector<1x16xf32> to vector<64x16xf32>
    %117 = arith.addf %114, %116 : vector<64x16xf32>
    %118 = arith.mulf %117, %117 : vector<64x16xf32>
    %cst_50 = arith.constant dense<0.000000e+00> : vector<64xf32>
    %119 = vector.multi_reduction <add>, %118, %cst_50 [1] : vector<64x16xf32> to vector<64xf32>
    %120 = vector.shape_cast %119 : vector<64xf32> to vector<64x1xf32>
    %cst_51 = arith.constant 1.000000e-24 : f32
    %121 = vector.broadcast %cst_51 : f32 to vector<64x1xf32>
    %122 = arith.maximumf %120, %121 : vector<64x1xf32>
    %123 = math.rsqrt %122 : vector<64x1xf32>
    %124 = vector.broadcast %123 : vector<64x1xf32> to vector<64x16xf32>
    %125 = arith.mulf %117, %124 : vector<64x16xf32>
    %126 = arith.truncf %63 : vector<64x32xf32> to vector<64x32xbf16>
    %cst_52 = arith.constant dense<0.000000e+00> : vector<64x8xf32>
    %127 = tpu.matmul %126, %6, %cst_52 {dimension_numbers = #tpu.dot_dimension_numbers<[1], [0], [0], [1], [0, 0, 1, 1], [], []>} : vector<64x32xbf16>, vector<32x8xbf16>, vector<64x8xf32> -> vector<64x8xf32>
    %128 = arith.truncf %108 : vector<64x32xf32> to vector<64x32xbf16>
    %cst_53 = arith.constant dense<0.000000e+00> : vector<64x8xf32>
    %129 = tpu.matmul %128, %7, %cst_53 {dimension_numbers = #tpu.dot_dimension_numbers<[1], [0], [0], [1], [0, 0, 1, 1], [], []>} : vector<64x32xbf16>, vector<32x8xbf16>, vector<64x8xf32> -> vector<64x8xf32>
    %130 = arith.addf %127, %129 : vector<64x8xf32>
    %131 = arith.truncf %125 : vector<64x16xf32> to vector<64x16xbf16>
    %cst_54 = arith.constant dense<0.000000e+00> : vector<64x8xf32>
    %132 = tpu.matmul %131, %8, %cst_54 {dimension_numbers = #tpu.dot_dimension_numbers<[1], [0], [0], [1], [0, 0, 1, 1], [], []>} : vector<64x16xbf16>, vector<16x8xbf16>, vector<64x8xf32> -> vector<64x8xf32>
    %133 = arith.addf %130, %132 : vector<64x8xf32>
    %134 = vector.shape_cast %20 : vector<8xf32> to vector<1x8xf32>
    %135 = vector.broadcast %134 : vector<1x8xf32> to vector<64x8xf32>
    %136 = arith.addf %133, %135 : vector<64x8xf32>
    %cst_55 = arith.constant dense<0xFF800000> : vector<64xf32>
    %137 = vector.multi_reduction <maximumf>, %136, %cst_55 [1] : vector<64x8xf32> to vector<64xf32>
    %138 = vector.shape_cast %137 : vector<64xf32> to vector<64x1xf32>
    %139 = vector.broadcast %138 : vector<64x1xf32> to vector<64x8xf32>
    %140 = arith.subf %136, %139 : vector<64x8xf32>
    %141 = math.exp %140 : vector<64x8xf32>
    %cst_56 = arith.constant dense<0.000000e+00> : vector<64xf32>
    %142 = vector.multi_reduction <add>, %141, %cst_56 [1] : vector<64x8xf32> to vector<64xf32>
    %143 = vector.shape_cast %142 : vector<64xf32> to vector<64x1xf32>
    %144 = vector.broadcast %143 : vector<64x1xf32> to vector<64x8xf32>
    %145 = arith.divf %141, %144 : vector<64x8xf32>
    %146 = vector.shape_cast %145 : vector<64x8xf32> to vector<8x8x8xf32>
    %147 = arith.truncf %146 : vector<8x8x8xf32> to vector<8x8x8xbf16>
    %148 = tpu.transpose %146, [0, 2, 1] : vector<8x8x8xf32> -> vector<8x8x8xf32>
    %149 = arith.truncf %148 : vector<8x8x8xf32> to vector<8x8x8xbf16>
    "tpu.trace_start"() <{level = 10 : i32, message = "bln,bnd->bld"}> : () -> ()
    %cst_57 = arith.constant dense<0.000000e+00> : vector<8x8x32xf32>
    %150 = tpu.matmul %149, %2, %cst_57 {dimension_numbers = #tpu.dot_dimension_numbers<[2], [1], [1], [2], [0, 0, 0, 1, 1, 2], [0], [0]>} : vector<8x8x8xbf16>, vector<8x8x32xbf16>, vector<8x8x32xf32> -> vector<8x8x32xf32>
    "tpu.trace_stop"() : () -> ()
    "tpu.trace_start"() <{level = 10 : i32, message = "bln,bnm->blm"}> : () -> ()
    %cst_58 = arith.constant dense<0.000000e+00> : vector<8x8x8xf32>
    %151 = tpu.matmul %149, %0, %cst_58 {dimension_numbers = #tpu.dot_dimension_numbers<[2], [1], [1], [2], [0, 0, 0, 1, 1, 2], [0], [0]>} : vector<8x8x8xbf16>, vector<8x8x8xbf16>, vector<8x8x8xf32> -> vector<8x8x8xf32>
    "tpu.trace_stop"() : () -> ()
    %152 = arith.truncf %151 : vector<8x8x8xf32> to vector<8x8x8xbf16>
    "tpu.trace_start"() <{level = 10 : i32, message = "blm,bmk->blk"}> : () -> ()
    %cst_59 = arith.constant dense<0.000000e+00> : vector<8x8x8xf32>
    %153 = tpu.matmul %152, %147, %cst_59 {dimension_numbers = #tpu.dot_dimension_numbers<[2], [1], [1], [2], [0, 0, 0, 1, 1, 2], [0], [0]>} : vector<8x8x8xbf16>, vector<8x8x8xbf16>, vector<8x8x8xf32> -> vector<8x8x8xf32>
    "tpu.trace_stop"() : () -> ()
    %154 = vector.extract_strided_slice %150 {offsets = [0, 0, 0], sizes = [8, 1, 32], strides = [1, 1, 1]} : vector<8x8x32xf32> to vector<8x1x32xf32>
    %155 = vector.shape_cast %154 : vector<8x1x32xf32> to vector<8x32xf32>
    %156 = vector.extract_strided_slice %150 {offsets = [0, 1, 0], sizes = [8, 1, 32], strides = [1, 1, 1]} : vector<8x8x32xf32> to vector<8x1x32xf32>
    %157 = vector.shape_cast %156 : vector<8x1x32xf32> to vector<8x32xf32>
    %158 = vector.extract_strided_slice %150 {offsets = [0, 2, 0], sizes = [8, 1, 32], strides = [1, 1, 1]} : vector<8x8x32xf32> to vector<8x1x32xf32>
    %159 = vector.shape_cast %158 : vector<8x1x32xf32> to vector<8x32xf32>
    %160 = vector.extract_strided_slice %150 {offsets = [0, 3, 0], sizes = [8, 1, 32], strides = [1, 1, 1]} : vector<8x8x32xf32> to vector<8x1x32xf32>
    %161 = vector.shape_cast %160 : vector<8x1x32xf32> to vector<8x32xf32>
    %162 = vector.extract_strided_slice %150 {offsets = [0, 4, 0], sizes = [8, 1, 32], strides = [1, 1, 1]} : vector<8x8x32xf32> to vector<8x1x32xf32>
    %163 = vector.shape_cast %162 : vector<8x1x32xf32> to vector<8x32xf32>
    %164 = vector.extract_strided_slice %150 {offsets = [0, 5, 0], sizes = [8, 1, 32], strides = [1, 1, 1]} : vector<8x8x32xf32> to vector<8x1x32xf32>
    %165 = vector.shape_cast %164 : vector<8x1x32xf32> to vector<8x32xf32>
    %166 = vector.extract_strided_slice %150 {offsets = [0, 6, 0], sizes = [8, 1, 32], strides = [1, 1, 1]} : vector<8x8x32xf32> to vector<8x1x32xf32>
    %167 = vector.shape_cast %166 : vector<8x1x32xf32> to vector<8x32xf32>
    %168 = vector.extract_strided_slice %150 {offsets = [0, 7, 0], sizes = [8, 1, 32], strides = [1, 1, 1]} : vector<8x8x32xf32> to vector<8x1x32xf32>
    %169 = vector.shape_cast %168 : vector<8x1x32xf32> to vector<8x32xf32>
    %170 = tpu.concatenate %155, %157, %159, %161, %163, %165, %167, %169 in 1 : vector<8x32xf32>, vector<8x32xf32>, vector<8x32xf32>, vector<8x32xf32>, vector<8x32xf32>, vector<8x32xf32>, vector<8x32xf32>, vector<8x32xf32> -> vector<8x256xf32>
    %c0_60 = arith.constant 0 : index
    %c0_61 = arith.constant 0 : index
    %171 = vector.load %arg15[%c0_60, %c0_61] : memref<8x256xf32, #tpu.memory_space<vmem>>, vector<8x256xf32>
    tpu.vector_store %arg15[%c0_60, %c0_61], %170 {strides = array<i32>} : memref<8x256xf32, #tpu.memory_space<vmem>>, vector<8x256xf32>,
    %172 = vector.extract_strided_slice %153 {offsets = [0, 0, 0], sizes = [8, 1, 8], strides = [1, 1, 1]} : vector<8x8x8xf32> to vector<8x1x8xf32>
    %173 = vector.shape_cast %172 : vector<8x1x8xf32> to vector<8x8xf32>
    %174 = vector.extract_strided_slice %153 {offsets = [0, 1, 0], sizes = [8, 1, 8], strides = [1, 1, 1]} : vector<8x8x8xf32> to vector<8x1x8xf32>
    %175 = vector.shape_cast %174 : vector<8x1x8xf32> to vector<8x8xf32>
    %176 = vector.extract_strided_slice %153 {offsets = [0, 2, 0], sizes = [8, 1, 8], strides = [1, 1, 1]} : vector<8x8x8xf32> to vector<8x1x8xf32>
    %177 = vector.shape_cast %176 : vector<8x1x8xf32> to vector<8x8xf32>
    %178 = vector.extract_strided_slice %153 {offsets = [0, 3, 0], sizes = [8, 1, 8], strides = [1, 1, 1]} : vector<8x8x8xf32> to vector<8x1x8xf32>
    %179 = vector.shape_cast %178 : vector<8x1x8xf32> to vector<8x8xf32>
    %180 = vector.extract_strided_slice %153 {offsets = [0, 4, 0], sizes = [8, 1, 8], strides = [1, 1, 1]} : vector<8x8x8xf32> to vector<8x1x8xf32>
    %181 = vector.shape_cast %180 : vector<8x1x8xf32> to vector<8x8xf32>
    %182 = vector.extract_strided_slice %153 {offsets = [0, 5, 0], sizes = [8, 1, 8], strides = [1, 1, 1]} : vector<8x8x8xf32> to vector<8x1x8xf32>
    %183 = vector.shape_cast %182 : vector<8x1x8xf32> to vector<8x8xf32>
    %184 = vector.extract_strided_slice %153 {offsets = [0, 6, 0], sizes = [8, 1, 8], strides = [1, 1, 1]} : vector<8x8x8xf32> to vector<8x1x8xf32>
    %185 = vector.shape_cast %184 : vector<8x1x8xf32> to vector<8x8xf32>
    %186 = vector.extract_strided_slice %153 {offsets = [0, 7, 0], sizes = [8, 1, 8], strides = [1, 1, 1]} : vector<8x8x8xf32> to vector<8x1x8xf32>
    %187 = vector.shape_cast %186 : vector<8x1x8xf32> to vector<8x8xf32>
    %188 = vector.extract_strided_slice %146 {offsets = [0, 0, 0], sizes = [8, 1, 8], strides = [1, 1, 1]} : vector<8x8x8xf32> to vector<8x1x8xf32>
    %189 = vector.shape_cast %188 : vector<8x1x8xf32> to vector<8x8xf32>
    %190 = vector.extract_strided_slice %146 {offsets = [0, 1, 0], sizes = [8, 1, 8], strides = [1, 1, 1]} : vector<8x8x8xf32> to vector<8x1x8xf32>
    %191 = vector.shape_cast %190 : vector<8x1x8xf32> to vector<8x8xf32>
    %192 = vector.extract_strided_slice %146 {offsets = [0, 2, 0], sizes = [8, 1, 8], strides = [1, 1, 1]} : vector<8x8x8xf32> to vector<8x1x8xf32>
    %193 = vector.shape_cast %192 : vector<8x1x8xf32> to vector<8x8xf32>
    %194 = vector.extract_strided_slice %146 {offsets = [0, 3, 0], sizes = [8, 1, 8], strides = [1, 1, 1]} : vector<8x8x8xf32> to vector<8x1x8xf32>
    %195 = vector.shape_cast %194 : vector<8x1x8xf32> to vector<8x8xf32>
    %196 = vector.extract_strided_slice %146 {offsets = [0, 4, 0], sizes = [8, 1, 8], strides = [1, 1, 1]} : vector<8x8x8xf32> to vector<8x1x8xf32>
    %197 = vector.shape_cast %196 : vector<8x1x8xf32> to vector<8x8xf32>
    %198 = vector.extract_strided_slice %146 {offsets = [0, 5, 0], sizes = [8, 1, 8], strides = [1, 1, 1]} : vector<8x8x8xf32> to vector<8x1x8xf32>
    %199 = vector.shape_cast %198 : vector<8x1x8xf32> to vector<8x8xf32>
    %200 = vector.extract_strided_slice %146 {offsets = [0, 6, 0], sizes = [8, 1, 8], strides = [1, 1, 1]} : vector<8x8x8xf32> to vector<8x1x8xf32>
    %201 = vector.shape_cast %200 : vector<8x1x8xf32> to vector<8x8xf32>
    %202 = vector.extract_strided_slice %146 {offsets = [0, 7, 0], sizes = [8, 1, 8], strides = [1, 1, 1]} : vector<8x8x8xf32> to vector<8x1x8xf32>
    %203 = vector.shape_cast %202 : vector<8x1x8xf32> to vector<8x8xf32>
    %204 = tpu.concatenate %173, %175, %177, %179, %181, %183, %185, %187, %189, %191, %193, %195, %197, %199, %201, %203 in 1 : vector<8x8xf32>, vector<8x8xf32>, vector<8x8xf32>, vector<8x8xf32>, vector<8x8xf32>, vector<8x8xf32>, vector<8x8xf32>, vector<8x8xf32>, vector<8x8xf32>, vector<8x8xf32>, vector<8x8xf32>, vector<8x8xf32>, vector<8x8xf32>, vector<8x8xf32>, vector<8x8xf32>, vector<8x8xf32> -> vector<8x128xf32>
    %c0_62 = arith.constant 0 : index
    %c0_63 = arith.constant 0 : index
    %205 = vector.load %arg16[%c0_62, %c0_63] : memref<8x128xf32, #tpu.memory_space<vmem>>, vector<8x128xf32>
    tpu.vector_store %arg16[%c0_62, %c0_63], %204 {strides = array<i32>} : memref<8x128xf32, #tpu.memory_space<vmem>>, vector<8x128xf32>,
    return
  }
  func.func @transform_0(%arg0: i32) -> (i32, i32, i32) {
    %c0_i32 = arith.constant 0 : i32
    %c0_i32_0 = arith.constant 0 : i32
    %c0_i32_1 = arith.constant 0 : i32
    return %arg0, %c0_i32, %c0_i32_0 : i32, i32, i32
  }
  func.func @transform_1(%arg0: i32) -> (i32, i32, i32) {
    %c0_i32 = arith.constant 0 : i32
    %c0_i32_0 = arith.constant 0 : i32
    %c0_i32_1 = arith.constant 0 : i32
    return %arg0, %c0_i32, %c0_i32_0 : i32, i32, i32
  }
  func.func @transform_2(%arg0: i32) -> (i32, i32) {
    %c0_i32 = arith.constant 0 : i32
    %c0_i32_0 = arith.constant 0 : i32
    %c0_i32_1 = arith.constant 0 : i32
    return %c0_i32, %c0_i32_0 : i32, i32
  }
  func.func @transform_3(%arg0: i32) -> (i32, i32) {
    %c0_i32 = arith.constant 0 : i32
    %c0_i32_0 = arith.constant 0 : i32
    %c0_i32_1 = arith.constant 0 : i32
    return %c0_i32, %c0_i32_0 : i32, i32
  }
  func.func @transform_4(%arg0: i32) -> (i32, i32) {
    %c0_i32 = arith.constant 0 : i32
    %c0_i32_0 = arith.constant 0 : i32
    %c0_i32_1 = arith.constant 0 : i32
    return %c0_i32, %c0_i32_0 : i32, i32
  }
  func.func @transform_5(%arg0: i32) -> (i32, i32) {
    %c0_i32 = arith.constant 0 : i32
    %c0_i32_0 = arith.constant 0 : i32
    %c0_i32_1 = arith.constant 0 : i32
    return %c0_i32, %c0_i32_0 : i32, i32
  }
  func.func @transform_6(%arg0: i32) -> (i32, i32) {
    %c0_i32 = arith.constant 0 : i32
    %c0_i32_0 = arith.constant 0 : i32
    %c0_i32_1 = arith.constant 0 : i32
    return %c0_i32, %c0_i32_0 : i32, i32
  }
  func.func @transform_7(%arg0: i32) -> (i32, i32) {
    %c0_i32 = arith.constant 0 : i32
    %c0_i32_0 = arith.constant 0 : i32
    %c0_i32_1 = arith.constant 0 : i32
    return %c0_i32, %c0_i32_0 : i32, i32
  }
  func.func @transform_8(%arg0: i32) -> (i32, i32) {
    %c0_i32 = arith.constant 0 : i32
    %c0_i32_0 = arith.constant 0 : i32
    %c0_i32_1 = arith.constant 0 : i32
    return %c0_i32, %c0_i32_0 : i32, i32
  }
  func.func @transform_9(%arg0: i32) -> (i32, i32) {
    %c0_i32 = arith.constant 0 : i32
    %c0_i32_0 = arith.constant 0 : i32
    %c0_i32_1 = arith.constant 0 : i32
    return %c0_i32, %c0_i32_0 : i32, i32
  }
  func.func @transform_10(%arg0: i32) -> (i32, i32) {
    %c0_i32 = arith.constant 0 : i32
    %c0_i32_0 = arith.constant 0 : i32
    %c0_i32_1 = arith.constant 0 : i32
    return %c0_i32, %c0_i32_0 : i32, i32
  }
  func.func @transform_11(%arg0: i32) -> (i32, i32) {
    %c0_i32 = arith.constant 0 : i32
    %c0_i32_0 = arith.constant 0 : i32
    %c0_i32_1 = arith.constant 0 : i32
    return %c0_i32, %c0_i32_0 : i32, i32
  }
  func.func @transform_12(%arg0: i32) -> (i32, i32) {
    %c0_i32 = arith.constant 0 : i32
    %c0_i32_0 = arith.constant 0 : i32
    %c0_i32_1 = arith.constant 0 : i32
    return %c0_i32, %c0_i32_0 : i32, i32
  }
  func.func @transform_13(%arg0: i32) -> (i32, i32) {
    %c0_i32 = arith.constant 0 : i32
    %c0_i32_0 = arith.constant 0 : i32
    %c0_i32_1 = arith.constant 0 : i32
    return %c0_i32, %c0_i32_0 : i32, i32
  }
  func.func @transform_14(%arg0: i32) -> (i32, i32) {
    %c0_i32 = arith.constant 0 : i32
    %c0_i32_0 = arith.constant 0 : i32
    return %arg0, %c0_i32 : i32, i32
  }
  func.func @transform_15(%arg0: i32) -> (i32, i32) {
    %c0_i32 = arith.constant 0 : i32
    %c0_i32_0 = arith.constant 0 : i32
    return %arg0, %c0_i32 : i32, i32
  }
}

</mosaic_0001>

<bundles_post_ra>
// kernel: tpu_custom_call.1
= control target key start
LH: loop header
LB: loop body
LE: loop exit
PB: predicated region body
PF: predicated region fallthrough
CT: control target
= control target key end

     0   :  { %21 = vsyncpa [#allocation3], 0  ;;  %s6463_s0 = inlined_call_operand.vmem [shape: f32[8,8,32], index: 0, kind: input, shape index: {}]   ;;  %s6464_s1 = inlined_call_operand.hbm [shape: bf16[8,8,8], index: 1, kind: input, shape index: {}]   ;;  %s6465_s2 = inlined_call_operand.hbm [shape: bf16[32,32], index: 2, kind: input, shape index: {}]   ;;  %s6466_s3 = inlined_call_operand.hbm [shape: f32[1,32], index: 3, kind: input, shape index: {}]   ;;  %s6467_s4 = inlined_call_operand.vmem [shape: bf16[32,32], index: 4, kind: input, shape index: {}]   ;;  %s6468_s5 = inlined_call_operand.hbm [shape: f32[1,32], index: 5, kind: input, shape index: {}]   ;;  %s6469_s6 = inlined_call_operand.vmem [shape: bf16[32,16], index: 6, kind: input, shape index: {}]   ;;  %s6470_s7 = inlined_call_operand.hbm [shape: f32[1,16], index: 7, kind: input, shape index: {}]   ;;  %s6471_s8 = inlined_call_operand.hbm [shape: f32[1,32], index: 8, kind: input, shape index: {}]   ;;  %s6472_s9 = inlined_call_operand.hbm [shape: f32[1,32], index: 9, kind: input, shape index: {}]   ;;  %s6473_s10 = inlined_call_operand.vmem [shape: bf16[32,8], index: 10, kind: input, shape index: {}]   ;;  %s6474_s11 = inlined_call_operand.vmem [shape: bf16[32,8], index: 11, kind: input, shape index: {}]   ;;  %s6475_s12 = inlined_call_operand.vmem [shape: bf16[16,8], index: 12, kind: input, shape index: {}]   ;;  %s6476_s13 = inlined_call_operand.vmem [shape: f32[1,8], index: 13, kind: input, shape index: {}]   ;;  %s6477_s14 = inlined_call_operand.hbm [shape: f32[8,256], index: 14, kind: output, shape index: {0}]   ;;  %s6478_s15 = inlined_call_operand.hbm [shape: f32[8,128], index: 15, kind: output, shape index: {1}]  }
   0x1   :  { %22 = vsyncpa [#allocation6], 0 }
   0x2   :  { %23 = vsyncpa [#allocation9], 0 }
   0x3   :  { %24 = vsyncpa [#allocation12], 0 }
   0x4   :  { %25 = vsyncpa [#allocation4], 0 }
   0x5   :  { %26 = vsyncpa [#allocation16], 0  ;;  %s5218_s18 = smov [#allocation5]   ;;  %s5219_s20 = smov [#allocation8]  }
   0x6   :  { %s46_s19 = sshll.u32 %s5218_s18, 4  ;;  %s71_s21 = sshll.u32 %s5219_s20, 4  ;;  %s47_s19 = int_to_ptr.vmem [resolvable:$true] %s46_s19  ;;  %s72_s21 = int_to_ptr.vmem [resolvable:$true] %s71_s21 }
   0x7   :  { %s5034_s22 = scalar_lea.vmem %s47_s19, 256  ;;  %p5039_p1 = scmp.lt.s32.totalorder %s47_s19, %s47_s19 }
   0x8   :  { %p5035_p0 = scmp.ne.s32.totalorder %s47_s19, %s5034_s22  ;;  %p5040_p2 = scmp.lt.s32.totalorder %s5034_s22, %s5034_s22 }
   0xa   :  { %p5041_p3 = por %p5040_p2, %p5039_p1 }
   0xc   :  { %p5042_p4 = pnand %p5041_p3, %p5035_p0 }
   0xe   :  { %5045 = shalt.err (!%p5042_p4)
}
   0xf   :  { %s5220_s23 = smov 64   ;;  %s5221_s24 = smov 4  }
  0x10   :  { %52 = dma.hbm_to_vmem [thread:$0]  %s6465_s2, 256, %s47_s19, [#allocation6], %s5220_s23, %s5220_s23, %s5221_s24  }
  0x11   :  { %s5054_s27 = scalar_lea.vmem %s72_s21, 16  ;;  %s5058_s28 = scalar_lea.vmem %s72_s21, 32 }
  0x12   :  { %p5055_p5 = scmp.ne.s32.totalorder %s72_s21, %s5054_s27  ;;  %p5059_p6 = scmp.lt.s32.totalorder %s72_s21, %s72_s21 }
  0x13   :  { %p5060_p7 = scmp.lt.s32.totalorder %s5058_s28, %s5054_s27 }
  0x15   :  { %p5061_p8 = por %p5060_p7, %p5059_p6 }
  0x17   :  { %p5062_p9 = pnand %p5061_p8, %p5055_p5 }
  0x19   :  { %5065 = shalt.err (!%p5062_p9)
}
  0x1a   :  { %74 = dma.hbm_to_vmem [thread:$0]  %s6468_s5, 16, %s72_s21, [#allocation9]  }
  0x1b   :  { %s5222_s16 = smov [#allocation11]   ;;  %s5223_s18 = smov [#allocation2]  }
  0x1c   :  { %s93_s17 = sshll.u32 %s5222_s16, 4  ;;  %s34_s20 = sshll.u32 %s5223_s18, 4  ;;  %s94_s17 = int_to_ptr.vmem [resolvable:$true] %s93_s17  ;;  %s35_s20 = int_to_ptr.vmem [resolvable:$true] %s34_s20 }
  0x1d   :  { %s5074_s22 = scalar_lea.vmem %s94_s17, 16  ;;  %s5078_s2 = scalar_lea.vmem %s94_s17, 32 }
  0x1e   :  { %p5075_p10 = scmp.ne.s32.totalorder %s94_s17, %s5074_s22  ;;  %p5079_p11 = scmp.lt.s32.totalorder %s94_s17, %s94_s17 }
  0x1f   :  { %p5080_p12 = scmp.lt.s32.totalorder %s5078_s2, %s5074_s22 }
  0x21   :  { %p5081_p13 = por %p5080_p12, %p5079_p11 }
  0x23   :  { %p5082_p0 = pnand %p5081_p13, %p5075_p10 }
  0x25   :  { %5085 = shalt.err (!%p5082_p0)
}
  0x26   :  { %96 = dma.hbm_to_vmem [thread:$0]  %s6471_s8, 16, %s94_s17, [#allocation12]  }
  0x27   :  { %s5094_s26 = scalar_lea.vmem %s35_s20, 512  ;;  %p5099_p2 = scmp.lt.s32.totalorder %s35_s20, %s35_s20 }
  0x28   :  { %p5095_p1 = scmp.ne.s32.totalorder %s35_s20, %s5094_s26  ;;  %p5100_p3 = scmp.lt.s32.totalorder %s5094_s26, %s5094_s26 }
  0x2a   :  { %p5101_p4 = por %p5100_p3, %p5099_p2 }
  0x2c   :  { %p5102_p5 = pnand %p5101_p4, %p5095_p1 }
  0x2e   :  { %5105 = shalt.err (!%p5102_p5)
}
  0x2f   :  { %40 = dma.hbm_to_vmem [thread:$0]  %s6464_s1, 512, %s35_s20, [#allocation3], %s5220_s23, %s5220_s23, %s5221_s24  }
  0x30   :  { %s5224_s27 = smov [#allocation7]   ;;  %s5225_s29 = smov [#allocation10]  }
  0x31   :  { %s59_s28 = sshll.u32 %s5224_s27, 4  ;;  %s83_s30 = sshll.u32 %s5225_s29, 4  ;;  %s60_s28 = int_to_ptr.vmem [resolvable:$true] %s59_s28  ;;  %s84_s30 = int_to_ptr.vmem [resolvable:$true] %s83_s30 }
  0x32   :  { %s5114_s8 = scalar_lea.vmem %s60_s28, 16  ;;  %s5118_s16 = scalar_lea.vmem %s60_s28, 32 }
  0x33   :  { %p5115_p6 = scmp.ne.s32.totalorder %s60_s28, %s5114_s8  ;;  %p5119_p7 = scmp.lt.s32.totalorder %s60_s28, %s60_s28 }
  0x34   :  { %p5120_p8 = scmp.lt.s32.totalorder %s5118_s16, %s5114_s8 }
  0x36   :  { %p5121_p9 = por %p5120_p8, %p5119_p7 }
  0x38   :  { %p5122_p10 = pnand %p5121_p9, %p5115_p6 }
  0x3a   :  { %5125 = shalt.err (!%p5122_p10)
}
  0x3b   :  { %62 = dma.hbm_to_vmem [thread:$0]  %s6466_s3, 16, %s60_s28, [#allocation6]  }
  0x3c   :  { %s5134_s22 = scalar_lea.vmem %s84_s30, 16  ;;  %s5138_s1 = scalar_lea.vmem %s84_s30, 32 }
  0x3d   :  { %p5135_p11 = scmp.ne.s32.totalorder %s84_s30, %s5134_s22  ;;  %p5139_p12 = scmp.lt.s32.totalorder %s84_s30, %s84_s30 }
  0x3e   :  { %p5140_p13 = scmp.lt.s32.totalorder %s5138_s1, %s5134_s22 }
  0x40   :  { %p5141_p0 = por %p5140_p13, %p5139_p12 }
  0x42   :  { %p5142_p1 = pnand %p5141_p0, %p5135_p11 }
  0x44   :  { %5145 = shalt.err (!%p5142_p1)
}
  0x45   :  { %86 = dma.hbm_to_vmem [thread:$0]  %s6470_s7, 16, %s84_s30, [#allocation9]  }
  0x46   :  { %s5226_s2 = smov [#allocation13]  }
  0x47   :  { %s103_s19 = sshll.u32 %s5226_s2, 4  ;;  %s104_s19 = int_to_ptr.vmem [resolvable:$true] %s103_s19 }
  0x48   :  { %s5154_s25 = scalar_lea.vmem %s104_s19, 16  ;;  %s5158_s26 = scalar_lea.vmem %s104_s19, 32 }
  0x49   :  { %p5155_p2 = scmp.ne.s32.totalorder %s104_s19, %s5154_s25  ;;  %p5159_p3 = scmp.lt.s32.totalorder %s104_s19, %s104_s19 }
  0x4a   :  { %p5160_p4 = scmp.lt.s32.totalorder %s5158_s26, %s5154_s25 }
  0x4c   :  { %p5161_p5 = por %p5160_p4, %p5159_p3 }
  0x4e   :  { %p5162_p6 = pnand %p5161_p5, %p5155_p2 }
  0x50   :  { %5165 = shalt.err (!%p5162_p6)
}
  0x51   :  { %106 = dma.hbm_to_vmem [thread:$0]  %s6472_s9, 16, %s104_s19, [#allocation12]  }
  0x52   :  { %5206 = dma.done.wait [#allocation3], 512  }
  0x53   :  { %5207 = vsyncadd [#allocation3], 4294966784 }
  0x54   :  { %5208 = dma.done.wait [#allocation6], 272  }
  0x55   :  { %5209 = vsyncadd [#allocation6], 4294967024 }
  0x56   :  { %5210 = dma.done.wait [#allocation9], 32  }
  0x57   :  { %5211 = vsyncadd [#allocation9], 4294967264 }
  0x58   :  { %5212 = dma.done.wait [#allocation12], 32  }
  0x59   :  { %5213 = vsyncadd [#allocation12], 4294967264  ;;  %v5227_v0 = vmov 0.0   ;;  %vm5228_vm0 = vmmov 0   ;;  %v145_v1 = vld [vmem:[%s6463_s0] sm:$0xff]  ;;  %vm193_vm1 = vcmask 1043456  }
  0x5a   :  { %4483 = vmatprep.subr.bf16.mxu0 %v5227_v0  ;;  %4489 = vmatprep.subr.bf16.mxu1 %v5227_v0  ;;  %v146_v2 = vld [vmem:[%s6463_s0 + $0x8] sm:$0xff]  ;;  %v153_v3 = vpack.c.bf16 %v145_v1, %v145_v1  ;;  %v147_v5 = vld [vmem:[%s6463_s0 + $0x10] sm:$0xff]  ;;  %v148_v6 = vld [vmem:[%s6463_s0 + $0x18] sm:$0xff]  ;;  %vm189_vm2 = vcmask 64512   ;;  %vm581_vm3 = vcmask 261120   ;;  %vm1990_vm4 = vcmask 130048  }
  0x5b   :  { %4485 = vmatprep.mubr.msk.bf16.mxu0 %vm5228_vm0, %v5227_v0  ;;  %4491 = vmatprep.mubr.msk.bf16.mxu1 %vm5228_vm0, %v5227_v0  ;;  %v154_v4 = vpack.c.bf16 %v146_v2, %v146_v2  ;;  %v155_v7 = vpack.c.bf16 %v147_v5, %v147_v5  ;;  %v156_v8 = vpack.c.bf16 %v148_v6, %v148_v6  ;;  %v149_v9 = vld [vmem:[%s6463_s0 + $0x20] sm:$0xff]  ;;  %v150_v13 = vld [vmem:[%s6463_s0 + $0x28] sm:$0xff]  ;;  %v151_v23 = vld [vmem:[%s6463_s0 + $0x30] sm:$0xff]  ;;  %vm3739_vm5 = vcmask 1041409   ;;  %s5230_s17 = smov 72   ;;  %s5231_s18 = smov 88  }
  0x5c   :  { %v5374_v10 = vsel %vm193_vm1, %v153_v3, 0  ;;  %v157_v12 = vpack.c.bf16 %v149_v9, %v149_v9  ;;  %v5384_v14 = vld [vmem:[#allocation2] sm:$0xf]  ;;  %v5386_v15 = vld [vmem:[#allocation2 + $0x4] sm:$0xf]  ;;  %v158_v16 = vpack.c.bf16 %v150_v13, %v150_v13  ;;  %v152_v24 = vld [vmem:[%s6463_s0 + $0x38] sm:$0xff]  ;;  %v159_v25 = vpack.c.bf16 %v151_v23, %v151_v23 }
  0x5d   :  { %v5377_v11 = vsel %vm193_vm1, %v154_v4, 0  ;;  %4484 = vmatpush3.bf16.msra.mxu0 %v5374_v10  ;;  %v5391_v17 = vsel %vm193_vm1, %v155_v7, 0  ;;  %v5394_v18 = vsel %vm193_vm1, %v156_v8, 0  ;;  %v5412_v21 = vld [vmem:[#allocation2 + $0x8] sm:$0xf]  ;;  %v160_v26 = vpack.c.bf16 %v152_v24, %v152_v24  ;;  %v4890_v34 = vld [vmem:[#allocation5] sm:$0xff]  }
  0x5e   :  { %4490 = vmatpush3.bf16.msra.mxu1 %v5377_v11  ;;  %4495 = vmatprep.subr.bf16.mxu0 %v5227_v0  ;;  %v5401_v19 = vsel %vm193_vm1, %v157_v12, 0  ;;  %v5404_v20 = vsel %vm193_vm1, %v158_v16, 0  ;;  %v5414_v22 = vld [vmem:[#allocation2 + $0xc] sm:$0xf]  ;;  %v5436_v27 = vld [vmem:[#allocation2 + $0x10] sm:$0xf] }
  0x5f   :  { %4501 = vmatprep.subr.bf16.mxu1 %v5227_v0  ;;  %v5438_v28 = vld [vmem:[#allocation2 + $0x14] sm:$0xf]  ;;  %v5441_v29 = vsel %vm193_vm1, %v159_v25, 0  ;;  %v5444_v30 = vsel %vm193_vm1, %v160_v26, 0  ;;  %v5457_v31 = vld [vmem:[#allocation2 + $0x18] sm:$0xf] }
  0x60   :  { %4486 = vmatmul.mubr.msk.bf16.vlgmr.msra.gmra.mxu0 %vm189_vm2, %v5384_v14  ;;  %v5459_v32 = vld [vmem:[#allocation2 + $0x1c] sm:$0xf]  ;;  %v4889_v33 = vld [vmem:[#allocation5 + $0x8] sm:$0xff]   ;;  %v4239_v8 = vld [vmem:[#allocation7] ss:$0 sm:$0xff]  ;;  %vm3742_vm6 = vcmask 1042434  }
  0x61   :  { %4492 = vmatmul.mubr.msk.bf16.vlgmr.msra.gmra.mxu1 %vm189_vm2, %v5386_v15  ;;  %4496 = vmatpush3.bf16.msra.mxu0 %v5391_v17  ;;  %vm3745_vm7 = vcmask 1043459   ;;  %vm3748_vm8 = vcmask 1044484   ;;  %vm3751_vm9 = vcmask 1045509   ;;  %vm3754_vm10 = vcmask 1046534   ;;  %s5232_s22 = smov 80   ;;  %s5233_s1 = smov 96  }
  0x62   :  { %4502 = vmatpush3.bf16.msra.mxu1 %v5394_v18  ;;  %4497 = vmatprep.mubr.msk.bf16.mxu0 %vm5228_vm0, %v5227_v0  ;;  %vm3757_vm11 = vcmask 1047559   ;;  %s5234_s24 = smov 32   ;;  %s5235_s20 = smov 56   ;;  %vm4175_vm12 = vcmask 195584   ;;  %vm4178_vm13 = vcmask 326656   ;;  %vm4180_vm14 = vcmask 392192  }
  0x63   :  { %4503 = vmatprep.mubr.msk.bf16.mxu1 %vm5228_vm0, %v5227_v0  ;;  %4507 = vmatprep.subr.bf16.mxu0 %v5227_v0  ;;  %s5236_s2 = smov 8   ;;  %s5237_s0 = smov 16   ;;  %vm4182_vm15 = vcmask 457728  }
  0x64   :  { %4513 = vmatprep.subr.bf16.mxu1 %v5227_v0  ;;  %s5238_s19 = smov 48   ;;  %s5239_s25 = smov 24  }
  0x65   :  { %s5240_s26 = smov 112   ;;  %s5242_s3 = smov 120  }
  0x66   :  { %s5244_s7 = smov [#allocation15]  }
  0x68   :  { %4498 = vmatmul.mubr.msk.bf16.vlgmr.msra.gmra.mxu0 %vm189_vm2, %v5412_v21 }
  0x69   :  { %4504 = vmatmul.mubr.msk.bf16.vlgmr.msra.gmra.mxu1 %vm189_vm2, %v5414_v22  ;;  %4508 = vmatpush3.bf16.msra.mxu0 %v5401_v19 }
  0x6a   :  { %4514 = vmatpush3.bf16.msra.mxu1 %v5404_v20  ;;  %4509 = vmatprep.mubr.msk.bf16.mxu0 %vm5228_vm0, %v5227_v0 }
  0x6b   :  { %4515 = vmatprep.mubr.msk.bf16.mxu1 %vm5228_vm0, %v5227_v0  ;;  %4519 = vmatprep.subr.bf16.mxu0 %v5227_v0 }
  0x6c   :  { %4525 = vmatprep.subr.bf16.mxu1 %v5227_v0 }
  0x70   :  { %4510 = vmatmul.mubr.msk.bf16.vlgmr.msra.gmra.mxu0 %vm189_vm2, %v5436_v27 }
  0x71   :  { %4516 = vmatmul.mubr.msk.bf16.vlgmr.msra.gmra.mxu1 %vm189_vm2, %v5438_v28  ;;  %4520 = vmatpush3.bf16.msra.mxu0 %v5441_v29 }
  0x72   :  { %4526 = vmatpush3.bf16.msra.mxu1 %v5444_v30  ;;  %4521 = vmatprep.mubr.msk.bf16.mxu0 %vm5228_vm0, %v5227_v0 }
  0x73   :  { %4527 = vmatprep.mubr.msk.bf16.mxu1 %vm5228_vm0, %v5227_v0  ;;  %4543 = vmatprep.subr.bf16.mxu1 %v5227_v0 }
  0x74   :  { %4531 = vmatprep.subr.bf16.mxu0 %v4889_v33 }
  0x78   :  { %4522 = vmatmul.mubr.msk.bf16.vlgmr.msra.gmra.mxu0 %vm189_vm2, %v5457_v31 }
  0x79   :  { %4528 = vmatmul.mubr.msk.bf16.vlgmr.msra.gmra.mxu1 %vm189_vm2, %v5459_v32  ;;  %4532 = vmatpush3.bf16.msra.mxu0 %v4889_v33 }
  0x7a   :  { %4545 = vmatprep.mubr.msk.bf16.mxu1 %vm5228_vm0, %v5227_v0  ;;  %4533 = vmatprep.subr.bf16.mxu0 %v4890_v34 }
  0x7d   :  { %4534 = vmatpush3.bf16.msra.mxu0 %v4890_v34 }
  0x7e   :  { %4555 = vmatprep.subr.bf16.mxu0 %v5227_v0 }
 0x120   :  { %v231_v35 = vpop.f32.mrf.mxu0 }
 0x121   :  { %v277_v36 = vpop.f32.mrf.mxu1 }
 0x122   :  { %v559_v37 = vpack.c.bf16 %v277_v36, %v231_v35  ;;  %v4487_v38 = vpop.f32.mrf.mxu0 }
 0x123   :  { %v4493_v39 = vpop.f32.mrf.mxu1 }
 0x124   :  { %4535 = vmatprep.mubr.msk.bf16.mxu0 %vm581_vm3, %v559_v37  ;;  %v234_v40 = vpop.f32.mrf.mxu0 }
 0x125   :  { %v280_v41 = vpop.f32.mrf.mxu1 }
 0x126   :  { %v4488_v42 = vpop.f32.mrf.mxu0 }
 0x127   :  { %v4494_v43 = vpop.f32.mrf.mxu1 }
 0x128   :  { %v323_v44 = vpop.f32.mrf.mxu0 }
 0x129   :  { %v369_v45 = vpop.f32.mrf.mxu1 }
 0x12a   :  { %v560_v46 = vpack.c.bf16 %v369_v45, %v323_v44  ;;  %v4499_v47 = vpop.f32.mrf.mxu0 }
 0x12b   :  { %v4505_v48 = vpop.f32.mrf.mxu1 }
 0x12c   :  { %4536 = vmatmul.mubr.msk.bf16.vlgmr.msra.gmra.mxu0 %vm581_vm3, %v560_v46  ;;  %v326_v49 = vpop.f32.mrf.mxu0 }
 0x12d   :  { %v372_v50 = vpop.f32.mrf.mxu1 }
 0x12e   :  { %v4500_v51 = vpop.f32.mrf.mxu0 }
 0x12f   :  { %v4506_v52 = vpop.f32.mrf.mxu1 }
 0x130   :  { %v415_v53 = vpop.f32.mrf.mxu0 }
 0x131   :  { %v461_v54 = vpop.f32.mrf.mxu1 }
 0x132   :  { %v561_v55 = vpack.c.bf16 %v461_v54, %v415_v53  ;;  %v4511_v56 = vpop.f32.mrf.mxu0 }
 0x133   :  { %v4517_v57 = vpop.f32.mrf.mxu1 }
 0x134   :  { %4539 = vmatprep.mubr.msk.bf16.mxu0 %vm581_vm3, %v561_v55  ;;  %v418_v58 = vpop.f32.mrf.mxu0 }
 0x135   :  { %v464_v59 = vpop.f32.mrf.mxu1 }
 0x136   :  { %v4512_v60 = vpop.f32.mrf.mxu0 }
 0x137   :  { %v4518_v61 = vpop.f32.mrf.mxu1 }
 0x138   :  { %v507_v62 = vpop.f32.mrf.mxu0 }
 0x139   :  { %v553_v63 = vpop.f32.mrf.mxu1 }
 0x13a   :  { %v562_v1 = vpack.c.bf16 %v553_v63, %v507_v62  ;;  %v4523_v2 = vpop.f32.mrf.mxu0 }
 0x13b   :  { %v4529_v3 = vpop.f32.mrf.mxu1 }
 0x13c   :  { %4540 = vmatmul.mubr.msk.bf16.gmra.mxu0 %vm581_vm3, %v562_v1  ;;  %v510_v4 = vpop.f32.mrf.mxu0 }
 0x13d   :  { %v556_v5 = vpop.f32.mrf.mxu1  ;;  %4557 = vmatprep.mubr.msk.bf16.mxu0 %vm5228_vm0, %v5227_v0 }
 0x13e   :  { %v4524_v6 = vpop.f32.mrf.mxu0 }
 0x13f   :  { %v4530_v7 = vpop.f32.mrf.mxu1 }
 0x1ec   :  { %v4537_v9 = vpop.f32.mrf.mxu0 }
 0x1ed   :  { %v637_v12 = vadd.f32 %v4537_v9, %v4239_v8 }
 0x1ee   :  { %v628_v13 = vpop.f32.mrf.mxu0 }
 0x1ef   :  { %v629_v16 = vadd.f32 %v4239_v8, %v628_v13  ;;  %v661_v23 = vmul.f32 %v637_v12, %v637_v12 }
 0x1f0   :  { %v4538_v24 = vpop.f32.mrf.mxu0 }
 0x1f1   :  { %v640_v25 = vadd.f32 %v4538_v24, %v4239_v8  ;;  %v673_v26 = vsel %vm581_vm3, %v661_v23, 0.0  ;;  %v659_v33 = vmul.f32 %v629_v16, %v629_v16 }
 0x1f2   :  { %674 = vadd.xlane.f32.xlu1 %v673_v26  ;;  %v631_v34 = vpop.f32.mrf.mxu0 }
 0x1f3   :  { %v632_v35 = vadd.f32 %v4239_v8, %v631_v34  ;;  %v667_v36 = vsel %vm581_vm3, %v659_v33, 0.0  ;;  %v662_v37 = vmul.f32 %v640_v25, %v640_v25 }
 0x1f4   :  { %668 = vadd.xlane.f32.xlu0 %v667_v36 }
 0x1f5   :  { %v676_v38 = vsel %vm581_vm3, %v662_v37, 0.0  ;;  %v660_v39 = vmul.f32 %v632_v35, %v632_v35 }
 0x1f6   :  { %677 = vadd.xlane.f32.xlu1 %v676_v38 }
 0x1f7   :  { %v670_v40 = vsel %vm581_vm3, %v660_v39, 0.0 }
 0x1f8   :  { %671 = vadd.xlane.f32.xlu0 %v670_v40 }
 0x1fc   :  { %v4541_v41 = vpop.f32.mrf.mxu0 }
 0x1fd   :  { %v5478_v43 = vadd.f32 %v4541_v41, %v4239_v8 }
 0x1fe   :  { %v644_v42 = vpop.f32.mrf.mxu0 }
 0x1ff   :  { %v645_v44 = vadd.f32 %v4239_v8, %v644_v42  ;;  %v665_v51 = vmul.f32 %v5478_v43, %v5478_v43 }
 0x200   :  { %v4542_v45 = vpop.f32.mrf.mxu0 }
 0x201   :  { %v663_v46 = vmul.f32 %v645_v44, %v645_v44  ;;  %v5480_v48 = vadd.f32 %v4542_v45, %v4239_v8  ;;  %v685_v54 = vsel %vm581_vm3, %v665_v51, 0.0 }
 0x202   :  { %v647_v47 = vpop.f32.mrf.mxu0 }
 0x203   :  { %v648_v49 = vadd.f32 %v4239_v8, %v647_v47  ;;  %v679_v50 = vsel %vm581_vm3, %v663_v46, 0.0  ;;  %v666_v55 = vmul.f32 %v5480_v48, %v5480_v48 }
 0x204   :  { %680 = vadd.xlane.f32.xlu0 %v679_v50 }
 0x205   :  { %v664_v52 = vmul.f32 %v648_v49, %v648_v49  ;;  %v688_v56 = vsel %vm581_vm3, %v666_v55, 0.0 }
 0x207   :  { %v682_v53 = vsel %vm581_vm3, %v664_v52, 0.0 }
 0x208   :  { %683 = vadd.xlane.f32.xlu1 %v682_v53  ;;  %686 = vadd.xlane.f32.xlu0 %v685_v54 }
 0x20c   :  { %689 = vadd.xlane.f32.xlu1 %v688_v56 }
 0x27b   :  { %v675_v57 = vpop.xlane.xlu1 %674 }
 0x27c   :  { %v693_v58 = vmax.f32 %v675_v57, 1e-24 }
 0x27d   :  { %v669_v59 = vpop.xlane.xlu0 %668 }
 0x27e   :  { %4900 = vrsqrt.f32 %v693_v58  ;;  %v691_v60 = vmax.f32 %v669_v59, 1e-24 }
 0x27f   :  { %v678_v61 = vpop.xlane.xlu1 %677 }
 0x280   :  { %4902 = vrsqrt.f32 %v691_v60  ;;  %v694_v62 = vmax.f32 %v678_v61, 1e-24 }
 0x281   :  { %v672_v63 = vpop.xlane.xlu0 %671 }
 0x282   :  { %4904 = vrsqrt.f32 %v694_v62  ;;  %v692_v1 = vmax.f32 %v672_v63, 1e-24 }
 0x284   :  { %4906 = vrsqrt.f32 %v692_v1 }
 0x28b   :  { %v4901_v2 = vpop.eup %4900 }
 0x28c   :  { %v709_v5 = vmul.f32 %v4901_v2, %v637_v12 }
 0x28d   :  { %v4903_v3 = vpop.eup %4902  ;;  %v681_v4 = vpop.xlane.xlu0 %680 }
 0x28e   :  { %v695_v6 = vmax.f32 %v681_v4, 1e-24  ;;  %v707_v7 = vmul.f32 %v4903_v3, %v629_v16  ;;  %v717_v26 = vmax.f32 %v709_v5, 0.0 }
 0x28f   :  { %v4905_v8 = vpop.eup %4904 }
 0x290   :  { %4908 = vrsqrt.f32 %v695_v6  ;;  %v715_v9 = vmax.f32 %v707_v7, 0.0  ;;  %v710_v33 = vmul.f32 %v4905_v8, %v640_v25  ;;  %v729_v16 = vsel %vm581_vm3, %v717_v26, 0.0 }
 0x291   :  { %v4907_v13 = vpop.eup %4906  ;;  %v684_v23 = vpop.xlane.xlu1 %683 }
 0x292   :  { %v687_v24 = vpop.xlane.xlu0 %686  ;;  %v696_v34 = vmax.f32 %v684_v23, 1e-24  ;;  %v723_v37 = vsel %vm581_vm3, %v715_v9, 0.0  ;;  %v708_v38 = vmul.f32 %v4907_v13, %v632_v35  ;;  %v718_v42 = vmax.f32 %v710_v33, 0.0 }
 0x293   :  { %v697_v36 = vmax.f32 %v687_v24, 1e-24  ;;  %724 = vadd.xlane.f32.xlu0 %v723_v37 }
 0x294   :  { %4910 = vrsqrt.f32 %v696_v34  ;;  %v716_v39 = vmax.f32 %v708_v38, 0.0  ;;  %v732_v25 = vsel %vm581_vm3, %v718_v42, 0.0 }
 0x295   :  { %4912 = vrsqrt.f32 %v697_v36  ;;  %v690_v12 = vpop.xlane.xlu1 %689 }
 0x296   :  { %v698_v40 = vmax.f32 %v690_v12, 1e-24  ;;  %v726_v41 = vsel %vm581_vm3, %v716_v39, 0.0 }
 0x297   :  { %730 = vadd.xlane.f32.xlu0 %v729_v16  ;;  %727 = vadd.xlane.f32.xlu1 %v726_v41 }
 0x298   :  { %4914 = vrsqrt.f32 %v698_v40 }
 0x29b   :  { %733 = vadd.xlane.f32.xlu1 %v732_v25 }
 0x29d   :  { %v4909_v45 = vpop.eup %4908 }
 0x29e   :  { %v711_v46 = vmul.f32 %v4909_v45, %v645_v44 }
 0x2a0   :  { %v719_v35 = vmax.f32 %v711_v46, 0.0 }
 0x2a1   :  { %v4911_v47 = vpop.eup %4910 }
 0x2a2   :  { %v4913_v50 = vpop.eup %4912  ;;  %v735_v51 = vsel %vm581_vm3, %v719_v35, 0.0  ;;  %v712_v52 = vmul.f32 %v4911_v47, %v648_v49 }
 0x2a3   :  { %736 = vadd.xlane.f32.xlu0 %v735_v51  ;;  %v713_v53 = vmul.f32 %v4913_v50, %v5478_v43 }
 0x2a4   :  { %v720_v54 = vmax.f32 %v712_v52, 0.0 }
 0x2a5   :  { %v4915_v55 = vpop.eup %4914  ;;  %v721_v56 = vmax.f32 %v713_v53, 0.0 }
 0x2a6   :  { %v738_v57 = vsel %vm581_vm3, %v720_v54, 0.0  ;;  %v714_v58 = vmul.f32 %v4915_v55, %v5480_v48 }
 0x2a7   :  { %739 = vadd.xlane.f32.xlu1 %v738_v57  ;;  %v741_v59 = vsel %vm581_vm3, %v721_v56, 0.0 }
 0x2a8   :  { %742 = vadd.xlane.f32.xlu0 %v741_v59  ;;  %v722_v44 = vmax.f32 %v714_v58, 0.0 }
 0x2aa   :  { %v744_v60 = vsel %vm581_vm3, %v722_v44, 0.0 }
 0x2ab   :  { %745 = vadd.xlane.f32.xlu1 %v744_v60 }
 0x31c   :  { %v725_v61 = vpop.xlane.xlu0 %724 }
 0x31d   :  { %v748_v49 = vmul.f32 0.03125, %v725_v61 }
 0x31f   :  { %v5500_v62 = vsub.f32 %v715_v9, %v748_v49 }
 0x320   :  { %v728_v43 = vpop.xlane.xlu1 %727  ;;  %v731_v63 = vpop.xlane.xlu0 %730 }
 0x321   :  { %v749_v1 = vmul.f32 0.03125, %v728_v43  ;;  %v750_v2 = vmul.f32 0.03125, %v731_v63  ;;  %v764_v3 = vmul.f32 %v5500_v62, %v5500_v62 }
 0x323   :  { %v5504_v48 = vsub.f32 %v716_v39, %v749_v1  ;;  %v5506_v4 = vsub.f32 %v717_v26, %v750_v2  ;;  %v772_v5 = vsel %vm581_vm3, %v764_v3, 0.0 }
 0x324   :  { %v734_v6 = vpop.xlane.xlu1 %733  ;;  %773 = vadd.xlane.f32.xlu0 %v772_v5 }
 0x325   :  { %v751_v7 = vmul.f32 0.03125, %v734_v6  ;;  %v765_v8 = vmul.f32 %v5504_v48, %v5504_v48  ;;  %v766_v9 = vmul.f32 %v5506_v4, %v5506_v4  ;;  %v5540_v6 = vld [vmem:[#allocation11] ss:$0 sm:$0xff] }
 0x327   :  { %v5513_v13 = vsub.f32 %v718_v42, %v751_v7  ;;  %v775_v23 = vsel %vm581_vm3, %v765_v8, 0.0  ;;  %v778_v24 = vsel %vm581_vm3, %v766_v9, 0.0 }
 0x328   :  { %776 = vadd.xlane.f32.xlu1 %v775_v23  ;;  %779 = vadd.xlane.f32.xlu0 %v778_v24  ;;  %v5543_v23 = vld [vmem:[#allocation13] ss:$0 sm:$0xff] }
 0x329   :  { %v767_v26 = vmul.f32 %v5513_v13, %v5513_v13 }
 0x32b   :  { %v781_v33 = vsel %vm581_vm3, %v767_v26, 0.0 }
 0x32c   :  { %782 = vadd.xlane.f32.xlu1 %v781_v33  ;;  %v737_v34 = vpop.xlane.xlu0 %736 }
 0x32d   :  { %v752_v36 = vmul.f32 0.03125, %v737_v34 }
 0x32f   :  { %v5520_v37 = vsub.f32 %v719_v35, %v752_v36 }
 0x330   :  { %v740_v38 = vpop.xlane.xlu1 %739 }
 0x331   :  { %v753_v39 = vmul.f32 0.03125, %v740_v38  ;;  %v743_v12 = vpop.xlane.xlu0 %742  ;;  %v768_v40 = vmul.f32 %v5520_v37, %v5520_v37 }
 0x332   :  { %v754_v16 = vmul.f32 0.03125, %v743_v12 }
 0x333   :  { %v5524_v41 = vsub.f32 %v720_v54, %v753_v39  ;;  %v784_v42 = vsel %vm581_vm3, %v768_v40, 0.0 }
 0x334   :  { %v5527_v25 = vsub.f32 %v721_v56, %v754_v16  ;;  %v746_v45 = vpop.xlane.xlu1 %745  ;;  %785 = vadd.xlane.f32.xlu0 %v784_v42 }
 0x335   :  { %v755_v46 = vmul.f32 0.03125, %v746_v45  ;;  %v769_v35 = vmul.f32 %v5524_v41, %v5524_v41 }
 0x336   :  { %v770_v47 = vmul.f32 %v5527_v25, %v5527_v25 }
 0x337   :  { %v5533_v50 = vsub.f32 %v722_v44, %v755_v46  ;;  %v787_v51 = vsel %vm581_vm3, %v769_v35, 0.0 }
 0x338   :  { %788 = vadd.xlane.f32.xlu1 %v787_v51  ;;  %v790_v52 = vsel %vm581_vm3, %v770_v47, 0.0 }
 0x339   :  { %791 = vadd.xlane.f32.xlu0 %v790_v52  ;;  %v771_v53 = vmul.f32 %v5533_v50, %v5533_v50 }
 0x33b   :  { %v793_v54 = vsel %vm581_vm3, %v771_v53, 0.0 }
 0x33c   :  { %794 = vadd.xlane.f32.xlu1 %v793_v54 }
 0x3ad   :  { %v774_v55 = vpop.xlane.xlu0 %773 }
 0x3ae   :  { %v796_v56 = vmul.f32 0.03125, %v774_v55 }
 0x3b0   :  { %v804_v57 = vadd.f32 1e-05, %v796_v56 }
 0x3b1   :  { %v777_v58 = vpop.xlane.xlu1 %776  ;;  %v780_v59 = vpop.xlane.xlu0 %779 }
 0x3b2   :  { %4916 = vrsqrt.f32 %v804_v57  ;;  %v797_v44 = vmul.f32 0.03125, %v777_v58  ;;  %v798_v60 = vmul.f32 0.03125, %v780_v59 }
 0x3b4   :  { %v805_v61 = vadd.f32 1e-05, %v797_v44  ;;  %v806_v49 = vadd.f32 1e-05, %v798_v60 }
 0x3b5   :  { %v783_v43 = vpop.xlane.xlu1 %782 }
 0x3b6   :  { %4918 = vrsqrt.f32 %v805_v61  ;;  %v799_v63 = vmul.f32 0.03125, %v783_v43 }
 0x3b7   :  { %4920 = vrsqrt.f32 %v806_v49 }
 0x3b8   :  { %v807_v1 = vadd.f32 1e-05, %v799_v63 }
 0x3ba   :  { %4922 = vrsqrt.f32 %v807_v1 }
 0x3bd   :  { %v786_v2 = vpop.xlane.xlu0 %785 }
 0x3be   :  { %v800_v3 = vmul.f32 0.03125, %v786_v2 }
 0x3bf   :  { %v4917_v5 = vpop.eup %4916 }
 0x3c0   :  { %v808_v7 = vadd.f32 1e-05, %v800_v3  ;;  %v820_v8 = vmul.f32 %v4917_v5, %v5500_v62 }
 0x3c1   :  { %v789_v9 = vpop.xlane.xlu1 %788 }
 0x3c2   :  { %4924 = vrsqrt.f32 %v808_v7  ;;  %v801_v24 = vmul.f32 0.03125, %v789_v9  ;;  %v792_v26 = vpop.xlane.xlu0 %791  ;;  %v834_v33 = vmul.f32 %v5540_v6, %v820_v8 }
 0x3c3   :  { %v4919_v34 = vpop.eup %4918  ;;  %v802_v36 = vmul.f32 0.03125, %v792_v26 }
 0x3c4   :  { %v4921_v38 = vpop.eup %4920  ;;  %v809_v39 = vadd.f32 1e-05, %v801_v24  ;;  %v5547_v12 = vadd.f32 %v5543_v23, %v834_v33  ;;  %v821_v40 = vmul.f32 %v4919_v34, %v5504_v48 }
 0x3c5   :  { %v810_v16 = vadd.f32 1e-05, %v802_v36  ;;  %v795_v42 = vpop.xlane.xlu1 %794  ;;  %v822_v62 = vmul.f32 %v4921_v38, %v5506_v4 }
 0x3c6   :  { %4926 = vrsqrt.f32 %v809_v39  ;;  %v803_v45 = vmul.f32 0.03125, %v795_v42  ;;  %v4336_v46 = vpack.c.bf16 %v5547_v12, %v5547_v12  ;;  %v835_v35 = vmul.f32 %v5540_v6, %v821_v40 }
 0x3c7   :  { %v4923_v47 = vpop.eup %4922  ;;  %4928 = vrsqrt.f32 %v810_v16  ;;  %v836_v51 = vmul.f32 %v5540_v6, %v822_v62  ;;  %v4891_v16 = vld [vmem:[%s6467_s4 + $0x8] sm:$0xff]  }
 0x3c8   :  { %v811_v52 = vadd.f32 1e-05, %v803_v45  ;;  %v881_v53 = vsel %vm193_vm1, %v4336_v46, 0  ;;  %v5557_v48 = vadd.f32 %v5543_v23, %v835_v35  ;;  %v823_v54 = vmul.f32 %v4923_v47, %v5513_v13 }
 0x3c9   :  { %4544 = vmatpush3.bf16.msra.mxu1 %v881_v53  ;;  %v5561_v4 = vadd.f32 %v5543_v23, %v836_v51 }
 0x3ca   :  { %4930 = vrsqrt.f32 %v811_v52  ;;  %4549 = vmatprep.subr.bf16.mxu1 %v5227_v0  ;;  %v4337_v55 = vpack.c.bf16 %v5557_v48, %v5557_v48  ;;  %v837_v56 = vmul.f32 %v5540_v6, %v823_v54  ;;  %v856_v57 = vpack.c.bf16 %v5557_v48, %v5547_v12  ;;  %v4293_v12 = vld [vmem:[#allocation10] ss:$0 sm:$0xff] }
 0x3cb   :  { %v4338_v58 = vpack.c.bf16 %v5561_v4, %v5561_v4 }
 0x3cc   :  { %4546 = vmatmul.mubr.msk.bf16.vlgmr.msra.gmra.mxu1 %vm189_vm2, %v5384_v14  ;;  %v924_v13 = vsel %vm193_vm1, %v4337_v55, 0  ;;  %v5575_v59 = vadd.f32 %v5543_v23, %v837_v56 }
 0x3cd   :  { %4550 = vmatpush3.bf16.msra.mxu1 %v924_v13  ;;  %v967_v44 = vsel %vm193_vm1, %v4338_v58, 0  ;;  %4551 = vmatprep.mubr.msk.bf16.mxu1 %vm5228_vm0, %v5227_v0 }
 0x3ce   :  { %4556 = vmatpush3.bf16.msra.mxu0 %v967_v44  ;;  %4561 = vmatprep.subr.bf16.mxu1 %v5227_v0  ;;  %v857_v60 = vpack.c.bf16 %v5575_v59, %v5561_v4  ;;  %v4339_v14 = vpack.c.bf16 %v5575_v59, %v5575_v59 }
 0x3cf   :  { %v4925_v61 = vpop.eup %4924  ;;  %4567 = vmatprep.subr.bf16.mxu0 %v5227_v0 }
 0x3d0   :  { %v824_v49 = vmul.f32 %v4925_v61, %v5520_v37  ;;  %v1010_v2 = vsel %vm193_vm1, %v4339_v14, 0 }
 0x3d1   :  { %4558 = vmatmul.mubr.msk.bf16.vlgmr.msra.gmra.mxu0 %vm189_vm2, %v5412_v21 }
 0x3d2   :  { %v838_v43 = vmul.f32 %v5540_v6, %v824_v49  ;;  %4569 = vmatprep.mubr.msk.bf16.mxu0 %vm5228_vm0, %v5227_v0 }
 0x3d3   :  { %v4927_v63 = vpop.eup %4926 }
 0x3d4   :  { %v4929_v1 = vpop.eup %4928  ;;  %4552 = vmatmul.mubr.msk.bf16.vlgmr.msra.gmra.mxu1 %vm189_vm2, %v5386_v15  ;;  %v5596_v3 = vadd.f32 %v5543_v23, %v838_v43  ;;  %v825_v37 = vmul.f32 %v4927_v63, %v5524_v41 }
 0x3d5   :  { %4562 = vmatpush3.bf16.msra.mxu1 %v1010_v2  ;;  %4563 = vmatprep.mubr.msk.bf16.mxu1 %vm5228_vm0, %v5227_v0  ;;  %v826_v21 = vmul.f32 %v4929_v1, %v5527_v25 }
 0x3d6   :  { %v4340_v5 = vpack.c.bf16 %v5596_v3, %v5596_v3  ;;  %4573 = vmatprep.subr.bf16.mxu1 %v5227_v0  ;;  %v839_v15 = vmul.f32 %v5540_v6, %v825_v37 }
 0x3d7   :  { %v4931_v7 = vpop.eup %4930  ;;  %v840_v8 = vmul.f32 %v5540_v6, %v826_v21 }
 0x3d8   :  { %v1053_v9 = vsel %vm193_vm1, %v4340_v5, 0  ;;  %v5609_v41 = vadd.f32 %v5543_v23, %v839_v15  ;;  %v827_v24 = vmul.f32 %v4931_v7, %v5533_v50 }
 0x3d9   :  { %4568 = vmatpush3.bf16.msra.mxu0 %v1053_v9  ;;  %v5613_v25 = vadd.f32 %v5543_v23, %v840_v8 }
 0x3da   :  { %4579 = vmatprep.subr.bf16.mxu0 %v5227_v0  ;;  %v4341_v26 = vpack.c.bf16 %v5609_v41, %v5609_v41  ;;  %v841_v33 = vmul.f32 %v5540_v6, %v827_v24  ;;  %v858_v34 = vpack.c.bf16 %v5609_v41, %v5596_v3 }
 0x3db   :  { %v4342_v36 = vpack.c.bf16 %v5613_v25, %v5613_v25 }
 0x3dc   :  { %4564 = vmatmul.mubr.msk.bf16.vlgmr.msra.gmra.mxu1 %vm189_vm2, %v5414_v22  ;;  %4570 = vmatmul.mubr.msk.bf16.vlgmr.msra.gmra.mxu0 %vm189_vm2, %v5436_v27  ;;  %v1096_v50 = vsel %vm193_vm1, %v4341_v26, 0  ;;  %v5629_v38 = vadd.f32 %v5543_v23, %v841_v33 }
 0x3dd   :  { %4574 = vmatpush3.bf16.msra.mxu1 %v1096_v50  ;;  %v1139_v39 = vsel %vm193_vm1, %v4342_v36, 0  ;;  %4575 = vmatprep.mubr.msk.bf16.mxu1 %vm5228_vm0, %v5227_v0 }
 0x3de   :  { %4580 = vmatpush3.bf16.msra.mxu0 %v1139_v39  ;;  %4585 = vmatprep.subr.bf16.mxu1 %v5227_v0  ;;  %v859_v22 = vpack.c.bf16 %v5629_v38, %v5613_v25  ;;  %v4343_v27 = vpack.c.bf16 %v5629_v38, %v5629_v38 }
 0x3df   :  { %4581 = vmatprep.mubr.msk.bf16.mxu0 %vm5228_vm0, %v5227_v0  ;;  %4591 = vmatprep.subr.bf16.mxu0 %v4891_v16 }
 0x3e0   :  { %v1182_v40 = vsel %vm193_vm1, %v4343_v27, 0  ;;  %v4264_v27 = vld [vmem:[#allocation8] ss:$0 sm:$0xff] }
 0x3e4   :  { %4576 = vmatmul.mubr.msk.bf16.vlgmr.msra.gmra.mxu1 %vm189_vm2, %v5438_v28  ;;  %4582 = vmatmul.mubr.msk.bf16.vlgmr.msra.gmra.mxu0 %vm189_vm2, %v5457_v31  ;;  %v4892_v28 = vld [vmem:[%s6467_s4] sm:$0xff]   ;;  %s5241_s4 = smov 40  }
 0x3e5   :  { %4586 = vmatpush3.bf16.msra.mxu1 %v1182_v40  ;;  %4587 = vmatprep.mubr.msk.bf16.mxu1 %vm5228_vm0, %v5227_v0 }
 0x3e6   :  { %4592 = vmatpush3.bf16.msra.mxu0 %v4891_v16 }
 0x3e7   :  { %4593 = vmatprep.subr.bf16.mxu0 %v4892_v28 }
 0x3ea   :  { %4594 = vmatpush3.bf16.msra.mxu0 %v4892_v28 }
 0x3eb   :  { %4615 = vmatprep.subr.bf16.mxu0 %v5227_v0 }
 0x3ec   :  { %4588 = vmatmul.mubr.msk.bf16.vlgmr.msra.gmra.mxu1 %vm189_vm2, %v5459_v32 }
 0x48c   :  { %v917_v31 = vpop.f32.mrf.mxu1 }
 0x48e   :  { %v4547_v42 = vpop.f32.mrf.mxu1 }
 0x490   :  { %v920_v62 = vpop.f32.mrf.mxu1 }
 0x491   :  { %v1003_v45 = vpop.f32.mrf.mxu0 }
 0x492   :  { %v4548_v46 = vpop.f32.mrf.mxu1 }
 0x493   :  { %v4559_v32 = vpop.f32.mrf.mxu0 }
 0x494   :  { %v960_v35 = vpop.f32.mrf.mxu1 }
 0x495   :  { %v1224_v47 = vpack.c.bf16 %v960_v35, %v917_v31  ;;  %v1006_v51 = vpop.f32.mrf.mxu0 }
 0x496   :  { %v4553_v52 = vpop.f32.mrf.mxu1 }
 0x497   :  { %4595 = vmatprep.mubr.msk.bf16.mxu0 %vm581_vm3, %v1224_v47  ;;  %v4560_v53 = vpop.f32.mrf.mxu0 }
 0x498   :  { %v963_v54 = vpop.f32.mrf.mxu1 }
 0x49a   :  { %v4554_v55 = vpop.f32.mrf.mxu1 }
 0x49c   :  { %v1046_v56 = vpop.f32.mrf.mxu1  ;;  %v1089_v58 = vpop.f32.mrf.mxu0 }
 0x49d   :  { %v1225_v13 = vpack.c.bf16 %v1046_v56, %v1003_v45 }
 0x49e   :  { %v4565_v44 = vpop.f32.mrf.mxu1  ;;  %v4571_v61 = vpop.f32.mrf.mxu0 }
 0x49f   :  { %4596 = vmatmul.mubr.msk.bf16.vlgmr.msra.gmra.mxu0 %vm581_vm3, %v1225_v13 }
 0x4a0   :  { %v1049_v14 = vpop.f32.mrf.mxu1  ;;  %v1092_v49 = vpop.f32.mrf.mxu0 }
 0x4a2   :  { %v4566_v43 = vpop.f32.mrf.mxu1  ;;  %v4572_v63 = vpop.f32.mrf.mxu0 }
 0x4a4   :  { %v1132_v1 = vpop.f32.mrf.mxu1  ;;  %v1175_v2 = vpop.f32.mrf.mxu0 }
 0x4a5   :  { %v1226_v37 = vpack.c.bf16 %v1132_v1, %v1089_v58 }
 0x4a6   :  { %v4577_v21 = vpop.f32.mrf.mxu1  ;;  %v4583_v5 = vpop.f32.mrf.mxu0 }
 0x4a7   :  { %4599 = vmatprep.mubr.msk.bf16.mxu0 %vm581_vm3, %v1226_v37 }
 0x4a8   :  { %v1135_v15 = vpop.f32.mrf.mxu1  ;;  %v1178_v7 = vpop.f32.mrf.mxu0 }
 0x4aa   :  { %v4578_v8 = vpop.f32.mrf.mxu1  ;;  %v4584_v9 = vpop.f32.mrf.mxu0 }
 0x4ac   :  { %v1218_v24 = vpop.f32.mrf.mxu1 }
 0x4ad   :  { %v1227_v26 = vpack.c.bf16 %v1218_v24, %v1175_v2 }
 0x4ae   :  { %v4589_v33 = vpop.f32.mrf.mxu1 }
 0x4af   :  { %4600 = vmatmul.mubr.msk.bf16.gmra.mxu0 %vm581_vm3, %v1227_v26 }
 0x4b0   :  { %v1221_v36 = vpop.f32.mrf.mxu1  ;;  %4617 = vmatprep.mubr.msk.bf16.mxu0 %vm5228_vm0, %v5227_v0 }
 0x4b2   :  { %v4590_v50 = vpop.f32.mrf.mxu1 }
 0x55f   :  { %v4597_v39 = vpop.f32.mrf.mxu0 }
 0x560   :  { %v5663_v16 = vadd.f32 %v4597_v39, %v4264_v27 }
 0x561   :  { %v1292_v40 = vpop.f32.mrf.mxu0 }
 0x562   :  { %v1293_v28 = vadd.f32 %v4264_v27, %v1292_v40  ;;  %v1325_v35 = vmul.f32 %v5663_v16, %v5663_v16 }
 0x563   :  { %v4598_v31 = vpop.f32.mrf.mxu0 }
 0x564   :  { %v1323_v42 = vmul.f32 %v1293_v28, %v1293_v28  ;;  %v5665_v45 = vadd.f32 %v4598_v31, %v4264_v27  ;;  %v1337_v52 = vsel %vm581_vm3, %v1325_v35, 0.0 }
 0x565   :  { %v1295_v62 = vpop.f32.mrf.mxu0 }
 0x566   :  { %v1296_v46 = vadd.f32 %v4264_v27, %v1295_v62  ;;  %v1331_v32 = vsel %vm581_vm3, %v1323_v42, 0.0  ;;  %v1326_v53 = vmul.f32 %v5665_v45, %v5665_v45 }
 0x567   :  { %1332 = vadd.xlane.f32.xlu0 %v1331_v32 }
 0x568   :  { %v1324_v47 = vmul.f32 %v1296_v46, %v1296_v46  ;;  %v1340_v54 = vsel %vm581_vm3, %v1326_v53, 0.0 }
 0x56a   :  { %v1334_v51 = vsel %vm581_vm3, %v1324_v47, 0.0 }
 0x56b   :  { %1335 = vadd.xlane.f32.xlu1 %v1334_v51  ;;  %1338 = vadd.xlane.f32.xlu0 %v1337_v52 }
 0x56f   :  { %v4601_v55 = vpop.f32.mrf.mxu0  ;;  %1341 = vadd.xlane.f32.xlu1 %v1340_v54 }
 0x570   :  { %v5675_v58 = vadd.f32 %v4601_v55, %v4264_v27 }
 0x571   :  { %v1308_v56 = vpop.f32.mrf.mxu0 }
 0x572   :  { %v1309_v13 = vadd.f32 %v4264_v27, %v1308_v56  ;;  %v1329_v1 = vmul.f32 %v5675_v58, %v5675_v58 }
 0x573   :  { %v4602_v44 = vpop.f32.mrf.mxu0 }
 0x574   :  { %v1327_v61 = vmul.f32 %v1309_v13, %v1309_v13  ;;  %v5677_v49 = vadd.f32 %v4602_v44, %v4264_v27  ;;  %v1349_v21 = vsel %vm581_vm3, %v1329_v1, 0.0 }
 0x575   :  { %v1311_v14 = vpop.f32.mrf.mxu0 }
 0x576   :  { %v1312_v43 = vadd.f32 %v4264_v27, %v1311_v14  ;;  %v1343_v63 = vsel %vm581_vm3, %v1327_v61, 0.0  ;;  %v1330_v5 = vmul.f32 %v5677_v49, %v5677_v49 }
 0x577   :  { %1344 = vadd.xlane.f32.xlu0 %v1343_v63 }
 0x578   :  { %v1328_v2 = vmul.f32 %v1312_v43, %v1312_v43  ;;  %v1352_v15 = vsel %vm581_vm3, %v1330_v5, 0.0 }
 0x57a   :  { %v1346_v37 = vsel %vm581_vm3, %v1328_v2, 0.0 }
 0x57b   :  { %1347 = vadd.xlane.f32.xlu1 %v1346_v37  ;;  %1350 = vadd.xlane.f32.xlu0 %v1349_v21 }
 0x57f   :  { %1353 = vadd.xlane.f32.xlu1 %v1352_v15 }
 0x5f0   :  { %v1333_v7 = vpop.xlane.xlu0 %1332 }
 0x5f1   :  { %v1355_v8 = vmax.f32 %v1333_v7, 1e-24 }
 0x5f3   :  { %4932 = vrsqrt.f32 %v1355_v8 }
 0x5f4   :  { %v1336_v9 = vpop.xlane.xlu1 %1335  ;;  %v1339_v24 = vpop.xlane.xlu0 %1338 }
 0x5f5   :  { %v1356_v26 = vmax.f32 %v1336_v9, 1e-24  ;;  %v1357_v33 = vmax.f32 %v1339_v24, 1e-24 }
 0x5f7   :  { %4934 = vrsqrt.f32 %v1356_v26 }
 0x5f8   :  { %4936 = vrsqrt.f32 %v1357_v33  ;;  %v1342_v36 = vpop.xlane.xlu1 %1341 }
 0x5f9   :  { %v1358_v50 = vmax.f32 %v1342_v36, 1e-24 }
 0x5fb   :  { %4938 = vrsqrt.f32 %v1358_v50 }
 0x600   :  { %v4933_v39 = vpop.eup %4932  ;;  %v1345_v27 = vpop.xlane.xlu0 %1344 }
 0x601   :  { %v1359_v40 = vmax.f32 %v1345_v27, 1e-24  ;;  %v1371_v31 = vmul.f32 %v4933_v39, %v1293_v28 }
 0x603   :  { %4940 = vrsqrt.f32 %v1359_v40  ;;  %v1379_v42 = vmax.f32 %v1371_v31, 0.0 }
 0x604   :  { %v4935_v62 = vpop.eup %4934  ;;  %v1348_v32 = vpop.xlane.xlu1 %1347 }
 0x605   :  { %v1351_v35 = vpop.xlane.xlu0 %1350  ;;  %v4937_v47 = vpop.eup %4936  ;;  %v1360_v51 = vmax.f32 %v1348_v32, 1e-24  ;;  %v1387_v53 = vsel %vm581_vm3, %v1379_v42, 0.0  ;;  %v1372_v54 = vmul.f32 %v4935_v62, %v1296_v46 }
 0x606   :  { %v1361_v52 = vmax.f32 %v1351_v35, 1e-24  ;;  %1388 = vadd.xlane.f32.xlu0 %v1387_v53  ;;  %v1373_v55 = vmul.f32 %v4937_v47, %v5663_v16 }
 0x607   :  { %4942 = vrsqrt.f32 %v1360_v51  ;;  %v1380_v56 = vmax.f32 %v1372_v54, 0.0 }
 0x608   :  { %v4939_v44 = vpop.eup %4938  ;;  %4944 = vrsqrt.f32 %v1361_v52  ;;  %v1354_v61 = vpop.xlane.xlu1 %1353  ;;  %v1381_v28 = vmax.f32 %v1373_v55, 0.0 }
 0x609   :  { %v1362_v14 = vmax.f32 %v1354_v61, 1e-24  ;;  %v1390_v63 = vsel %vm581_vm3, %v1380_v56, 0.0  ;;  %v1374_v1 = vmul.f32 %v4939_v44, %v5665_v45 }
 0x60a   :  { %1391 = vadd.xlane.f32.xlu1 %v1390_v63  ;;  %v1393_v2 = vsel %vm581_vm3, %v1381_v28, 0.0 }
 0x60b   :  { %4946 = vrsqrt.f32 %v1362_v14  ;;  %1394 = vadd.xlane.f32.xlu0 %v1393_v2  ;;  %v1382_v46 = vmax.f32 %v1374_v1, 0.0 }
 0x60d   :  { %v1396_v37 = vsel %vm581_vm3, %v1382_v46, 0.0 }
 0x60e   :  { %1397 = vadd.xlane.f32.xlu1 %v1396_v37 }
 0x610   :  { %v4941_v16 = vpop.eup %4940 }
 0x611   :  { %v1375_v21 = vmul.f32 %v4941_v16, %v1309_v13 }
 0x613   :  { %v1383_v5 = vmax.f32 %v1375_v21, 0.0 }
 0x614   :  { %v4943_v15 = vpop.eup %4942 }
 0x615   :  { %v4945_v7 = vpop.eup %4944  ;;  %v1399_v8 = vsel %vm581_vm3, %v1383_v5, 0.0  ;;  %v1376_v9 = vmul.f32 %v4943_v15, %v1312_v43 }
 0x616   :  { %1400 = vadd.xlane.f32.xlu0 %v1399_v8  ;;  %v1377_v45 = vmul.f32 %v4945_v7, %v5675_v58 }
 0x617   :  { %v1384_v24 = vmax.f32 %v1376_v9, 0.0 }
 0x618   :  { %v4947_v26 = vpop.eup %4946  ;;  %v1385_v33 = vmax.f32 %v1377_v45, 0.0 }
 0x619   :  { %v1402_v36 = vsel %vm581_vm3, %v1384_v24, 0.0  ;;  %v1378_v50 = vmul.f32 %v4947_v26, %v5677_v49 }
 0x61a   :  { %1403 = vadd.xlane.f32.xlu1 %v1402_v36  ;;  %v1405_v39 = vsel %vm581_vm3, %v1385_v33, 0.0 }
 0x61b   :  { %1406 = vadd.xlane.f32.xlu0 %v1405_v39  ;;  %v1386_v13 = vmax.f32 %v1378_v50, 0.0 }
 0x61d   :  { %v1408_v27 = vsel %vm581_vm3, %v1386_v13, 0.0 }
 0x61e   :  { %1409 = vadd.xlane.f32.xlu1 %v1408_v27 }
 0x68f   :  { %v1389_v40 = vpop.xlane.xlu0 %1388 }
 0x690   :  { %v1411_v43 = vmul.f32 0.03125, %v1389_v40  ;;  %v4893_v40 = vld [vmem:[%s6469_s6 + $0x8] sm:$0xff]  }
 0x691   :  { %4603 = vmatprep.subr.bf16.mxu1 %v4893_v40 }
 0x692   :  { %v5699_v31 = vsub.f32 %v1379_v42, %v1411_v43  ;;  %4604 = vmatpush3.bf16.msra.mxu1 %v4893_v40 }
 0x693   :  { %v1392_v58 = vpop.xlane.xlu1 %1391 }
 0x694   :  { %v1412_v62 = vmul.f32 0.03125, %v1392_v58  ;;  %v1395_v32 = vpop.xlane.xlu0 %1394  ;;  %v1427_v35 = vmul.f32 %v5699_v31, %v5699_v31 }
 0x695   :  { %v1413_v47 = vmul.f32 0.03125, %v1395_v32 }
 0x696   :  { %v5703_v49 = vsub.f32 %v1380_v56, %v1412_v62  ;;  %v1435_v51 = vsel %vm581_vm3, %v1427_v35, 0.0 }
 0x697   :  { %v5706_v52 = vsub.f32 %v1381_v28, %v1413_v47  ;;  %v1398_v53 = vpop.xlane.xlu1 %1397  ;;  %1436 = vadd.xlane.f32.xlu0 %v1435_v51 }
 0x698   :  { %v1414_v54 = vmul.f32 0.03125, %v1398_v53  ;;  %v1428_v42 = vmul.f32 %v5703_v49, %v5703_v49 }
 0x699   :  { %v1429_v55 = vmul.f32 %v5706_v52, %v5706_v52 }
 0x69a   :  { %v5712_v44 = vsub.f32 %v1382_v46, %v1414_v54  ;;  %v1438_v61 = vsel %vm581_vm3, %v1428_v42, 0.0 }
 0x69b   :  { %1439 = vadd.xlane.f32.xlu1 %v1438_v61  ;;  %v1441_v56 = vsel %vm581_vm3, %v1429_v55, 0.0 }
 0x69c   :  { %1442 = vadd.xlane.f32.xlu0 %v1441_v56  ;;  %v1430_v28 = vmul.f32 %v5712_v44, %v5712_v44 }
 0x69e   :  { %v1444_v14 = vsel %vm581_vm3, %v1430_v28, 0.0 }
 0x69f   :  { %1445 = vadd.xlane.f32.xlu1 %v1444_v14  ;;  %v1401_v63 = vpop.xlane.xlu0 %1400 }
 0x6a0   :  { %v1415_v1 = vmul.f32 0.03125, %v1401_v63 }
 0x6a2   :  { %v5719_v2 = vsub.f32 %v1383_v5, %v1415_v1 }
 0x6a3   :  { %v1404_v37 = vpop.xlane.xlu1 %1403 }
 0x6a4   :  { %v1416_v16 = vmul.f32 0.03125, %v1404_v37  ;;  %v1407_v46 = vpop.xlane.xlu0 %1406  ;;  %v1431_v21 = vmul.f32 %v5719_v2, %v5719_v2 }
 0x6a5   :  { %v1417_v15 = vmul.f32 0.03125, %v1407_v46 }
 0x6a6   :  { %v5723_v7 = vsub.f32 %v1384_v24, %v1416_v16  ;;  %v1447_v8 = vsel %vm581_vm3, %v1431_v21, 0.0 }
 0x6a7   :  { %v5726_v9 = vsub.f32 %v1385_v33, %v1417_v15  ;;  %v1410_v45 = vpop.xlane.xlu1 %1409  ;;  %1448 = vadd.xlane.f32.xlu0 %v1447_v8 }
 0x6a8   :  { %v1418_v26 = vmul.f32 0.03125, %v1410_v45  ;;  %v1432_v5 = vmul.f32 %v5723_v7, %v5723_v7 }
 0x6a9   :  { %v1433_v36 = vmul.f32 %v5726_v9, %v5726_v9 }
 0x6aa   :  { %v5732_v50 = vsub.f32 %v1386_v13, %v1418_v26  ;;  %v1450_v39 = vsel %vm581_vm3, %v1432_v5, 0.0  ;;  %v4894_v13 = vld [vmem:[%s6469_s6] sm:$0xff]   ;;  %s4215_s6 = sshll.u32 %s5244_s7, 4  ;;  %s4216_s6 = int_to_ptr.vmem [resolvable:$true] %s4215_s6 }
 0x6ab   :  { %1451 = vadd.xlane.f32.xlu1 %v1450_v39  ;;  %v1453_v24 = vsel %vm581_vm3, %v1433_v36, 0.0  ;;  %4605 = vmatprep.subr.bf16.mxu1 %v4894_v13 }
 0x6ac   :  { %1454 = vadd.xlane.f32.xlu0 %v1453_v24  ;;  %v1434_v33 = vmul.f32 %v5732_v50, %v5732_v50  ;;  %4606 = vmatpush3.bf16.msra.mxu1 %v4894_v13 }
 0x6ad   :  { %4621 = vmatprep.subr.bf16.mxu1 %v5227_v0 }
 0x6ae   :  { %v1456_v27 = vsel %vm581_vm3, %v1434_v33, 0.0 }
 0x6af   :  { %1457 = vadd.xlane.f32.xlu1 %v1456_v27 }
 0x720   :  { %v1437_v43 = vpop.xlane.xlu0 %1436 }
 0x721   :  { %v1459_v58 = vmul.f32 0.03125, %v1437_v43 }
 0x723   :  { %v1467_v62 = vadd.f32 1e-05, %v1459_v58 }
 0x724   :  { %v1440_v32 = vpop.xlane.xlu1 %1439 }
 0x725   :  { %4948 = vrsqrt.f32 %v1467_v62  ;;  %v1460_v35 = vmul.f32 0.03125, %v1440_v32  ;;  %v1443_v47 = vpop.xlane.xlu0 %1442 }
 0x726   :  { %v1461_v51 = vmul.f32 0.03125, %v1443_v47 }
 0x727   :  { %v1468_v53 = vadd.f32 1e-05, %v1460_v35 }
 0x728   :  { %v1469_v54 = vadd.f32 1e-05, %v1461_v51  ;;  %v1446_v42 = vpop.xlane.xlu1 %1445 }
 0x729   :  { %4950 = vrsqrt.f32 %v1468_v53  ;;  %v1462_v55 = vmul.f32 0.03125, %v1446_v42 }
 0x72a   :  { %4952 = vrsqrt.f32 %v1469_v54 }
 0x72b   :  { %v1470_v61 = vadd.f32 1e-05, %v1462_v55 }
 0x72d   :  { %4954 = vrsqrt.f32 %v1470_v61 }
 0x730   :  { %v1449_v56 = vpop.xlane.xlu0 %1448 }
 0x731   :  { %v1463_v28 = vmul.f32 0.03125, %v1449_v56 }
 0x732   :  { %v4949_v14 = vpop.eup %4948 }
 0x733   :  { %v1471_v63 = vadd.f32 1e-05, %v1463_v28  ;;  %v1483_v1 = vmul.f32 %v4949_v14, %v5699_v31 }
 0x734   :  { %v1452_v37 = vpop.xlane.xlu1 %1451 }
 0x735   :  { %4956 = vrsqrt.f32 %v1471_v63  ;;  %v1464_v16 = vmul.f32 0.03125, %v1452_v37  ;;  %v1455_v46 = vpop.xlane.xlu0 %1454  ;;  %v1491_v8 = vmul.f32 %v5540_v6, %v1483_v1 }
 0x736   :  { %v4951_v21 = vpop.eup %4950  ;;  %v1465_v15 = vmul.f32 0.03125, %v1455_v46 }
 0x737   :  { %v4953_v45 = vpop.eup %4952  ;;  %v1472_v26 = vadd.f32 1e-05, %v1464_v16  ;;  %v1484_v5 = vmul.f32 %v4951_v21, %v5703_v49  ;;  %v1499_v40 = vadd.f32 %v5543_v23, %v1491_v8 }
 0x738   :  { %v1485_v36 = vmul.f32 %v4953_v45, %v5706_v52  ;;  %v1473_v39 = vadd.f32 1e-05, %v1465_v15  ;;  %v1458_v24 = vpop.xlane.xlu1 %1457 }
 0x739   :  { %4958 = vrsqrt.f32 %v1472_v26  ;;  %v1466_v33 = vmul.f32 0.03125, %v1458_v24  ;;  %v1492_v31 = vmul.f32 %v5540_v6, %v1484_v5  ;;  %v5012_v24 = vld [vmem:[#allocation2] sm:$0xf] }
 0x73a   :  { %v4955_v27 = vpop.eup %4954  ;;  %4960 = vrsqrt.f32 %v1473_v39  ;;  %v1493_v62 = vmul.f32 %v5540_v6, %v1485_v36 }
 0x73b   :  { %v1486_v13 = vmul.f32 %v4955_v27, %v5712_v44  ;;  %v1474_v43 = vadd.f32 1e-05, %v1466_v33  ;;  %v1500_v58 = vadd.f32 %v5543_v23, %v1492_v31  ;;  %v5013_v31 = vld [vmem:[#allocation2 + $0x4] sm:$0xf] }
 0x73c   :  { %v1501_v32 = vadd.f32 %v5543_v23, %v1493_v62 }
 0x73d   :  { %4962 = vrsqrt.f32 %v1474_v43  ;;  %v5755_v49 = vpack.c.bf16 %v1500_v58, %v1499_v40  ;;  %v1494_v52 = vmul.f32 %v5540_v6, %v1486_v13  ;;  %v5014_v40 = vld [vmem:[#allocation2 + $0x8] sm:$0xf] }
 0x73f   :  { %4607 = vmatprep.mubr.msk.bf16.mxu1 %vm581_vm3, %v5755_v49  ;;  %v1502_v35 = vadd.f32 %v5543_v23, %v1494_v52 }
 0x741   :  { %v5762_v47 = vpack.c.bf16 %v1502_v35, %v1501_v32  ;;  %v5015_v32 = vld [vmem:[#allocation2 + $0xc] sm:$0xf] }
 0x742   :  { %v4957_v44 = vpop.eup %4956 }
 0x743   :  { %4608 = vmatmul.mubr.msk.bf16.vlgmr.msra.gmra.mxu1 %vm581_vm3, %v5762_v47  ;;  %v1487_v51 = vmul.f32 %v4957_v44, %v5719_v2 }
 0x745   :  { %v1495_v55 = vmul.f32 %v5540_v6, %v1487_v51  ;;  %v4895_v51 = vld [vmem:[%s6474_s11 + $0x8] sm:$0xff]  }
 0x746   :  { %v4959_v53 = vpop.eup %4958 }
 0x747   :  { %v4961_v54 = vpop.eup %4960  ;;  %v1488_v42 = vmul.f32 %v4959_v53, %v5723_v7  ;;  %v1503_v14 = vadd.f32 %v5543_v23, %v1495_v55  ;;  %v5016_v55 = vld [vmem:[#allocation2 + $0x10] sm:$0xf] }
 0x748   :  { %v1489_v61 = vmul.f32 %v4961_v54, %v5726_v9 }
 0x749   :  { %v1496_v56 = vmul.f32 %v5540_v6, %v1488_v42 }
 0x74a   :  { %v4963_v28 = vpop.eup %4962  ;;  %v1497_v37 = vmul.f32 %v5540_v6, %v1489_v61  ;;  %v4897_v61 = vld [vmem:[%s6473_s10 + $0x8] sm:$0xff]  }
 0x74b   :  { %v1504_v63 = vadd.f32 %v5543_v23, %v1496_v56  ;;  %v1490_v1 = vmul.f32 %v4963_v28, %v5732_v50  ;;  %v5823_v28 = vld [vmem:[#allocation2 + $0x14] sm:$0xf] }
 0x74c   :  { %v1505_v7 = vadd.f32 %v5543_v23, %v1497_v37  ;;  %v5838_v37 = vld [vmem:[#allocation2 + $0x1c] sm:$0xf] }
 0x74d   :  { %v5775_v2 = vpack.c.bf16 %v1504_v63, %v1503_v14  ;;  %v1498_v16 = vmul.f32 %v5540_v6, %v1490_v1  ;;  %v4896_v14 = vld [vmem:[%s6474_s11] sm:$0xff]   ;;  %v5018_v63 = vld [vmem:[#allocation2 + $0x18] sm:$0xf] }
 0x74e   :  { %v4898_v1 = vld [vmem:[%s6473_s10] sm:$0xff]  }
 0x74f   :  { %4611 = vmatprep.mubr.msk.bf16.mxu1 %vm581_vm3, %v5775_v2  ;;  %v1506_v9 = vadd.f32 %v5543_v23, %v1498_v16 }
 0x751   :  { %v5782_v46 = vpack.c.bf16 %v1506_v9, %v1505_v7 }
 0x753   :  { %4612 = vmatmul.mubr.msk.bf16.gmra.mxu1 %vm581_vm3, %v5782_v46 }
 0x754   :  { %4623 = vmatprep.mubr.msk.bf16.mxu1 %vm5228_vm0, %v5227_v0 }
 0x803   :  { %v4609_v50 = vpop.f32.mrf.mxu1 }
 0x804   :  { %v4346_v6 = vpack.c.bf16 %v4609_v50, %v4609_v50 }
 0x805   :  { %v1569_v21 = vpop.f32.mrf.mxu1 }
 0x806   :  { %v4344_v15 = vpack.c.bf16 %v1569_v21, %v1569_v21  ;;  %v1711_v23 = vsel %vm193_vm1, %v4346_v6, 0 }
 0x807   :  { %v4610_v8 = vpop.f32.mrf.mxu1 }
 0x808   :  { %v1625_v45 = vsel %vm193_vm1, %v4344_v15, 0  ;;  %v4347_v36 = vpack.c.bf16 %v4610_v8, %v4610_v8 }
 0x809   :  { %v1572_v26 = vpop.f32.mrf.mxu1  ;;  %4616 = vmatpush3.bf16.msra.mxu0 %v1625_v45 }
 0x80a   :  { %v4345_v5 = vpack.c.bf16 %v1572_v26, %v1572_v26  ;;  %4627 = vmatprep.subr.bf16.mxu0 %v5227_v0  ;;  %v1754_v33 = vsel %vm193_vm1, %v4347_v36, 0 }
 0x80c   :  { %v1668_v39 = vsel %vm193_vm1, %v4345_v5, 0  ;;  %4618 = vmatmul.mubr.msk.bf16.vlgmr.msra.gmra.mxu0 %vm189_vm2, %v5012_v24 }
 0x80d   :  { %4622 = vmatpush3.bf16.msra.mxu1 %v1668_v39  ;;  %4628 = vmatpush3.bf16.msra.mxu0 %v1711_v23 }
 0x80e   :  { %4633 = vmatprep.subr.bf16.mxu1 %v5227_v0  ;;  %4629 = vmatprep.mubr.msk.bf16.mxu0 %vm5228_vm0, %v5227_v0 }
 0x80f   :  { %4639 = vmatprep.subr.bf16.mxu0 %v5227_v0 }
 0x810   :  { %4624 = vmatmul.mubr.msk.bf16.vlgmr.msra.gmra.mxu1 %vm189_vm2, %v5013_v31 }
 0x811   :  { %4634 = vmatpush3.bf16.msra.mxu1 %v1754_v33  ;;  %4635 = vmatprep.mubr.msk.bf16.mxu1 %vm5228_vm0, %v5227_v0 }
 0x812   :  { %4645 = vmatprep.subr.bf16.mxu1 %v5227_v0 }
 0x813   :  { %v4613_v27 = vpop.f32.mrf.mxu1 }
 0x814   :  { %4630 = vmatmul.mubr.msk.bf16.vlgmr.msra.gmra.mxu0 %vm189_vm2, %v5014_v40  ;;  %v4350_v62 = vpack.c.bf16 %v4613_v27, %v4613_v27 }
 0x815   :  { %v1585_v13 = vpop.f32.mrf.mxu1  ;;  %4641 = vmatprep.mubr.msk.bf16.mxu0 %vm5228_vm0, %v5227_v0 }
 0x816   :  { %v4348_v43 = vpack.c.bf16 %v1585_v13, %v1585_v13  ;;  %v1883_v53 = vsel %vm193_vm1, %v4350_v62, 0 }
 0x817   :  { %v4614_v58 = vpop.f32.mrf.mxu1 }
 0x818   :  { %v1797_v52 = vsel %vm193_vm1, %v4348_v43, 0  ;;  %4636 = vmatmul.mubr.msk.bf16.vlgmr.msra.gmra.mxu1 %vm189_vm2, %v5015_v32  ;;  %v4351_v54 = vpack.c.bf16 %v4614_v58, %v4614_v58 }
 0x819   :  { %v1588_v35 = vpop.f32.mrf.mxu1  ;;  %4640 = vmatpush3.bf16.msra.mxu0 %v1797_v52  ;;  %4647 = vmatprep.mubr.msk.bf16.mxu1 %vm5228_vm0, %v5227_v0 }
 0x81a   :  { %v4349_v44 = vpack.c.bf16 %v1588_v35, %v1588_v35  ;;  %4651 = vmatprep.subr.bf16.mxu0 %v5227_v0  ;;  %v1926_v56 = vsel %vm193_vm1, %v4351_v54, 0 }
 0x81c   :  { %v1840_v42 = vsel %vm193_vm1, %v4349_v44, 0  ;;  %4642 = vmatmul.mubr.msk.bf16.vlgmr.msra.gmra.mxu0 %vm189_vm2, %v5016_v55 }
 0x81d   :  { %4646 = vmatpush3.bf16.msra.mxu1 %v1840_v42  ;;  %4652 = vmatpush3.bf16.msra.mxu0 %v1883_v53 }
 0x81e   :  { %4657 = vmatprep.subr.bf16.mxu1 %v5227_v0  ;;  %4653 = vmatprep.mubr.msk.bf16.mxu0 %vm5228_vm0, %v5227_v0 }
 0x81f   :  { %4663 = vmatprep.subr.bf16.mxu0 %v4895_v51 }
 0x820   :  { %4648 = vmatmul.mubr.msk.bf16.vlgmr.msra.gmra.mxu1 %vm189_vm2, %v5823_v28 }
 0x821   :  { %4658 = vmatpush3.bf16.msra.mxu1 %v1926_v56  ;;  %4659 = vmatprep.mubr.msk.bf16.mxu1 %vm5228_vm0, %v5227_v0 }
 0x822   :  { %4675 = vmatprep.subr.bf16.mxu1 %v4897_v61 }
 0x824   :  { %4654 = vmatmul.mubr.msk.bf16.vlgmr.msra.gmra.mxu0 %vm189_vm2, %v5018_v63 }
 0x825   :  { %4664 = vmatpush3.bf16.msra.mxu0 %v4895_v51  ;;  %4667 = vmatprep.mubr.msk.bf16.mxu0 %vm581_vm3, %v5755_v49 }
 0x826   :  { %4665 = vmatprep.subr.bf16.mxu0 %v4896_v14 }
 0x828   :  { %4660 = vmatmul.mubr.msk.bf16.vlgmr.msra.gmra.mxu1 %vm189_vm2, %v5838_v37 }
 0x829   :  { %4666 = vmatpush3.bf16.msra.mxu0 %v4896_v14  ;;  %4676 = vmatpush3.bf16.msra.mxu1 %v4897_v61 }
 0x82a   :  { %4679 = vmatprep.mubr.msk.bf16.mxu1 %vm581_vm3, %v856_v57  ;;  %4677 = vmatprep.subr.bf16.mxu1 %v4898_v1 }
 0x82c   :  { %4668 = vmatmul.mubr.msk.bf16.vlgmr.msra.gmra.mxu0 %vm581_vm3, %v5762_v47 }
 0x82d   :  { %4671 = vmatprep.mubr.msk.bf16.mxu0 %vm581_vm3, %v5775_v2  ;;  %4678 = vmatpush3.bf16.msra.mxu1 %v4898_v1 }
 0x82e   :  { %4697 = vmatprep.subr.bf16.mxu1 %v5227_v0 }
 0x830   :  { %4680 = vmatmul.mubr.msk.bf16.vlgmr.msra.gmra.mxu1 %vm581_vm3, %v857_v60 }
 0x831   :  { %4683 = vmatprep.mubr.msk.bf16.mxu1 %vm581_vm3, %v858_v34  ;;  %4698 = vmatpush3.bf16.msra.mxu1 %v5374_v10 }
 0x832   :  { %4703 = vmatprep.subr.bf16.mxu1 %v5227_v0 }
 0x834   :  { %4672 = vmatmul.mubr.msk.bf16.gmra.mxu0 %vm581_vm3, %v5782_v46 }
 0x838   :  { %4684 = vmatmul.mubr.msk.bf16.gmra.mxu1 %vm581_vm3, %v859_v22 }
 0x839   :  { %4699 = vmatprep.mubr.msk.bf16.mxu1 %vm5228_vm0, %v5227_v0 }
 0x8cc   :  { %v1661_v48 = vpop.f32.mrf.mxu0 }
 0x8cd   :  { %v5869_v4 = vadd.f32 %v4293_v12, %v1661_v48 }
 0x8ce   :  { %v4619_v57 = vpop.f32.mrf.mxu0 }
 0x8cf   :  { %v1982_v10 = vmul.f32 %v5869_v4, %v5869_v4 }
 0x8d0   :  { %v1664_v59 = vpop.f32.mrf.mxu0  ;;  %v1704_v60 = vpop.f32.mrf.mxu1 }
 0x8d1   :  { %v5873_v3 = vadd.f32 %v4293_v12, %v1704_v60  ;;  %v1991_v41 = vsel %vm1990_vm4, %v1982_v10, 0.0  ;;  %v4899_v59 = vld [vmem:[%s6475_s12] sm:$0xff]  }
 0x8d2   :  { %1992 = vadd.xlane.f32.xlu0 %v1991_v41  ;;  %v4620_v25 = vpop.f32.mrf.mxu0  ;;  %v4625_v34 = vpop.f32.mrf.mxu1  ;;  %4687 = vmatprep.subr.bf16.mxu0 %v4899_v59 }
 0x8d3   :  { %v1983_v38 = vmul.f32 %v5873_v3, %v5873_v3  ;;  %4688 = vmatpush3.bf16.msra.mxu0 %v4899_v59 }
 0x8d4   :  { %v1707_v22 = vpop.f32.mrf.mxu1  ;;  %v1747_v49 = vpop.f32.mrf.mxu0  ;;  %4709 = vmatprep.subr.bf16.mxu0 %v5227_v0 }
 0x8d5   :  { %v5878_v47 = vadd.f32 %v4293_v12, %v1747_v49  ;;  %v1994_v2 = vsel %vm1990_vm4, %v1983_v38, 0.0 }
 0x8d6   :  { %v4631_v16 = vpop.f32.mrf.mxu0  ;;  %1995 = vadd.xlane.f32.xlu1 %v1994_v2  ;;  %v4626_v7 = vpop.f32.mrf.mxu1 }
 0x8d7   :  { %v1984_v9 = vmul.f32 %v5878_v47, %v5878_v47 }
 0x8d8   :  { %v1750_v46 = vpop.f32.mrf.mxu0  ;;  %v1790_v50 = vpop.f32.mrf.mxu1 }
 0x8d9   :  { %v5883_v21 = vadd.f32 %v4293_v12, %v1790_v50  ;;  %v1997_v15 = vsel %vm1990_vm4, %v1984_v9, 0.0 }
 0x8da   :  { %1998 = vadd.xlane.f32.xlu0 %v1997_v15  ;;  %v4632_v8 = vpop.f32.mrf.mxu0  ;;  %v4637_v6 = vpop.f32.mrf.mxu1 }
 0x8db   :  { %v1985_v45 = vmul.f32 %v5883_v21, %v5883_v21 }
 0x8dc   :  { %v1793_v26 = vpop.f32.mrf.mxu1  ;;  %v1833_v5 = vpop.f32.mrf.mxu0 }
 0x8dd   :  { %v5888_v23 = vadd.f32 %v4293_v12, %v1833_v5  ;;  %v2000_v36 = vsel %vm1990_vm4, %v1985_v45, 0.0 }
 0x8de   :  { %v4643_v39 = vpop.f32.mrf.mxu0  ;;  %2001 = vadd.xlane.f32.xlu1 %v2000_v36  ;;  %v4638_v24 = vpop.f32.mrf.mxu1 }
 0x8df   :  { %v1986_v33 = vmul.f32 %v5888_v23, %v5888_v23 }
 0x8e0   :  { %v1836_v31 = vpop.f32.mrf.mxu0  ;;  %v1876_v27 = vpop.f32.mrf.mxu1 }
 0x8e1   :  { %v5893_v40 = vadd.f32 %v4293_v12, %v1876_v27  ;;  %v2003_v13 = vsel %vm1990_vm4, %v1986_v33, 0.0 }
 0x8e2   :  { %2004 = vadd.xlane.f32.xlu0 %v2003_v13  ;;  %v4644_v43 = vpop.f32.mrf.mxu0  ;;  %v4649_v58 = vpop.f32.mrf.mxu1 }
 0x8e3   :  { %v1987_v62 = vmul.f32 %v5893_v40, %v5893_v40 }
 0x8e4   :  { %v1879_v52 = vpop.f32.mrf.mxu1  ;;  %v1919_v32 = vpop.f32.mrf.mxu0 }
 0x8e5   :  { %v5898_v35 = vadd.f32 %v4293_v12, %v1919_v32  ;;  %v2006_v44 = vsel %vm1990_vm4, %v1987_v62, 0.0 }
 0x8e6   :  { %v4655_v51 = vpop.f32.mrf.mxu0  ;;  %2007 = vadd.xlane.f32.xlu1 %v2006_v44  ;;  %v4650_v53 = vpop.f32.mrf.mxu1 }
 0x8e7   :  { %v1988_v54 = vmul.f32 %v5898_v35, %v5898_v35 }
 0x8e8   :  { %v1922_v42 = vpop.f32.mrf.mxu0  ;;  %v1962_v55 = vpop.f32.mrf.mxu1 }
 0x8e9   :  { %v1981_v61 = vadd.f32 %v4293_v12, %v1962_v55  ;;  %v2009_v56 = vsel %vm1990_vm4, %v1988_v54, 0.0 }
 0x8ea   :  { %2010 = vadd.xlane.f32.xlu0 %v2009_v56  ;;  %v4656_v14 = vpop.f32.mrf.mxu0  ;;  %v4661_v63 = vpop.f32.mrf.mxu1 }
 0x8eb   :  { %v1989_v1 = vmul.f32 %v1981_v61, %v1981_v61 }
 0x8ec   :  { %v1965_v48 = vpop.f32.mrf.mxu1 }
 0x8ed   :  { %v2012_v57 = vsel %vm1990_vm4, %v1989_v1, 0.0 }
 0x8ee   :  { %2013 = vadd.xlane.f32.xlu1 %v2012_v57  ;;  %v4662_v10 = vpop.f32.mrf.mxu1 }
 0x95b   :  { %v1993_v12 = vpop.xlane.xlu0 %1992 }
 0x95c   :  { %v2015_v60 = vmax.f32 %v1993_v12, 1e-24  ;;  %v4311_v12 = vld [vmem:[%s6476_s13] ss:$0 sm:$0xff]  ;;  %s5229_s13 = smov 104  }
 0x95e   :  { %4964 = vrsqrt.f32 %v2015_v60 }
 0x95f   :  { %v1996_v41 = vpop.xlane.xlu1 %1995 }
 0x960   :  { %v2016_v25 = vmax.f32 %v1996_v41, 1e-24 }
 0x962   :  { %4966 = vrsqrt.f32 %v2016_v25 }
 0x963   :  { %v1999_v34 = vpop.xlane.xlu0 %1998 }
 0x964   :  { %v2017_v38 = vmax.f32 %v1999_v34, 1e-24 }
 0x966   :  { %4968 = vrsqrt.f32 %v2017_v38 }
 0x967   :  { %v2002_v22 = vpop.xlane.xlu1 %2001 }
 0x968   :  { %v2018_v49 = vmax.f32 %v2002_v22, 1e-24 }
 0x96a   :  { %4970 = vrsqrt.f32 %v2018_v49 }
 0x96b   :  { %v2005_v2 = vpop.xlane.xlu0 %2004  ;;  %v4965_v7 = vpop.eup %4964 }
 0x96c   :  { %v2019_v16 = vmax.f32 %v2005_v2, 1e-24  ;;  %v2031_v15 = vmul.f32 %v4965_v7, %v5869_v4 }
 0x96e   :  { %4972 = vrsqrt.f32 %v2019_v16 }
 0x96f   :  { %v4967_v9 = vpop.eup %4966  ;;  %v2008_v46 = vpop.xlane.xlu1 %2007 }
 0x970   :  { %v2020_v50 = vmax.f32 %v2008_v46, 1e-24  ;;  %v2032_v8 = vmul.f32 %v4967_v9, %v5873_v3 }
 0x972   :  { %4974 = vrsqrt.f32 %v2020_v50  ;;  %v2205_v6 = vpack.c.bf16 %v2032_v8, %v2031_v15 }
 0x973   :  { %v2011_v45 = vpop.xlane.xlu0 %2010  ;;  %v4969_v5 = vpop.eup %4968 }
 0x974   :  { %v2021_v26 = vmax.f32 %v2011_v45, 1e-24  ;;  %4689 = vmatprep.mubr.msk.bf16.mxu0 %vm1990_vm4, %v2205_v6  ;;  %v2033_v24 = vmul.f32 %v4969_v5, %v5878_v47 }
 0x976   :  { %4976 = vrsqrt.f32 %v2021_v26 }
 0x977   :  { %v4971_v36 = vpop.eup %4970  ;;  %v2014_v39 = vpop.xlane.xlu1 %2013 }
 0x978   :  { %v2034_v33 = vmul.f32 %v4971_v36, %v5883_v21  ;;  %v2022_v31 = vmax.f32 %v2014_v39, 1e-24 }
 0x97a   :  { %v2206_v27 = vpack.c.bf16 %v2034_v33, %v2033_v24  ;;  %4978 = vrsqrt.f32 %v2022_v31 }
 0x97b   :  { %v4973_v4 = vpop.eup %4972 }
 0x97c   :  { %4690 = vmatmul.mubr.msk.bf16.vlgmr.msra.gmra.mxu0 %vm1990_vm4, %v2206_v27  ;;  %v2035_v13 = vmul.f32 %v4973_v4, %v5888_v23 }
 0x97d   :  { %4710 = vmatpush3.bf16.msra.mxu0 %v5391_v17  ;;  %v4669_v17 = vpop.f32.mrf.mxu0 }
 0x97e   :  { %4721 = vmatprep.subr.bf16.mxu0 %v5227_v0 }
 0x97f   :  { %v4975_v3 = vpop.eup %4974  ;;  %v2085_v44 = vpop.f32.mrf.mxu0 }
 0x980   :  { %v2036_v43 = vmul.f32 %v4975_v3, %v5893_v40  ;;  %v4681_v40 = vpop.f32.mrf.mxu1 }
 0x981   :  { %v4670_v51 = vpop.f32.mrf.mxu0 }
 0x982   :  { %v2207_v58 = vpack.c.bf16 %v2036_v43, %v2035_v13  ;;  %v2174_v42 = vpop.f32.mrf.mxu1 }
 0x983   :  { %v4977_v47 = vpop.eup %4976  ;;  %v2088_v23 = vpop.f32.mrf.mxu0 }
 0x984   :  { %4693 = vmatprep.mubr.msk.bf16.mxu0 %vm1990_vm4, %v2207_v58  ;;  %v2037_v62 = vmul.f32 %v4977_v47, %v5898_v35  ;;  %v4682_v56 = vpop.f32.mrf.mxu1  ;;  %v2183_v35 = vadd.f32 %v4681_v40, %v4669_v17 }
 0x985   :  { %v4673_v53 = vpop.f32.mrf.mxu0  ;;  %v2186_v60 = vadd.f32 %v4682_v56, %v4670_v51 }
 0x986   :  { %v2177_v1 = vpop.f32.mrf.mxu1 }
 0x987   :  { %v4979_v21 = vpop.eup %4978  ;;  %v2101_v54 = vpop.f32.mrf.mxu0  ;;  %v2178_v41 = vadd.f32 %v2177_v1, %v2088_v23 }
 0x988   :  { %v2038_v52 = vmul.f32 %v4979_v21, %v1981_v61  ;;  %v2175_v61 = vadd.f32 %v2174_v42, %v2085_v44  ;;  %v4685_v34 = vpop.f32.mrf.mxu1 }
 0x989   :  { %v4674_v55 = vpop.f32.mrf.mxu0  ;;  %v2199_v26 = vadd.f32 %v4685_v34, %v4673_v53 }
 0x98a   :  { %v2208_v32 = vpack.c.bf16 %v2038_v52, %v2037_v62  ;;  %v2190_v9 = vpop.f32.mrf.mxu1 }
 0x98b   :  { %v2104_v14 = vpop.f32.mrf.mxu0  ;;  %v2191_v5 = vadd.f32 %v2190_v9, %v2101_v54 }
 0x98c   :  { %4694 = vmatmul.mubr.msk.bf16.gmra.mxu0 %vm1990_vm4, %v2208_v32  ;;  %v4686_v8 = vpop.f32.mrf.mxu1 }
 0x98d   :  { %4711 = vmatprep.mubr.msk.bf16.mxu0 %vm5228_vm0, %v5227_v0  ;;  %v2202_v27 = vadd.f32 %v4686_v8, %v4674_v55 }
 0x98e   :  { %v2193_v36 = vpop.f32.mrf.mxu1 }
 0x98f   :  { %v2194_v4 = vadd.f32 %v2193_v36, %v2104_v14 }
 0xa3c   :  { %v4691_v63 = vpop.f32.mrf.mxu0 }
 0xa3d   :  { %v2294_v57 = vadd.f32 %v4691_v63, %v2183_v35 }
 0xa3e   :  { %v2261_v48 = vpop.f32.mrf.mxu0 }
 0xa3f   :  { %v2292_v10 = vadd.f32 %v2261_v48, %v2175_v61  ;;  %v2308_v16 = vadd.f32 %v4311_v12, %v2294_v57 }
 0xa40   :  { %v4692_v59 = vpop.f32.mrf.mxu0 }
 0xa41   :  { %v2306_v25 = vadd.f32 %v4311_v12, %v2292_v10  ;;  %v2295_v22 = vadd.f32 %v4692_v59, %v2186_v60  ;;  %v2320_v46 = vsel %vm189_vm2, %v2308_v16, -inf }
 0xa42   :  { %v2264_v38 = vpop.f32.mrf.mxu0 }
 0xa43   :  { %v2293_v49 = vadd.f32 %v2264_v38, %v2178_v41  ;;  %v2314_v2 = vsel %vm189_vm2, %v2306_v25, -inf  ;;  %v2309_v15 = vadd.f32 %v4311_v12, %v2295_v22 }
 0xa44   :  { %2315 = vmax.xlane.f32.xlu0 %v2314_v2 }
 0xa45   :  { %v2307_v7 = vadd.f32 %v4311_v12, %v2293_v49  ;;  %v2323_v6 = vsel %vm189_vm2, %v2309_v15, -inf }
 0xa47   :  { %v2317_v50 = vsel %vm189_vm2, %v2307_v7, -inf }
 0xa48   :  { %2321 = vmax.xlane.f32.xlu0 %v2320_v46  ;;  %2318 = vmax.xlane.f32.xlu1 %v2317_v50 }
 0xa4c   :  { %2324 = vmax.xlane.f32.xlu1 %v2323_v6  ;;  %v4695_v45 = vpop.f32.mrf.mxu0 }
 0xa4d   :  { %v2298_v24 = vadd.f32 %v4695_v45, %v2199_v26 }
 0xa4e   :  { %v2277_v39 = vpop.f32.mrf.mxu0 }
 0xa4f   :  { %v2296_v33 = vadd.f32 %v2277_v39, %v2191_v5  ;;  %v2312_v21 = vadd.f32 %v4311_v12, %v2298_v24 }
 0xa50   :  { %v4696_v31 = vpop.f32.mrf.mxu0 }
 0xa51   :  { %v2310_v3 = vadd.f32 %v4311_v12, %v2296_v33  ;;  %v2299_v43 = vadd.f32 %v4696_v31, %v2202_v27  ;;  %v2332_v32 = vsel %vm189_vm2, %v2312_v21, -inf }
 0xa52   :  { %v2280_v13 = vpop.f32.mrf.mxu0 }
 0xa53   :  { %v2297_v58 = vadd.f32 %v2280_v13, %v2194_v4  ;;  %v2326_v47 = vsel %vm189_vm2, %v2310_v3, -inf  ;;  %v2313_v17 = vadd.f32 %v4311_v12, %v2299_v43 }
 0xa54   :  { %2327 = vmax.xlane.f32.xlu0 %v2326_v47 }
 0xa55   :  { %v2311_v62 = vadd.f32 %v4311_v12, %v2297_v58  ;;  %v2335_v44 = vsel %vm189_vm2, %v2313_v17, -inf }
 0xa57   :  { %v2329_v52 = vsel %vm189_vm2, %v2311_v62, -inf }
 0xa58   :  { %2330 = vmax.xlane.f32.xlu1 %v2329_v52  ;;  %2333 = vmax.xlane.f32.xlu0 %v2332_v32 }
 0xa5c   :  { %2336 = vmax.xlane.f32.xlu1 %v2335_v44 }
 0xacd   :  { %v2316_v51 = vpop.xlane.xlu0 %2315 }
 0xace   :  { %v2338_v23 = vsub.f32 %v2306_v25, %v2316_v51 }
 0xad0   :  { %v2346_v53 = vmul.f32 1.442695, %v2338_v23 }
 0xad1   :  { %v2319_v40 = vpop.xlane.xlu1 %2318  ;;  %v2322_v54 = vpop.xlane.xlu0 %2321 }
 0xad2   :  { %4980 = vpow2.f32 %v2346_v53  ;;  %v2339_v42 = vsub.f32 %v2307_v7, %v2319_v40  ;;  %v2340_v55 = vsub.f32 %v2308_v16, %v2322_v54 }
 0xad4   :  { %v2348_v56 = vmul.f32 1.442695, %v2339_v42  ;;  %v2350_v14 = vmul.f32 1.442695, %v2340_v55 }
 0xad5   :  { %v2325_v63 = vpop.xlane.xlu1 %2324 }
 0xad6   :  { %4982 = vpow2.f32 %v2348_v56  ;;  %v2341_v35 = vsub.f32 %v2309_v15, %v2325_v63 }
 0xad7   :  { %4984 = vpow2.f32 %v2350_v14 }
 0xad8   :  { %v2352_v61 = vmul.f32 1.442695, %v2341_v35 }
 0xada   :  { %4986 = vpow2.f32 %v2352_v61 }
 0xadd   :  { %v2328_v1 = vpop.xlane.xlu0 %2327 }
 0xade   :  { %v2342_v48 = vsub.f32 %v2310_v3, %v2328_v1 }
 0xadf   :  { %v4981_v57 = vpop.eup %4980 }
 0xae0   :  { %v2354_v10 = vmul.f32 1.442695, %v2342_v48  ;;  %v2362_v59 = vsel %vm189_vm2, %v4981_v57, 0.0 }
 0xae1   :  { %v2331_v12 = vpop.xlane.xlu1 %2330  ;;  %2363 = vadd.xlane.f32.xlu0 %v2362_v59  ;;  %v2334_v60 = vpop.xlane.xlu0 %2333 }
 0xae2   :  { %4988 = vpow2.f32 %v2354_v10  ;;  %v2343_v41 = vsub.f32 %v2311_v62, %v2331_v12  ;;  %v2344_v25 = vsub.f32 %v2312_v21, %v2334_v60 }
 0xae3   :  { %v4983_v34 = vpop.eup %4982 }
 0xae4   :  { %v4985_v38 = vpop.eup %4984  ;;  %v2356_v22 = vmul.f32 1.442695, %v2343_v41  ;;  %v2358_v49 = vmul.f32 1.442695, %v2344_v25  ;;  %v2365_v2 = vsel %vm189_vm2, %v4983_v34, 0.0 }
 0xae5   :  { %2366 = vadd.xlane.f32.xlu1 %v2365_v2  ;;  %v2337_v16 = vpop.xlane.xlu1 %2336  ;;  %v2368_v7 = vsel %vm189_vm2, %v4985_v38, 0.0 }
 0xae6   :  { %4990 = vpow2.f32 %v2356_v22  ;;  %v2345_v9 = vsub.f32 %v2313_v17, %v2337_v16  ;;  %2369 = vadd.xlane.f32.xlu0 %v2368_v7 }
 0xae7   :  { %v4987_v46 = vpop.eup %4986  ;;  %4992 = vpow2.f32 %v2358_v49 }
 0xae8   :  { %v2360_v50 = vmul.f32 1.442695, %v2345_v9  ;;  %v2371_v15 = vsel %vm189_vm2, %v4987_v46, 0.0 }
 0xae9   :  { %2372 = vadd.xlane.f32.xlu1 %v2371_v15 }
 0xaea   :  { %4994 = vpow2.f32 %v2360_v50 }
 0xaef   :  { %v4989_v8 = vpop.eup %4988 }
 0xaf0   :  { %v2374_v6 = vsel %vm189_vm2, %v4989_v8, 0.0 }
 0xaf1   :  { %2375 = vadd.xlane.f32.xlu0 %v2374_v6 }
 0xaf3   :  { %v4991_v45 = vpop.eup %4990 }
 0xaf4   :  { %v4993_v26 = vpop.eup %4992  ;;  %v2377_v5 = vsel %vm189_vm2, %v4991_v45, 0.0 }
 0xaf5   :  { %2378 = vadd.xlane.f32.xlu1 %v2377_v5  ;;  %v2380_v36 = vsel %vm189_vm2, %v4993_v26, 0.0 }
 0xaf6   :  { %2381 = vadd.xlane.f32.xlu0 %v2380_v36 }
 0xaf7   :  { %v4995_v39 = vpop.eup %4994 }
 0xaf8   :  { %v2383_v24 = vsel %vm189_vm2, %v4995_v39, 0.0 }
 0xaf9   :  { %2384 = vadd.xlane.f32.xlu1 %v2383_v24 }
 0xb6a   :  { %v2364_v33 = vpop.xlane.xlu0 %2363 }
 0xb6b   :  { %4996 = vrcp.f32 %v2364_v33 }
 0xb6e   :  { %v2367_v31 = vpop.xlane.xlu1 %2366 }
 0xb6f   :  { %4998 = vrcp.f32 %v2367_v31  ;;  %v2370_v27 = vpop.xlane.xlu0 %2369 }
 0xb70   :  { %5000 = vrcp.f32 %v2370_v27 }
 0xb72   :  { %v2373_v4 = vpop.xlane.xlu1 %2372 }
 0xb73   :  { %5002 = vrcp.f32 %v2373_v4 }
 0xb78   :  { %v4997_v3 = vpop.eup %4996 }
 0xb79   :  { %v5943_v13 = vmul.f32 %v4997_v3, %v4981_v57 }
 0xb7a   :  { %v2376_v43 = vpop.xlane.xlu0 %2375 }
 0xb7b   :  { %2410 = vxpose.xlu0.b32.start.end [1/1] (short) (narrow) %v5943_v13, 8  ;;  %5004 = vrcp.f32 %v2376_v43  ;;  %v4139_v54 = vrot.slane %v5943_v13, 6  ;;  %v4122_v31 = vrot.slane %v5943_v13, 5 }
 0xb7c   :  { %v4999_v58 = vpop.eup %4998 }
 0xb7d   :  { %v5946_v47 = vmul.f32 %v4999_v58, %v4983_v34  ;;  %v5001_v21 = vpop.eup %5000 }
 0xb7e   :  { %v2379_v62 = vpop.xlane.xlu1 %2378  ;;  %v5949_v17 = vmul.f32 %v5001_v21, %v4985_v38  ;;  %v4156_v38 = vrot.slane %v5943_v13, 7  ;;  %v4054_v21 = vrot.slane %v5943_v13, 1 }
 0xb7f   :  { %5006 = vrcp.f32 %v2379_v62  ;;  %v2382_v52 = vpop.xlane.xlu0 %2381  ;;  %2442 = vxpose.xlu1.b32.start.end [1/1] (short) (narrow) %v5946_v47, 8  ;;  %v4140_v53 = vrot.slane %v5946_v47, 5  ;;  %v4157_v22 = vrot.slane %v5946_v47, 6  ;;  %v4037_v43 = vrot.slane %v5946_v47, 7 }
 0xb80   :  { %v5003_v32 = vpop.eup %5002  ;;  %5008 = vrcp.f32 %v2382_v52  ;;  %v4142_v10 = vrot.slane %v5949_v17, 4  ;;  %v4159_v2 = vrot.slane %v5949_v17, 5  ;;  %v4125_v27 = vrot.slane %v5949_v17, 3 }
 0xb81   :  { %v5951_v44 = vmul.f32 %v5003_v32, %v4987_v46  ;;  %v4141_v55 = vsel %vm3739_vm5, %v4140_v53, %v4139_v54  ;;  %v4158_v46 = vsel %vm3739_vm5, %v4157_v22, %v4156_v38  ;;  %v4056_v62 = vrot.slane %v5949_v17, 7 }
 0xb82   :  { %v2385_v51 = vpop.xlane.xlu1 %2384  ;;  %v4143_v12 = vsel %vm3742_vm6, %v4142_v10, %v4141_v55  ;;  %v4055_v32 = vsel %vm3739_vm5, %v5946_v47, %v4054_v21  ;;  %v4088_v55 = vrot.slane %v5943_v13, 3 }
 0xb83   :  { %5010 = vrcp.f32 %v2385_v51  ;;  %v4868_v23 = vpack.i.bf16 %v5951_v44, %v5949_v17  ;;  %v4144_v59 = vrot.slane %v5951_v44, 3  ;;  %v4161_v16 = vrot.slane %v5951_v44, 4 }
 0xb84   :  { %v4127_v3 = vrot.slane %v5951_v44, 2  ;;  %v4039_v51 = vrot.slane %v5949_v17, 6  ;;  %v4041_v38 = vrot.slane %v5951_v44, 5 }
 0xb85   :  { %4869 = vxpose.xlu0.b32.start.end [1/1] (short) (narrow) %v4868_v23, 8  ;;  %v4145_v60 = vsel %vm3745_vm7, %v4144_v59, %v4143_v12  ;;  %v4089_v23 = vrot.slane %v5946_v47, 2 }
 0xb88   :  { %v5005_v40 = vpop.eup %5004 }
 0xb89   :  { %v5958_v56 = vmul.f32 %v5005_v40, %v4989_v8  ;;  %v4160_v8 = vsel %vm3742_vm6, %v4159_v2, %v4158_v46  ;;  %v4038_v40 = vsel %vm3739_vm5, %v4037_v43, %v5943_v13  ;;  %v4072_v2 = vrot.slane %v5946_v47, 1 }
 0xb8a   :  { %v4040_v12 = vsel %vm3742_vm6, %v4039_v51, %v4038_v40 }
 0xb8b   :  { %v4146_v41 = vrot.slane %v5958_v56, 2  ;;  %v4163_v7 = vrot.slane %v5958_v56, 3  ;;  %v4129_v58 = vrot.slane %v5958_v56, 1  ;;  %v4060_v59 = vrot.slane %v5958_v56, 5 }
 0xb8c   :  { %v5007_v42 = vpop.eup %5006  ;;  %v4094_v46 = vrot.slane %v5958_v56, 7 }
 0xb8d   :  { %v5960_v14 = vmul.f32 %v5007_v42, %v4991_v45  ;;  %v5009_v63 = vpop.eup %5008  ;;  %v4147_v49 = vsel %vm3748_vm8, %v4146_v41, %v4145_v60  ;;  %v4058_v42 = vrot.slane %v5951_v44, 6  ;;  %v4090_v60 = vsel %vm3739_vm5, %v4089_v23, %v4088_v55 }
 0xb8e   :  { %v5964_v1 = vmul.f32 %v5009_v63, %v4993_v26  ;;  %v4162_v26 = vsel %vm3745_vm7, %v4161_v16, %v4160_v8  ;;  %v4057_v63 = vsel %vm3742_vm6, %v4056_v62, %v4055_v32  ;;  %v4075_v16 = vrot.slane %v5951_v44, 7 }
 0xb8f   :  { %v4875_v35 = vpack.i.bf16 %v5960_v14, %v5958_v56  ;;  %v4148_v25 = vrot.slane %v5960_v14, 1  ;;  %v4165_v50 = vrot.slane %v5960_v14, 2  ;;  %v4164_v5 = vsel %vm3748_vm8, %v4163_v7, %v4162_v26 }
 0xb90   :  { %v5011_v61 = vpop.eup %5010  ;;  %v4167_v6 = vrot.slane %v5964_v1, 1  ;;  %v4132_v10 = vrot.slane %v5964_v1, 7  ;;  %v4059_v22 = vsel %vm3745_vm7, %v4058_v42, %v4057_v63  ;;  %v4045_v7 = vrot.slane %v5960_v14, 3 }
 0xb91   :  { %v5966_v48 = vmul.f32 %v5011_v61, %v4995_v39  ;;  %4876 = vxpose.xlu0.b32.start.end [1/1] (short) (narrow) %v4875_v35, 8  ;;  %v4149_v9 = vsel %vm3751_vm9, %v4148_v25, %v4147_v49  ;;  %v4166_v36 = vsel %vm3751_vm9, %v4165_v50, %v4164_v5  ;;  %v4123_v39 = vrot.slane %v5946_v47, 4 }
 0xb92   :  { %v4150_v15 = vsel %vm3754_vm10, %v5964_v1, %v4149_v9  ;;  %v4168_v24 = vsel %vm3754_vm10, %v4167_v6, %v4166_v36  ;;  %v4091_v35 = vrot.slane %v5949_v17, 1  ;;  %v4071_v61 = vrot.slane %v5943_v13, 2 }
 0xb93   :  { %v4882_v57 = vpack.i.bf16 %v5966_v48, %v5964_v1  ;;  %v4151_v34 = vrot.slane %v5966_v48, 7  ;;  %v6000_v33 = vsel %vm3757_vm11, %v5966_v48, %v4168_v24  ;;  %v4124_v4 = vsel %vm3739_vm5, %v4123_v39, %v4122_v31 }
 0xb94   :  { %v4126_v52 = vsel %vm3742_vm6, %v4125_v27, %v4124_v4  ;;  %v4134_v25 = vrot.slane %v5966_v48, 6  ;;  %v4043_v49 = vrot.slane %v5958_v56, 4  ;;  %v4092_v9 = vsel %vm3742_vm6, %v4091_v35, %v4090_v60 }
 0xb95   :  { %4883 = vxpose.xlu1.b32.start.end [1/1] (short) (narrow) %v4882_v57, 8  ;;  %v5991_v45 = vsel %vm3757_vm11, %v4151_v34, %v4150_v15  ;;  %v4128_v53 = vsel %vm3745_vm7, %v4127_v3, %v4126_v52  ;;  %v4105_v57 = vrot.slane %v5943_v13, 4  ;;  %v4062_v34 = vrot.slane %v5960_v14, 4 }
 0xb96   :  { %v4130_v54 = vsel %vm3748_vm8, %v4129_v58, %v4128_v53  ;;  %v4106_v50 = vrot.slane %v5946_v47, 3  ;;  %v4061_v8 = vsel %vm3748_vm8, %v4060_v59, %v4059_v22  ;;  %v4064_v6 = vrot.slane %v5964_v1, 3 }
 0xb97   :  { %v4131_v41 = vsel %vm3751_vm9, %v5960_v14, %v4130_v54  ;;  %v4096_v26 = vrot.slane %v5960_v14, 6  ;;  %v4063_v36 = vsel %vm3751_vm9, %v4062_v34, %v4061_v8  ;;  %v4066_v39 = vrot.slane %v5966_v48, 2 }
 0xb98   :  { %v4133_v15 = vsel %vm3754_vm10, %v4132_v10, %v4131_v41  ;;  %v4042_v24 = vsel %vm3745_vm7, %v4041_v38, %v4040_v12  ;;  %v4093_v27 = vsel %vm3745_vm7, %v5951_v44, %v4092_v9  ;;  %v4073_v4 = vsel %vm3739_vm5, %v4072_v2, %v4071_v61 }
 0xb99   :  { %v4135_v5 = vsel %vm3757_vm11, %v4134_v25, %v4133_v15  ;;  %v4044_v31 = vsel %vm3748_vm8, %v4043_v49, %v4042_v24  ;;  %v4077_v3 = vrot.slane %v5958_v56, 6  ;;  %v4047_v58 = vrot.slane %v5964_v1, 2 }
 0xb9a   :  { %v4046_v43 = vsel %vm3751_vm9, %v4045_v7, %v4044_v31  ;;  %v4095_v21 = vsel %vm3748_vm8, %v4094_v46, %v4093_v27  ;;  %v4098_v62 = vrot.slane %v5964_v1, 5  ;;  %v4065_v52 = vsel %vm3754_vm10, %v4064_v6, %v4063_v36 }
 0xb9b   :  { %v4049_v32 = vrot.slane %v5966_v48, 1  ;;  %v4097_v51 = vsel %vm3751_vm9, %v4096_v26, %v4095_v21  ;;  %v4079_v23 = vrot.slane %v5960_v14, 5  ;;  %v4067_v53 = vsel %vm3757_vm11, %v4066_v39, %v4065_v52  ;;  %v5020_v52 = vld [vmem:[#allocation2] sm:$0xf] }
 0xb9c   :  { %v4100_v40 = vrot.slane %v5966_v48, 4  ;;  %v4074_v54 = vsel %vm3742_vm6, %v5949_v17, %v4073_v4  ;;  %v4108_v42 = vrot.slane %v5949_v17, 2  ;;  %v4107_v63 = vsel %vm3739_vm5, %v4106_v50, %v4105_v57 }
 0xb9d   :  { %v4076_v55 = vsel %vm3745_vm7, %v4075_v16, %v4074_v54  ;;  %v4110_v35 = vrot.slane %v5951_v44, 1  ;;  %v4048_v61 = vsel %vm3754_vm10, %v4047_v58, %v4046_v43  ;;  %v4099_v10 = vsel %vm3754_vm10, %v4098_v62, %v4097_v51  ;;  %v5021_v51 = vld [vmem:[#allocation2 + $0x4] sm:$0xf]  ;;  %v5024_v54 = vld [vmem:[#allocation2 + $0x10] sm:$0xf] }
 0xb9e   :  { %v4078_v59 = vsel %vm3748_vm8, %v4077_v3, %v4076_v55  ;;  %v4081_v12 = vrot.slane %v5964_v1, 4  ;;  %v4050_v60 = vsel %vm3757_vm11, %v4049_v32, %v4048_v61  ;;  %v4083_v25 = vrot.slane %v5966_v48, 3 }
 0xb9f   :  { %v4080_v41 = vsel %vm3751_vm9, %v4079_v23, %v4078_v59  ;;  %v4113_v34 = vrot.slane %v5960_v14, 7  ;;  %v4101_v57 = vsel %vm3757_vm11, %v4100_v40, %v4099_v10  ;;  %v4109_v38 = vsel %vm3742_vm6, %v4108_v42, %v4107_v63  ;;  %v5025_v63 = vld [vmem:[#allocation2 + $0x18] sm:$0xf] }
 0xba0   :  { %v4111_v22 = vsel %vm3745_vm7, %v4110_v35, %v4109_v38  ;;  %v4082_v49 = vsel %vm3754_vm10, %v4081_v12, %v4080_v41  ;;  %v4115_v16 = vrot.slane %v5964_v1, 6  ;;  %v4117_v46 = vrot.slane %v5966_v48, 5 }
 0xba1   :  { %v4112_v2 = vsel %vm3748_vm8, %v5958_v56, %v4111_v22  ;;  %v4084_v7 = vsel %vm3757_vm11, %v4083_v25, %v4082_v49  ;;  %v3018_v32 = vsel %vm193_vm1, %v5020_v52, 0  ;;  %v3186_v42 = vsel %vm193_vm1, %v5024_v54, 0 }
 0xba2   :  { %v4114_v9 = vsel %vm3751_vm9, %v4113_v34, %v4112_v2  ;;  %v3228_v55 = vsel %vm193_vm1, %v5823_v28, 0  ;;  %v3270_v35 = vsel %vm193_vm1, %v5025_v63, 0  ;;  %v3312_v28 = vsel %vm193_vm1, %v5838_v37, 0 }
 0xba3   :  { %v4116_v50 = vsel %vm3754_vm10, %v4115_v16, %v4114_v9  ;;  %v2402_v61 = vpack.c.bf16 %v5943_v13, %v5943_v13  ;;  %v2403_v37 = vpack.c.bf16 %v5946_v47, %v5946_v47 }
 0xba4   :  { %v4118_v15 = vsel %vm3757_vm11, %v4117_v46, %v4116_v50 }
 0xba5   :  { %v3366_v10 = vsel %vm193_vm1, %v2402_v61, 0  ;;  %v3412_v59 = vsel %vm193_vm1, %v2403_v37, 0 }
 0xbb3   :  { %4136 = vrot.lane.b32.xlu1 %v4135_v5, %s5229_s13 }
 0xbb7   :  { %4068 = vrot.lane.b32.xlu1 %v4067_v53, %s5230_s17  ;;  %v5023_v53 = vld [vmem:[#allocation2 + $0xc] sm:$0xf] }
 0xbb8   :  { %v3144_v40 = vsel %vm193_vm1, %v5023_v53, 0 }
 0xbba   :  { %4051 = vrot.lane.b32.xlu0 %v4050_v60, %s5220_s23 }
 0xbbb   :  { %4102 = vrot.lane.b32.xlu1 %v4101_v57, %s5231_s18 }
 0xbbe   :  { %4085 = vrot.lane.b32.xlu0 %v4084_v7, %s5232_s22 }
 0xbc2   :  { %4119 = vrot.lane.b32.xlu0 %v4118_v15, %s5233_s1 }
 0xbf7   :  { %v2426_v8 = vpop.trf.xlu0 }
 0xbf8   :  { %v2666_v6 = vpack.c.bf16 %v2426_v8, %v2426_v8 }
 0xbfa   :  { %4700 = vmatmul.mubr.msk.bf16.vlgmr.msra.gmra.mxu1 %vm189_vm2, %v2666_v6 }
 0xbfb   :  { %v2458_v26 = vpop.trf.xlu1  ;;  %4704 = vmatpush3.bf16.msra.mxu1 %v5377_v11  ;;  %4705 = vmatprep.mubr.msk.bf16.mxu1 %vm5228_vm0, %v5227_v0 }
 0xbfc   :  { %4715 = vmatprep.subr.bf16.mxu1 %v5227_v0  ;;  %v2667_v5 = vpack.c.bf16 %v2458_v26, %v2458_v26 }
 0xc01   :  { %v4870_v36 = vpop.trf.xlu0 }
 0xc02   :  { %4706 = vmatmul.mubr.msk.bf16.vlgmr.msra.gmra.mxu1 %vm189_vm2, %v2667_v5  ;;  %v4874_v39 = vunpack.i.h.bf16 %v4870_v36  ;;  %v4871_v24 = vunpack.i.l.bf16 %v4870_v36 }
 0xc03   :  { %4716 = vmatpush3.bf16.msra.mxu1 %v5394_v18  ;;  %4717 = vmatprep.mubr.msk.bf16.mxu1 %vm5228_vm0, %v5227_v0 }
 0xc04   :  { %v2668_v31 = vpack.c.bf16 %v4871_v24, %v4871_v24  ;;  %4727 = vmatprep.subr.bf16.mxu1 %v5227_v0  ;;  %v2669_v11 = vpack.c.bf16 %v4874_v39, %v4874_v39 }
 0xc06   :  { %4712 = vmatmul.mubr.msk.bf16.vlgmr.msra.gmra.mxu0 %vm189_vm2, %v2668_v31 }
 0xc07   :  { %4722 = vmatpush3.bf16.msra.mxu0 %v5401_v19  ;;  %4723 = vmatprep.mubr.msk.bf16.mxu0 %vm5228_vm0, %v5227_v0 }
 0xc08   :  { %4733 = vmatprep.subr.bf16.mxu0 %v5227_v0 }
 0xc0a   :  { %4718 = vmatmul.mubr.msk.bf16.vlgmr.msra.gmra.mxu1 %vm189_vm2, %v2669_v11 }
 0xc0b   :  { %4728 = vmatpush3.bf16.msra.mxu1 %v5404_v20  ;;  %4729 = vmatprep.mubr.msk.bf16.mxu1 %vm5228_vm0, %v5227_v0 }
 0xc0c   :  { %4739 = vmatprep.subr.bf16.mxu1 %v5227_v0 }
 0xc0d   :  { %v4877_v18 = vpop.trf.xlu0 }
 0xc0e   :  { %v4881_v27 = vunpack.i.h.bf16 %v4877_v18  ;;  %v4878_v4 = vunpack.i.l.bf16 %v4877_v18 }
 0xc10   :  { %v2671_v3 = vpack.c.bf16 %v4881_v27, %v4881_v27  ;;  %v2670_v43 = vpack.c.bf16 %v4878_v4, %v4878_v4 }
 0xc11   :  { %v4884_v19 = vpop.trf.xlu1 }
 0xc12   :  { %4724 = vmatmul.mubr.msk.bf16.vlgmr.msra.gmra.mxu0 %vm189_vm2, %v2670_v43  ;;  %4730 = vmatmul.mubr.msk.bf16.vlgmr.msra.gmra.mxu1 %vm189_vm2, %v2671_v3  ;;  %v4888_v58 = vunpack.i.h.bf16 %v4884_v19  ;;  %v4885_v21 = vunpack.i.l.bf16 %v4884_v19 }
 0xc13   :  { %4734 = vmatpush3.bf16.msra.mxu0 %v5441_v29  ;;  %4740 = vmatpush3.bf16.msra.mxu1 %v5444_v30  ;;  %v3060_v29 = vsel %vm193_vm1, %v5021_v51, 0  ;;  %v5022_v30 = vld [vmem:[#allocation2 + $0x8] sm:$0xf] }
 0xc14   :  { %4735 = vmatprep.mubr.msk.bf16.mxu0 %vm5228_vm0, %v5227_v0  ;;  %4741 = vmatprep.mubr.msk.bf16.mxu1 %vm5228_vm0, %v5227_v0  ;;  %v2673_v20 = vpack.c.bf16 %v4888_v58, %v4888_v58  ;;  %v2672_v62 = vpack.c.bf16 %v4885_v21, %v4885_v21  ;;  %v3102_v23 = vsel %vm193_vm1, %v5022_v30, 0 }
 0xc15   :  { %4745 = vmatprep.subr.bf16.mxu0 %v5227_v0  ;;  %4751 = vmatprep.subr.bf16.mxu1 %v5227_v0 }
 0xc1a   :  { %4736 = vmatmul.mubr.msk.bf16.vlgmr.msra.gmra.mxu0 %vm189_vm2, %v2672_v62  ;;  %4742 = vmatmul.mubr.msk.bf16.vlgmr.msra.gmra.mxu1 %vm189_vm2, %v2673_v20 }
 0xc1b   :  { %4746 = vmatpush3.bf16.msra.mxu0 %v3018_v32  ;;  %4752 = vmatpush3.bf16.msra.mxu1 %v3060_v29 }
 0xc1c   :  { %4747 = vmatprep.mubr.msk.bf16.mxu0 %vm5228_vm0, %v5227_v0  ;;  %4753 = vmatprep.mubr.msk.bf16.mxu1 %vm5228_vm0, %v5227_v0 }
 0xc1d   :  { %4757 = vmatprep.subr.bf16.mxu0 %v5227_v0  ;;  %4763 = vmatprep.subr.bf16.mxu1 %v5227_v0 }
 0xc22   :  { %4748 = vmatmul.mubr.msk.bf16.vlgmr.msra.gmra.mxu0 %vm189_vm2, %v2666_v6  ;;  %4754 = vmatmul.mubr.msk.bf16.vlgmr.msra.gmra.mxu1 %vm189_vm2, %v2667_v5 }
 0xc23   :  { %4758 = vmatpush3.bf16.msra.mxu0 %v3102_v23  ;;  %4764 = vmatpush3.bf16.msra.mxu1 %v3144_v40 }
 0xc24   :  { %4759 = vmatprep.mubr.msk.bf16.mxu0 %vm5228_vm0, %v5227_v0  ;;  %4765 = vmatprep.mubr.msk.bf16.mxu1 %vm5228_vm0, %v5227_v0 }
 0xc25   :  { %4769 = vmatprep.subr.bf16.mxu0 %v5227_v0  ;;  %4775 = vmatprep.subr.bf16.mxu1 %v5227_v0 }
 0xc2a   :  { %4760 = vmatmul.mubr.msk.bf16.vlgmr.msra.gmra.mxu0 %vm189_vm2, %v2668_v31  ;;  %4766 = vmatmul.mubr.msk.bf16.vlgmr.msra.gmra.mxu1 %vm189_vm2, %v2669_v11 }
 0xc2b   :  { %4770 = vmatpush3.bf16.msra.mxu0 %v3186_v42  ;;  %4776 = vmatpush3.bf16.msra.mxu1 %v3228_v55 }
 0xc2c   :  { %4771 = vmatprep.mubr.msk.bf16.mxu0 %vm5228_vm0, %v5227_v0  ;;  %4777 = vmatprep.mubr.msk.bf16.mxu1 %vm5228_vm0, %v5227_v0 }
 0xc2d   :  { %4781 = vmatprep.subr.bf16.mxu0 %v5227_v0  ;;  %4787 = vmatprep.subr.bf16.mxu1 %v5227_v0 }
 0xc32   :  { %4772 = vmatmul.mubr.msk.bf16.vlgmr.msra.gmra.mxu0 %vm189_vm2, %v2670_v43  ;;  %4778 = vmatmul.mubr.msk.bf16.vlgmr.msra.gmra.mxu1 %vm189_vm2, %v2671_v3 }
 0xc33   :  { %4782 = vmatpush3.bf16.msra.mxu0 %v3270_v35  ;;  %4788 = vmatpush3.bf16.msra.mxu1 %v3312_v28 }
 0xc34   :  { %4783 = vmatprep.mubr.msk.bf16.mxu0 %vm5228_vm0, %v5227_v0  ;;  %4789 = vmatprep.mubr.msk.bf16.mxu1 %vm5228_vm0, %v5227_v0 }
 0xc35   :  { %4793 = vmatprep.subr.bf16.mxu0 %v5227_v0  ;;  %4799 = vmatprep.subr.bf16.mxu1 %v5227_v0 }
 0xc3a   :  { %4784 = vmatmul.mubr.msk.bf16.vlgmr.msra.gmra.mxu0 %vm189_vm2, %v2672_v62  ;;  %4790 = vmatmul.mubr.msk.bf16.vlgmr.msra.gmra.mxu1 %vm189_vm2, %v2673_v20 }
 0xc3b   :  { %4794 = vmatpush3.bf16.msra.mxu0 %v3366_v10  ;;  %4800 = vmatpush3.bf16.msra.mxu1 %v3412_v59 }
 0xc3c   :  { %4795 = vmatprep.mubr.msk.bf16.mxu0 %vm5228_vm0, %v5227_v0  ;;  %4801 = vmatprep.mubr.msk.bf16.mxu1 %vm5228_vm0, %v5227_v0 }
 0xc3d   :  { %4805 = vmatprep.subr.bf16.mxu0 %v5227_v0  ;;  %4811 = vmatprep.subr.bf16.mxu1 %v5227_v0 }
 0xcba   :  { %v6179_v13 = vpop.f32.mrf.mxu1 }
 0xcbb   :  { %v3811_v41 = vrot.slane %v6179_v13, 4  ;;  %v3777_v34 = vrot.slane %v6179_v13, 2  ;;  %v3860_v57 = vrot.slane %v6179_v13, 7  ;;  %v3843_v49 = vrot.slane %v6179_v13, 6 }
 0xcbc   :  { %v4701_v47 = vpop.f32.mrf.mxu1  ;;  %v3794_v2 = vrot.slane %v6179_v13, 3 }
 0xcbe   :  { %v2714_v12 = vpop.f32.mrf.mxu1 }
 0xcc0   :  { %v4702_v60 = vpop.f32.mrf.mxu1 }
 0xcc1   :  { %v3826_v60 = vrot.slane %v6179_v13, 5 }
 0xcc2   :  { %v2754_v25 = vpop.f32.mrf.mxu1 }
 0xcc3   :  { %v3738_v38 = vrot.slane %v2754_v25, 7  ;;  %v3812_v22 = vrot.slane %v2754_v25, 3  ;;  %v3778_v7 = vrot.slane %v2754_v25, 1  ;;  %v3861_v9 = vrot.slane %v2754_v25, 6 }
 0xcc4   :  { %v4707_v16 = vpop.f32.mrf.mxu1  ;;  %v3844_v46 = vrot.slane %v2754_v25, 5  ;;  %v3795_v50 = vrot.slane %v2754_v25, 2  ;;  %v3827_v63 = vrot.slane %v2754_v25, 4 }
 0xcc5   :  { %v3813_v15 = vsel %vm3739_vm5, %v3812_v22, %v3811_v41  ;;  %v3740_v8 = vsel %vm3739_vm5, %v3738_v38, %v6179_v13  ;;  %v3779_v5 = vsel %vm3739_vm5, %v3778_v7, %v3777_v34  ;;  %v3862_v36 = vsel %vm3739_vm5, %v3861_v9, %v3860_v57 }
 0xcc6   :  { %v2757_v6 = vpop.f32.mrf.mxu1  ;;  %v2797_v26 = vpop.f32.mrf.mxu0  ;;  %v3845_v39 = vsel %vm3739_vm5, %v3844_v46, %v3843_v49  ;;  %v3796_v24 = vsel %vm3739_vm5, %v3795_v50, %v3794_v2  ;;  %v3760_v34 = vrot.slane %v6179_v13, 1  ;;  %v3828_v38 = vsel %vm3739_vm5, %v3827_v63, %v3826_v60 }
 0xcc7   :  { %v3814_v31 = vrot.slane %v2797_v26, 2  ;;  %v3741_v11 = vrot.slane %v2797_v26, 6  ;;  %v3780_v4 = vsel %vm3742_vm6, %v2797_v26, %v3779_v5  ;;  %v3863_v3 = vrot.slane %v2797_v26, 5 }
 0xcc8   :  { %v4708_v18 = vpop.f32.mrf.mxu1  ;;  %v4713_v27 = vpop.f32.mrf.mxu0  ;;  %v3846_v43 = vrot.slane %v2797_v26, 4  ;;  %v3797_v19 = vrot.slane %v2797_v26, 1  ;;  %v3829_v35 = vrot.slane %v2797_v26, 3  ;;  %v3762_v10 = vrot.slane %v2797_v26, 7 }
 0xcc9   :  { %v3815_v58 = vsel %vm3742_vm6, %v3814_v31, %v3813_v15  ;;  %v3743_v21 = vsel %vm3742_vm6, %v3741_v11, %v3740_v8  ;;  %v3864_v52 = vsel %vm3742_vm6, %v3863_v3, %v3862_v36  ;;  %v3761_v22 = vsel %vm3739_vm5, %v2754_v25, %v3760_v34 }
 0xcca   :  { %v2840_v20 = vpop.f32.mrf.mxu1  ;;  %v2800_v62 = vpop.f32.mrf.mxu0  ;;  %v3847_v32 = vsel %vm3742_vm6, %v3846_v43, %v3845_v39  ;;  %v3798_v51 = vsel %vm3742_vm6, %v3797_v19, %v3796_v24  ;;  %v3830_v7 = vsel %vm3742_vm6, %v3829_v35, %v3828_v38  ;;  %v3763_v9 = vsel %vm3742_vm6, %v3762_v10, %v3761_v22 }
 0xccb   :  { %v3816_v29 = vrot.slane %v2840_v20, 1  ;;  %v3744_v30 = vrot.slane %v2840_v20, 5  ;;  %v3781_v40 = vrot.slane %v2840_v20, 7  ;;  %v3865_v54 = vrot.slane %v2840_v20, 4 }
 0xccc   :  { %v4719_v23 = vpop.f32.mrf.mxu1  ;;  %v4714_v53 = vpop.f32.mrf.mxu0  ;;  %v3848_v42 = vrot.slane %v2840_v20, 3  ;;  %v3799_v55 = vsel %vm3745_vm7, %v2840_v20, %v3798_v51  ;;  %v3831_v41 = vrot.slane %v2840_v20, 2  ;;  %v3764_v49 = vrot.slane %v2840_v20, 6 }
 0xccd   :  { %v3817_v28 = vsel %vm3745_vm7, %v3816_v29, %v3815_v58  ;;  %v3746_v61 = vsel %vm3745_vm7, %v3744_v30, %v3743_v21  ;;  %v3782_v59 = vsel %vm3745_vm7, %v3781_v40, %v3780_v4  ;;  %v3866_v47 = vsel %vm3745_vm7, %v3865_v54, %v3864_v52 }
 0xcce   :  { %v2843_v37 = vpop.f32.mrf.mxu1  ;;  %v3849_v12 = vsel %vm3745_vm7, %v3848_v42, %v3847_v32  ;;  %v3832_v46 = vsel %vm3745_vm7, %v3831_v41, %v3830_v7  ;;  %v3765_v39 = vsel %vm3745_vm7, %v3764_v49, %v3763_v9  ;;  %v2404_v51 = vpack.c.bf16 %v5949_v17, %v5949_v17 }
 0xccf   :  { %v2405_v54 = vpack.c.bf16 %v5951_v44, %v5951_v44  ;;  %v2406_v17 = vpack.c.bf16 %v5958_v56, %v5958_v56 }
 0xcd0   :  { %v4720_v57 = vpop.f32.mrf.mxu1 }
 0xcd2   :  { %v2883_v2 = vpop.f32.mrf.mxu0  ;;  %v6209_v16 = vpop.f32.mrf.mxu1 }
 0xcd3   :  { %v3833_v50 = vrot.slane %v2883_v2, 1  ;;  %v3766_v15 = vrot.slane %v2883_v2, 5  ;;  %v3818_v8 = vsel %vm3748_vm8, %v2883_v2, %v3817_v28  ;;  %v3819_v26 = vrot.slane %v6209_v16, 7 }
 0xcd4   :  { %v4725_v13 = vpop.f32.mrf.mxu0  ;;  %v4731_v6 = vpop.f32.mrf.mxu1  ;;  %v3747_v5 = vrot.slane %v2883_v2, 4  ;;  %v3750_v25 = vrot.slane %v6209_v16, 3  ;;  %v3783_v36 = vrot.slane %v2883_v2, 6  ;;  %v3768_v24 = vrot.slane %v6209_v16, 4 }
 0xcd5   :  { %v3785_v31 = vrot.slane %v6209_v16, 5  ;;  %v3867_v11 = vrot.slane %v2883_v2, 3  ;;  %v3834_v4 = vsel %vm3748_vm8, %v3833_v50, %v3832_v46  ;;  %v3767_v3 = vsel %vm3748_vm8, %v3766_v15, %v3765_v39 }
 0xcd6   :  { %v2886_v18 = vpop.f32.mrf.mxu0  ;;  %v2929_v27 = vpop.f32.mrf.mxu1  ;;  %v3820_v43 = vsel %vm3751_vm9, %v3819_v26, %v3818_v8  ;;  %v3749_v19 = vsel %vm3748_vm8, %v3747_v5, %v3746_v61  ;;  %v3784_v21 = vsel %vm3748_vm8, %v3783_v36, %v3782_v59  ;;  %v3869_v62 = vrot.slane %v6209_v16, 2 }
 0xcd7   :  { %v3752_v58 = vsel %vm3751_vm9, %v3750_v25, %v3749_v19  ;;  %v3868_v20 = vsel %vm3748_vm8, %v3867_v11, %v3866_v47  ;;  %v3786_v29 = vsel %vm3751_vm9, %v3785_v31, %v3784_v21  ;;  %v3850_v30 = vrot.slane %v2883_v2, 2 }
 0xcd8   :  { %v4726_v52 = vpop.f32.mrf.mxu0  ;;  %v4732_v32 = vpop.f32.mrf.mxu1  ;;  %v3800_v23 = vrot.slane %v2883_v2, 7  ;;  %v3835_v53 = vsel %vm3751_vm9, %v6209_v16, %v3834_v4  ;;  %v3769_v40 = vsel %vm3751_vm9, %v3768_v24, %v3767_v3  ;;  %v3870_v42 = vsel %vm3751_vm9, %v3869_v62, %v3868_v20 }
 0xcd9   :  { %v3851_v28 = vsel %vm3748_vm8, %v3850_v30, %v3849_v12  ;;  %v3852_v61 = vrot.slane %v6209_v16, 1  ;;  %v3802_v10 = vrot.slane %v6209_v16, 6 }
 0xcda   :  { %v2969_v63 = vpop.f32.mrf.mxu0  ;;  %v3012_v35 = vpop.f32.mrf.mxu1  ;;  %v3801_v37 = vsel %vm3748_vm8, %v3800_v23, %v3799_v55  ;;  %v3458_v23 = vsel %vm193_vm1, %v2404_v51, 0  ;;  %v2407_v51 = vpack.c.bf16 %v5960_v14, %v5960_v14 }
 0xcdb   :  { %v3836_v59 = vrot.slane %v2969_v63, 7  ;;  %v3838_v47 = vrot.slane %v3012_v35, 6  ;;  %v3770_v60 = vrot.slane %v2969_v63, 3  ;;  %v3772_v41 = vrot.slane %v3012_v35, 2 }
 0xcdc   :  { %v4737_v34 = vpop.f32.mrf.mxu0  ;;  %v4743_v57 = vpop.f32.mrf.mxu1  ;;  %v3823_v38 = vrot.slane %v3012_v35, 5  ;;  %v3821_v44 = vrot.slane %v2969_v63, 6  ;;  %v3756_v22 = vrot.slane %v3012_v35, 1  ;;  %v3753_v49 = vrot.slane %v2969_v63, 2 }
 0xcdd   :  { %v3837_v2 = vsel %vm3754_vm10, %v3836_v59, %v3835_v53  ;;  %v3771_v12 = vsel %vm3754_vm10, %v3770_v60, %v3769_v40  ;;  %v3787_v7 = vrot.slane %v2969_v63, 4  ;;  %v3789_v9 = vrot.slane %v3012_v35, 3 }
 0xcde   :  { %v2972_v46 = vpop.f32.mrf.mxu0  ;;  %v3015_v55 = vpop.f32.mrf.mxu1  ;;  %v3839_v16 = vsel %vm3757_vm11, %v3838_v47, %v3837_v2  ;;  %v3773_v50 = vsel %vm3757_vm11, %v3772_v41, %v3771_v12  ;;  %v3822_v15 = vsel %vm3754_vm10, %v3821_v44, %v3820_v43  ;;  %v3755_v8 = vsel %vm3754_vm10, %v3753_v49, %v3752_v58 }
 0xcdf   :  { %3840 = vrot.lane.b32.xlu0 %v3839_v16, %s5234_s24  ;;  %3774 = vrot.lane.b32.xlu1 %v3773_v50, %s5234_s24  ;;  %v6250_v13 = vsel %vm3757_vm11, %v3823_v38, %v3822_v15  ;;  %v6253_v6 = vsel %vm3757_vm11, %v3756_v22, %v3755_v8  ;;  %v3788_v26 = vsel %vm3754_vm10, %v3787_v7, %v3786_v29  ;;  %v3871_v5 = vrot.slane %v2969_v63, 1 }
 0xce0   :  { %v4738_v25 = vpop.f32.mrf.mxu0  ;;  %v4744_v36 = vpop.f32.mrf.mxu1  ;;  %v6257_v39 = vsel %vm3757_vm11, %v3789_v9, %v3788_v26  ;;  %v3853_v24 = vsel %vm3751_vm9, %v3852_v61, %v3851_v28  ;;  %v3855_v31 = vrot.slane %v3012_v35, 7  ;;  %v3803_v11 = vsel %vm3751_vm9, %v3802_v10, %v3801_v37 }
 0xce1   :  { %v3872_v18 = vsel %vm3754_vm10, %v3871_v5, %v3870_v42  ;;  %v3854_v27 = vsel %vm3754_vm10, %v2969_v63, %v3853_v24  ;;  %v3804_v4 = vrot.slane %v2969_v63, 5  ;;  %v3806_v3 = vrot.slane %v3012_v35, 4 }
 0xce2   :  { %v3054_v43 = vpop.f32.mrf.mxu0  ;;  %v3096_v19 = vpop.f32.mrf.mxu1  ;;  %v6264_v58 = vsel %vm3757_vm11, %v3012_v35, %v3872_v18  ;;  %v6267_v21 = vsel %vm3757_vm11, %v3855_v31, %v3854_v27  ;;  %v3504_v53 = vsel %vm193_vm1, %v2405_v54, 0  ;;  %v3550_v47 = vsel %vm193_vm1, %v2406_v17, 0 }
 0xce3   :  { %v3354_v20 = vpack.c.bf16 %v3054_v43, %v3054_v43  ;;  %v3355_v62 = vpack.c.bf16 %v3096_v19, %v3096_v19  ;;  %v3805_v52 = vsel %vm3754_vm10, %v3804_v4, %v3803_v11  ;;  %v3596_v60 = vsel %vm193_vm1, %v2407_v51, 0 }
 0xce4   :  { %v4749_v32 = vpop.f32.mrf.mxu0  ;;  %v4755_v29 = vpop.f32.mrf.mxu1  ;;  %v6271_v30 = vsel %vm3757_vm11, %v3806_v3, %v3805_v52  ;;  %v2408_v57 = vpack.c.bf16 %v5964_v1, %v5964_v1  ;;  %v2409_v38 = vpack.c.bf16 %v5966_v48, %v5966_v48 }
 0xce5   :  { %4796 = vmatmul.mubr.msk.bf16.vlgmr.msra.gmra.mxu0 %vm189_vm2, %v3354_v20  ;;  %4802 = vmatmul.mubr.msk.bf16.vlgmr.msra.gmra.mxu1 %vm189_vm2, %v3355_v62 }
 0xce6   :  { %4806 = vmatpush3.bf16.msra.mxu0 %v3458_v23  ;;  %4812 = vmatpush3.bf16.msra.mxu1 %v3504_v53  ;;  %v3057_v40 = vpop.f32.mrf.mxu0  ;;  %v3099_v42 = vpop.f32.mrf.mxu1  ;;  %v3642_v9 = vsel %vm193_vm1, %v2408_v57, 0  ;;  %v3688_v46 = vsel %vm193_vm1, %v2409_v38, 0  ;;  %vm3878_vm1 = vcmask 523264  }
 0xce7   :  { %4807 = vmatprep.mubr.msk.bf16.mxu0 %vm5228_vm0, %v5227_v0  ;;  %4813 = vmatprep.mubr.msk.bf16.mxu1 %vm5228_vm0, %v5227_v0 }
 0xce8   :  { %v4750_v63 = vpop.f32.mrf.mxu0  ;;  %v4756_v35 = vpop.f32.mrf.mxu1  ;;  %4817 = vmatprep.subr.bf16.mxu0 %v5227_v0  ;;  %4823 = vmatprep.subr.bf16.mxu1 %v5227_v0 }
 0xcea   :  { %v3138_v54 = vpop.f32.mrf.mxu0  ;;  %v3180_v28 = vpop.f32.mrf.mxu1 }
 0xceb   :  { %v3356_v61 = vpack.c.bf16 %v3138_v54, %v3138_v54  ;;  %v3357_v37 = vpack.c.bf16 %v3180_v28, %v3180_v28 }
 0xcec   :  { %v4761_v10 = vpop.f32.mrf.mxu0  ;;  %v4767_v59 = vpop.f32.mrf.mxu1 }
 0xced   :  { %4808 = vmatmul.mubr.msk.bf16.vlgmr.msra.gmra.mxu0 %vm189_vm2, %v3356_v61  ;;  %4814 = vmatmul.mubr.msk.bf16.vlgmr.msra.gmra.mxu1 %vm189_vm2, %v3357_v37 }
 0xcee   :  { %4818 = vmatpush3.bf16.msra.mxu0 %v3550_v47  ;;  %4824 = vmatpush3.bf16.msra.mxu1 %v3596_v60  ;;  %v3141_v56 = vpop.f32.mrf.mxu0  ;;  %v3183_v41 = vpop.f32.mrf.mxu1 }
 0xcef   :  { %4819 = vmatprep.mubr.msk.bf16.mxu0 %vm5228_vm0, %v5227_v0  ;;  %4825 = vmatprep.mubr.msk.bf16.mxu1 %vm5228_vm0, %v5227_v0 }
 0xcf0   :  { %v4762_v14 = vpop.f32.mrf.mxu0  ;;  %v4768_v34 = vpop.f32.mrf.mxu1  ;;  %4829 = vmatprep.subr.bf16.mxu0 %v5227_v0  ;;  %4835 = vmatprep.subr.bf16.mxu1 %v5227_v0 }
 0xcf2   :  { %v3222_v44 = vpop.f32.mrf.mxu0  ;;  %v3264_v22 = vpop.f32.mrf.mxu1 }
 0xcf3   :  { %v3358_v49 = vpack.c.bf16 %v3222_v44, %v3222_v44  ;;  %v3359_v2 = vpack.c.bf16 %v3264_v22, %v3264_v22 }
 0xcf4   :  { %v4773_v12 = vpop.f32.mrf.mxu0  ;;  %v4779_v7 = vpop.f32.mrf.mxu1 }
 0xcf5   :  { %4820 = vmatmul.mubr.msk.bf16.vlgmr.msra.gmra.mxu0 %vm189_vm2, %v3358_v49  ;;  %4826 = vmatmul.mubr.msk.bf16.vlgmr.msra.gmra.mxu1 %vm189_vm2, %v3359_v2 }
 0xcf6   :  { %4830 = vmatpush3.bf16.msra.mxu0 %v3642_v9  ;;  %4836 = vmatpush3.bf16.msra.mxu1 %v3688_v46  ;;  %v3225_v1 = vpop.f32.mrf.mxu0  ;;  %v3267_v55 = vpop.f32.mrf.mxu1 }
 0xcf7   :  { %4831 = vmatprep.mubr.msk.bf16.mxu0 %vm5228_vm0, %v5227_v0  ;;  %4837 = vmatprep.mubr.msk.bf16.mxu1 %vm5228_vm0, %v5227_v0  ;;  %vm4185_vm0 = vcmask 588800  }
 0xcf8   :  { %v4774_v48 = vpop.f32.mrf.mxu0  ;;  %v4780_v16 = vpop.f32.mrf.mxu1 }
 0xcfa   :  { %v3306_v50 = vpop.f32.mrf.mxu0  ;;  %v3348_v15 = vpop.f32.mrf.mxu1 }
 0xcfb   :  { %v3360_v8 = vpack.c.bf16 %v3306_v50, %v3306_v50  ;;  %v3361_v26 = vpack.c.bf16 %v3348_v15, %v3348_v15 }
 0xcfc   :  { %v4785_v5 = vpop.f32.mrf.mxu0  ;;  %v4791_v25 = vpop.f32.mrf.mxu1 }
 0xcfd   :  { %4832 = vmatmul.mubr.msk.bf16.vlgmr.msra.gmra.mxu0 %vm189_vm2, %v3360_v8  ;;  %4838 = vmatmul.mubr.msk.bf16.vlgmr.msra.gmra.mxu1 %vm189_vm2, %v3361_v26 }
 0xcfe   :  { %v3309_v36 = vpop.f32.mrf.mxu0  ;;  %v3351_v24 = vpop.f32.mrf.mxu1 }
 0xd00   :  { %v4786_v31 = vpop.f32.mrf.mxu0  ;;  %v4792_v11 = vpop.f32.mrf.mxu1 }
 0xda5   :  { %v3402_v18 = vpop.f32.mrf.mxu0  ;;  %v3448_v27 = vpop.f32.mrf.mxu1 }
 0xda6   :  { %v3895_v4 = vrot.slane %v3448_v27, 7  ;;  %v4012_v32 = vrot.slane %v3402_v18, 7  ;;  %v4013_v29 = vrot.slane %v3448_v27, 6  ;;  %v3910_v23 = vrot.slane %v3402_v18, 1 }
 0xda7   :  { %v4797_v0 = vpop.f32.mrf.mxu0  ;;  %v4803_v3 = vpop.f32.mrf.mxu1  ;;  %v3927_v42 = vrot.slane %v3402_v18, 2  ;;  %v3928_v63 = vrot.slane %v3448_v27, 1  ;;  %v3995_v35 = vrot.slane %v3402_v18, 6  ;;  %v3996_v17 = vrot.slane %v3448_v27, 5 }
 0xda8   :  { %v3896_v20 = vsel %vm3739_vm5, %v3895_v4, %v3402_v18  ;;  %v4014_v28 = vsel %vm3739_vm5, %v4013_v29, %v4012_v32  ;;  %v3911_v61 = vsel %vm3739_vm5, %v3448_v27, %v3910_v23  ;;  %v3944_v60 = vrot.slane %v3402_v18, 3 }
 0xda9   :  { %v3405_v43 = vpop.f32.mrf.mxu0  ;;  %v3451_v19 = vpop.f32.mrf.mxu1  ;;  %v3945_v56 = vrot.slane %v3448_v27, 2  ;;  %v3929_v41 = vsel %vm3739_vm5, %v3928_v63, %v3927_v42  ;;  %v3997_v14 = vsel %vm3739_vm5, %v3996_v17, %v3995_v35  ;;  %v3961_v57 = vrot.slane %v3402_v18, 4 }
 0xdaa   :  { %v3962_v22 = vrot.slane %v3448_v27, 3  ;;  %v3978_v49 = vrot.slane %v3402_v18, 5  ;;  %v3979_v2 = vrot.slane %v3448_v27, 4 }
 0xdab   :  { %v4798_v62 = vpop.f32.mrf.mxu0  ;;  %v4804_v52 = vpop.f32.mrf.mxu1  ;;  %v3946_v18 = vsel %vm3739_vm5, %v3945_v56, %v3944_v60 }
 0xdac   :  { %v3963_v27 = vsel %vm3739_vm5, %v3962_v22, %v3961_v57  ;;  %v6348_v4 = vsel %vm3739_vm5, %v3979_v2, %v3978_v49  ;;  %vm3880_vm5 = vcmask 785408  }
 0xdad   :  { %v6315_v53 = vpop.f32.mrf.mxu0  ;;  %v6317_v40 = vpop.f32.mrf.mxu1 }
 0xdae   :  { %v4015_v59 = vrot.slane %v6315_v53, 5  ;;  %v3912_v47 = vrot.slane %v6315_v53, 7  ;;  %v3998_v34 = vrot.slane %v6315_v53, 4  ;;  %v3897_v12 = vrot.slane %v6315_v53, 6 }
 0xdaf   :  { %v4809_v51 = vpop.f32.mrf.mxu0  ;;  %v4815_v54 = vpop.f32.mrf.mxu1  ;;  %v4017_v7 = vrot.slane %v6317_v40, 4  ;;  %v3914_v9 = vrot.slane %v6317_v40, 6  ;;  %v3930_v46 = vsel %vm3742_vm6, %v6315_v53, %v3929_v41  ;;  %v3931_v1 = vrot.slane %v6317_v40, 7 }
 0xdb0   :  { %v4016_v16 = vsel %vm3742_vm6, %v4015_v59, %v4014_v28  ;;  %v3913_v50 = vsel %vm3742_vm6, %v3912_v47, %v3911_v61  ;;  %v4000_v15 = vrot.slane %v6317_v40, 3  ;;  %v3898_v8 = vsel %vm3742_vm6, %v3897_v12, %v3896_v20 }
 0xdb1   :  { %v3497_v37 = vpop.f32.mrf.mxu0  ;;  %v3543_v10 = vpop.f32.mrf.mxu1  ;;  %v3999_v5 = vsel %vm3742_vm6, %v3998_v34, %v3997_v14  ;;  %v3947_v25 = vrot.slane %v6315_v53, 1  ;;  %v3964_v36 = vrot.slane %v6315_v53, 2  ;;  %v4018_v0 = vsel %vm3745_vm7, %v4017_v7, %v4016_v16 }
 0xdb2   :  { %v3899_v19 = vrot.slane %v6317_v40, 5  ;;  %v3915_v32 = vsel %vm3745_vm7, %v3914_v9, %v3913_v50  ;;  %v3932_v29 = vsel %vm3745_vm7, %v3931_v1, %v3930_v46  ;;  %v4001_v23 = vsel %vm3745_vm7, %v4000_v15, %v3999_v5 }
 0xdb3   :  { %v4810_v38 = vpop.f32.mrf.mxu0  ;;  %v4816_v44 = vpop.f32.mrf.mxu1  ;;  %v3948_v63 = vsel %vm3742_vm6, %v3947_v25, %v3946_v18  ;;  %v3965_v35 = vsel %vm3742_vm6, %v3964_v36, %v3963_v27  ;;  %v3966_v17 = vrot.slane %v6317_v40, 1 }
 0xdb4   :  { %v3900_v56 = vsel %vm3745_vm7, %v3899_v19, %v3898_v8  ;;  %v3949_v57 = vsel %vm3745_vm7, %v6317_v40, %v3948_v63  ;;  %v3981_v44 = vrot.slane %v6315_v53, 3 }
 0xdb5   :  { %v6332_v55 = vpop.f32.mrf.mxu0  ;;  %v6334_v48 = vpop.f32.mrf.mxu1 }
 0xdb6   :  { %v4019_v26 = vrot.slane %v6332_v55, 3  ;;  %v3916_v11 = vrot.slane %v6332_v55, 5  ;;  %v3933_v3 = vrot.slane %v6332_v55, 6  ;;  %v4002_v43 = vrot.slane %v6332_v55, 2 }
 0xdb7   :  { %v4821_v24 = vpop.f32.mrf.mxu0  ;;  %v4827_v31 = vpop.f32.mrf.mxu1  ;;  %v4021_v52 = vrot.slane %v6334_v48, 2  ;;  %v3918_v61 = vrot.slane %v6334_v48, 4  ;;  %v3935_v37 = vrot.slane %v6334_v48, 5  ;;  %v4004_v10 = vrot.slane %v6334_v48, 1 }
 0xdb8   :  { %v4020_v42 = vsel %vm3748_vm8, %v4019_v26, %v4018_v0  ;;  %v3917_v28 = vsel %vm3748_vm8, %v3916_v11, %v3915_v32  ;;  %v3934_v59 = vsel %vm3748_vm8, %v3933_v3, %v3932_v29  ;;  %v4003_v47 = vsel %vm3748_vm8, %v4002_v43, %v4001_v23 }
 0xdb9   :  { %v3589_v20 = vpop.f32.mrf.mxu0  ;;  %v3635_v62 = vpop.f32.mrf.mxu1  ;;  %v3950_v60 = vrot.slane %v6332_v55, 7  ;;  %v4022_v34 = vsel %vm3751_vm9, %v4021_v52, %v4020_v42  ;;  %v3952_v38 = vrot.slane %v6334_v48, 6  ;;  %v3919_v46 = vsel %vm3751_vm9, %v3918_v61, %v3917_v28 }
 0xdba   :  { %v3936_v1 = vsel %vm3751_vm9, %v3935_v37, %v3934_v59  ;;  %v4005_v16 = vsel %vm3751_vm9, %v4004_v10, %v4003_v47  ;;  %v3901_v50 = vrot.slane %v6332_v55, 4  ;;  %v3903_v26 = vrot.slane %v6334_v48, 3 }
 0xdbb   :  { %v4822_v51 = vpop.f32.mrf.mxu0  ;;  %v4828_v54 = vpop.f32.mrf.mxu1  ;;  %v3951_v8 = vsel %vm3748_vm8, %v3950_v60, %v3949_v57  ;;  %v3967_v3 = vsel %vm3745_vm7, %v3966_v17, %v3965_v35  ;;  %v3982_v62 = vsel %vm3742_vm6, %v3981_v44, %v6348_v4  ;;  %v3983_v52 = vrot.slane %v6317_v40, 2 }
 0xdbc   :  { %v3968_v20 = vsel %vm3748_vm8, %v6332_v55, %v3967_v3  ;;  %v3902_v32 = vsel %vm3748_vm8, %v3901_v50, %v3900_v56  ;;  %v3953_v29 = vsel %vm3751_vm9, %v3952_v38, %v3951_v8  ;;  %v3969_v4 = vrot.slane %v6334_v48, 7 }
 0xdbd   :  { %v6370_v41 = vpop.f32.mrf.mxu0  ;;  %v6372_v14 = vpop.f32.mrf.mxu1  ;;  %v3904_v23 = vsel %vm3751_vm9, %v3903_v26, %v3902_v32  ;;  %v3985_v28 = vrot.slane %v6332_v55, 1  ;;  %v3984_v60 = vsel %vm3745_vm7, %v3983_v52, %v3982_v62  ;;  %vm4187_vm6 = vcmask 654336  }
 0xdbe   :  { %v4023_v22 = vrot.slane %v6370_v41, 1  ;;  %v3920_v49 = vrot.slane %v6370_v41, 3  ;;  %v3922_v2 = vrot.slane %v6372_v14, 2  ;;  %v3937_v12 = vrot.slane %v6370_v41, 4 }
 0xdbf   :  { %v4833_v7 = vpop.f32.mrf.mxu0  ;;  %v4839_v9 = vpop.f32.mrf.mxu1  ;;  %v3939_v31 = vrot.slane %v6372_v14, 3  ;;  %v4007_v11 = vrot.slane %v6372_v14, 7  ;;  %v4006_v27 = vsel %vm3754_vm10, %v6370_v41, %v4005_v16  ;;  %v3954_v0 = vrot.slane %v6370_v41, 5 }
 0xdc0   :  { %v4024_v53 = vsel %vm3754_vm10, %v4023_v22, %v4022_v34  ;;  %v3921_v15 = vsel %vm3754_vm10, %v3920_v49, %v3919_v46  ;;  %v3938_v18 = vsel %vm3754_vm10, %v3937_v12, %v3936_v1  ;;  %v3907_v42 = vrot.slane %v6372_v14, 1 }
 0xdc1   :  { %v3681_v5 = vpop.f32.mrf.mxu0  ;;  %v3727_v25 = vpop.f32.mrf.mxu1  ;;  %v4025_v36 = vsel %vm3757_vm11, %v6372_v14, %v4024_v53  ;;  %v3923_v24 = vsel %vm3757_vm11, %v3922_v2, %v3921_v15  ;;  %v3905_v63 = vrot.slane %v6370_v41, 2  ;;  %v3940_v35 = vsel %vm3757_vm11, %v3939_v31, %v3938_v18 }
 0xdc2   :  { %4026 = vrot.lane.b32.xlu1 %v4025_v36, %s5235_s20  ;;  %3924 = vrot.lane.b32.xlu0 %v3923_v24, %s5236_s2  ;;  %v4008_v17 = vsel %vm3757_vm11, %v4007_v11, %v4006_v27  ;;  %v3956_v51 = vrot.slane %v6372_v14, 4  ;;  %v3955_v40 = vsel %vm3754_vm10, %v3954_v0, %v3953_v29  ;;  %v3971_v54 = vrot.slane %v6370_v41, 6 }
 0xdc3   :  { %v4834_v43 = vpop.f32.mrf.mxu0  ;;  %v4840_v19 = vpop.f32.mrf.mxu1  ;;  %v3906_v61 = vsel %vm3754_vm10, %v3905_v63, %v3904_v23  ;;  %v3970_v59 = vsel %vm3751_vm9, %v3969_v4, %v3968_v20  ;;  %v3973_v47 = vrot.slane %v6372_v14, 5  ;;  %v3986_v55 = vsel %vm3748_vm8, %v3985_v28, %v3984_v60 }
 0xdc4   :  { %v3908_v37 = vsel %vm3757_vm11, %v3907_v42, %v3906_v61  ;;  %v3957_v10 = vsel %vm3757_vm11, %v3956_v51, %v3955_v40  ;;  %v3972_v56 = vsel %vm3754_vm10, %v3971_v54, %v3970_v59  ;;  %v3988_v34 = vrot.slane %v6370_v41, 7 }
 0xdc5   :  { %v3974_v57 = vsel %vm3757_vm11, %v3973_v47, %v3972_v56  ;;  %v3987_v38 = vsel %vm3751_vm9, %v6334_v48, %v3986_v55  ;;  %v3990_v44 = vrot.slane %v6372_v14, 6  ;;  %v4137_v48 = vpop.permute.xlu1 %4136  ;;  %vm4194_vm7 = vcmask 916480  }
 0xdc6   :  { %3941 = vrot.lane.b32.xlu1 %v3940_v35, %s5237_s0  ;;  %4009 = vrot.lane.b32.xlu0 %v4008_v17, %s5238_s19  ;;  %vm4196_vm8 = vcmask 982016  }
 0xdc9   :  { %v4069_v41 = vpop.permute.xlu1 %4068 }
 0xdca   :  { %3958 = vrot.lane.b32.xlu1 %v3957_v10, %s5239_s25  ;;  %3791 = vrot.lane.b32.xlu0 %v6257_v39, %s5220_s23  ;;  %v3989_v39 = vsel %vm3754_vm10, %v3988_v34, %v3987_v38 }
 0xdcb   :  { %v3991_v22 = vsel %vm3757_vm11, %v3990_v44, %v3989_v39 }
 0xdcd   :  { %v4103_v49 = vpop.permute.xlu1 %4102 }
 0xdce   :  { %3975 = vrot.lane.b32.xlu1 %v3974_v57, %s5234_s24  ;;  %4153 = vrot.lane.b32.xlu0 %v5991_v45, %s5240_s26  ;;  %v4052_v45 = vpop.permute.xlu0 %4051 }
 0xdd1   :  { %v3775_v7 = vpop.permute.xlu1 %3774 }
 0xdd2   :  { %3992 = vrot.lane.b32.xlu1 %v3991_v22, %s5241_s4  ;;  %3874 = vrot.lane.b32.xlu0 %v6264_v58, %s5233_s1  ;;  %v4086_v14 = vpop.permute.xlu0 %4085  ;;  %v3877_v19 = vsel %vm581_vm3, %v6253_v6, %v3775_v7 }
 0xdd6   :  { %3857 = vrot.lane.b32.xlu1 %v6267_v21, %s5220_s23  ;;  %v4120_v2 = vpop.permute.xlu0 %4119  ;;  %s5243_s23 = smov [#allocation14]  }
 0xdd7   :  { %s4205_s5 = sshll.u32 %s5243_s23, 4  ;;  %s4206_s5 = int_to_ptr.vmem [resolvable:$true] %s4205_s5 }
 0xdd8   :  { %s5166_s9 = scalar_lea.vmem %s4206_s5, 256  ;;  %p5171_p8 = scmp.lt.s32.totalorder %s4206_s5, %s4206_s5 }
 0xdd9   :  { %p5167_p7 = scmp.ne.s32.totalorder %s4206_s5, %s5166_s9  ;;  %p5172_p9 = scmp.lt.s32.totalorder %s5166_s9, %s5166_s9 }
 0xdda   :  { %3808 = vrot.lane.b32.xlu1 %v6271_v30, %s5233_s1  ;;  %v3841_v12 = vpop.permute.xlu0 %3840 }
 0xddb   :  { %v3882_v24 = vsel %vm581_vm3, %v6250_v13, %v3841_v12  ;;  %p5173_p10 = por %p5172_p9, %p5171_p8 }
 0xddd   :  { %p5174_p11 = pnand %p5173_p10, %p5167_p7 }
 0xdde   :  { %4170 = vrot.lane.b32.xlu1 %v6000_v33, %s5242_s3 }
 0xe34   :  { %v4027_v9 = vpop.permute.xlu1 %4026  ;;  %v3925_v46 = vpop.permute.xlu0 %3924 }
 0xe35   :  { %v4173_v30 = vsel %vm189_vm2, %v3908_v37, %v3925_v46  ;;  %vm4189_vm2 = vcmask 719872  }
 0xe38   :  { %v3942_v58 = vpop.permute.xlu1 %3941  ;;  %v4010_v1 = vpop.permute.xlu0 %4009 }
 0xe39   :  { %v4174_v33 = vsel %vm1990_vm4, %v4173_v30, %v3942_v58  ;;  %vm4192_vm4 = vcmask 850944  }
 0xe3c   :  { %v3959_v16 = vpop.permute.xlu1 %3958  ;;  %v3792_v21 = vpop.permute.xlu0 %3791 }
 0xe3d   :  { %v4176_v53 = vsel %vm4175_vm12, %v4174_v33, %v3959_v16  ;;  %v3879_v13 = vsel %vm3878_vm1, %v3877_v19, %v3792_v21 }
 0xe40   :  { %v3976_v50 = vpop.permute.xlu1 %3975  ;;  %v4154_v15 = vpop.permute.xlu0 %4153 }
 0xe41   :  { %v4177_v8 = vsel %vm581_vm3, %v4176_v53, %v3976_v50 }
 0xe44   :  { %v3993_v26 = vpop.permute.xlu1 %3992  ;;  %v3875_v27 = vpop.permute.xlu0 %3874 }
 0xe45   :  { %v4179_v5 = vsel %vm4178_vm13, %v4177_v8, %v3993_v26 }
 0xe46   :  { %v4181_v25 = vsel %vm4180_vm14, %v4179_v5, %v4010_v1 }
 0xe47   :  { %v4183_v36 = vsel %vm4182_vm15, %v4181_v25, %v4027_v9 }
 0xe48   :  { %v4184_v31 = vsel %vm3878_vm1, %v4183_v36, %v4052_v45  ;;  %v3858_v11 = vpop.permute.xlu1 %3857 }
 0xe49   :  { %v4186_v18 = vsel %vm4185_vm0, %v4184_v31, %v4069_v41  ;;  %v3883_v0 = vsel %vm3878_vm1, %v3882_v24, %v3858_v11 }
 0xe4a   :  { %v3884_v3 = vsel %vm3880_vm5, %v3883_v0, %v3875_v27  ;;  %v4188_v43 = vsel %vm4187_vm6, %v4186_v18, %v4086_v14 }
 0xe4b   :  { %3886 = vst [vmem:[#allocation14 + $0x8] sm:$0xff] %v3884_v3  ;;  %v4190_v20 = vsel %vm4189_vm2, %v4188_v43, %v4103_v49 }
 0xe4c   :  { %v3809_v62 = vpop.permute.xlu1 %3808  ;;  %v4191_v52 = vsel %vm3880_vm5, %v4190_v20, %v4120_v2 }
 0xe4d   :  { %v3881_v32 = vsel %vm3880_vm5, %v3879_v13, %v3809_v62  ;;  %v4193_v29 = vsel %vm4192_vm4, %v4191_v52, %v4137_v48 }
 0xe4e   :  { %3885 = vst [vmem:[#allocation14] sm:$0xff] %v3881_v32 }
 0xe4f   :  { %5177 = shalt.err (!%p5174_p11)
}
 0xe50   :  { %4208 = dma.vmem_to_hbm [thread:$0]  %s4206_s5, 256, %s6477_s14, [#allocation4]   ;;  %v4171_v6 = vpop.permute.xlu1 %4170  ;;  %v4195_v23 = vsel %vm4194_vm7, %v4193_v29, %v4154_v15 }
 0xe51   :  { %v4197_v42 = vsel %vm4196_vm8, %v4195_v23, %v4171_v6  ;;  %s5186_s28 = scalar_lea.vmem %s4216_s6, 128  ;;  %p5191_p13 = scmp.lt.s32.totalorder %s4216_s6, %s4216_s6 }
 0xe52   :  { %4198 = vst [vmem:[#allocation15] sm:$0xff] %v4197_v42  ;;  %p5187_p12 = scmp.ne.s32.totalorder %s4216_s6, %s5186_s28  ;;  %p5192_p0 = scmp.lt.s32.totalorder %s5186_s28, %s5186_s28 }
 0xe54   :  { %p5193_p1 = por %p5192_p0, %p5191_p13 }
 0xe56   :  { %p5194_p2 = pnand %p5193_p1, %p5187_p12 }
 0xe58   :  { %5197 = shalt.err (!%p5194_p2)
}
 0xe59   :  { %4218 = dma.vmem_to_hbm [thread:$0]  %s4216_s6, 128, %s6478_s15, [#allocation16]  }
 0xe5a   :  { %5214 = dma.done.wait [#allocation4], 256  }
 0xe5b   :  { %5215 = vsyncadd [#allocation4], 4294967040 }
 0xe5c   :  { %5216 = dma.done.wait [#allocation16], 128  }
 0xe5d   :  { %5217 = vsyncadd [#allocation16], 4294967168 }
 0xe5e   :  { %4225 = vsyncpa [#allocation3], 1 }
 0xe5f   :  { %4226 = vsyncpa [#allocation6], 1 }
 0xe60   :  { %4227 = vsyncpa [#allocation9], 1 }
 0xe61   :  { %4228 = vsyncpa [#allocation12], 1 }
 0xe62   :  { %4229 = vsyncpa [#allocation4], 1 }
 0xe63   :  { %4230 = vsyncpa [#allocation16], 1 }

</bundles_post_ra>
